<compile_context>
chip_gen: v5e
topology: v5e:2x2
jax: 0.10.0
libtpu: 0.0.40
codegen_flags: <defaults>
</compile_context>

<pallas_src>
import functools

import jax
import jax.numpy as jnp
from jax.experimental import pallas as pl
from jax.experimental.pallas import tpu as pltpu

LANE = 128


def clsnet_kernel(x_ref, wband_ref, bc_ref, wf_ref, bf_ref, o_ref, pooled_ref):
    # x_ref     : (B, H+2, (W+2)*C_in)   bf16  zero-padded NHWC rows, row-major
    # wband_ref : (3, (W+2)*C_in, W*C_mid) bf16 banded conv weights (one per dy)
    # bc_ref    : (1, W*C_mid)           f32   conv bias tiled over w
    # wf_ref    : (W*C_mid, NCp)         f32   FC weights tiled over w, * 1/(H*W)
    # bf_ref    : (1, NCp)               f32   FC bias (lane-padded)
    # o_ref     : (B, NCp)               f32   lane-padded logits
    # pooled_ref: (B, W*C_mid)           f32   tiny pooled-sum accumulator
    B, HP, _ = x_ref.shape
    H = HP - 2
    KH = wband_ref.shape[0]

    # Hoist the three (dy) banded weight slabs; compiler spills/reloads from
    # VMEM as needed (they are small and grid-resident).
    wb = [wband_ref[dy] for dy in range(KH)]

    for b in range(B):  # static unroll over the image block
        # 3x3 conv for one image = 3 accumulating MXU matmuls:
        #   rows shifted by dy  @  banded weight for dy  ->  (H, W*C_mid)
        acc = jnp.dot(x_ref[b, 0:H, :], wb[0],
                      preferred_element_type=jnp.float32)
        for dy in range(1, KH):
            acc = acc + jnp.dot(x_ref[b, dy:dy + H, :], wb[dy],
                                preferred_element_type=jnp.float32)
        # fused bias + ReLU in f32, then pool over H immediately (row sum);
        # the pool over W and the 1/(H*W) scale are folded into wf_ref.
        act = jnp.maximum(acc + bc_ref[...], 0.0)           # (H, W*C_mid) f32
        pooled_ref[b:b + 1, :] = jnp.sum(act, axis=0, keepdims=True)

    # Linear classifier head ('linear' feature) — kept fully in f32.
    logits = jnp.dot(pooled_ref[...], wf_ref[...],
                     preferred_element_type=jnp.float32) + bf_ref[...]
    o_ref[...] = logits


@functools.partial(jax.jit, static_argnames=("block_b",))
def clsnet_forward(images_nchw, w_conv, b_conv, w_fc, b_fc, *, block_b=None):
    """images_nchw: (N, C_in, H, W) float32 (PyTorch NCHW convention)."""
    N, C_in, H, W = images_nchw.shape
    kh, kw, _, C_mid = w_conv.shape
    assert (kh, kw) == (3, 3), "backbone conv is 3x3, stride 1, pad 1"
    num_classes = w_fc.shape[-1]
    HW = H * W
    HP = H + 2                      # padded height
    RW = (W + 2) * C_in             # one padded row, channels-last flattened
    WCm = W * C_mid                 # conv output row width (lane-dense: 512)
    NCp = -(-num_classes // LANE) * LANE

    if block_b is None:
        # >=2 parallel grid steps keeps both v7x TensorCores fed; larger
        # blocks amortize the ~0.35us fixed per-step cost as N grows.
        # (For very large block_b, switch the static per-image unroll in the
        # kernel to a lax.fori_loop.)
        block_b = int(max(8, min(16, N // 2)))
    B = block_b
    N_pad = -(-N // B) * B

    # --- light wrapper glue (no im2col): NCHW -> NHWC, zero-pad, bf16 -------
    x = jnp.transpose(images_nchw, (0, 2, 3, 1))                 # (N,H,W,C)
    xp = jnp.pad(x, ((0, 0), (1, 1), (1, 1), (0, 0)))            # (N,HP,W+2,C)
    xr = xp.reshape(N, HP, RW).astype(jnp.bfloat16)
    if N_pad != N:
        xr = jnp.pad(xr, ((0, N_pad - N), (0, 0), (0, 0)))

    # --- banded conv weights: wband[dy, i*C_in+c, w*C_mid+m] -----------------
    #       = w_conv[dy, dx, c, m]  iff  i == w + dx  (else 0)
    f32 = jnp.float32
    d_idx = jnp.arange(kw)[:, None, None]                        # dx
    i_idx = jnp.arange(W + 2)[None, :, None]                     # padded col
    w_idx = jnp.arange(W)[None, None, :]                         # output col
    sel = (i_idx == w_idx + d_idx).astype(f32)                   # (3, W+2, W)
    wband = jnp.einsum('diw,ydcm->yicwm', sel, w_conv.astype(f32))
    wband = wband.reshape(kh, RW, WCm).astype(jnp.bfloat16)

    # conv bias tiled over w; FC weight tiled over w with 1/(H*W) folded in.
    bc = jnp.tile(b_conv.astype(f32).reshape(1, C_mid), (1, W))  # (1, WCm)
    wf_t = jnp.tile(w_fc.astype(f32), (W, 1)) * (1.0 / HW)       # (WCm, NC)
    wf_t = jnp.pad(wf_t, ((0, 0), (0, NCp - num_classes)))       # (WCm, NCp)
    bf = jnp.pad(b_fc.astype(f32).reshape(1, num_classes),
                 ((0, 0), (0, NCp - num_classes)))               # (1, NCp)

    grid_spec = pltpu.PrefetchScalarGridSpec(
        num_scalar_prefetch=0,
        grid=(N_pad // B,),
        in_specs=[
            pl.BlockSpec((B, HP, RW), lambda i: (i, 0, 0)),
            pl.BlockSpec((kh, RW, WCm), lambda i: (0, 0, 0)),
            pl.BlockSpec((1, WCm), lambda i: (0, 0)),
            pl.BlockSpec((WCm, NCp), lambda i: (0, 0)),
            pl.BlockSpec((1, NCp), lambda i: (0, 0)),
        ],
        out_specs=pl.BlockSpec((B, NCp), lambda i: (i, 0)),
        scratch_shapes=[pltpu.VMEM((B, WCm), jnp.float32)],
    )

    logits_padded = pl.pallas_call(
        clsnet_kernel,
        out_shape=jax.ShapeDtypeStruct((N_pad, NCp), jnp.float32),
        grid_spec=grid_spec,
        compiler_params=pltpu.CompilerParams(
            dimension_semantics=("parallel",)),
    )(xr, wband, bc, wf_t, bf)

    # slice away batch padding and lane padding of the classes
    return logits_padded[:N, :num_classes]


def clsnet_reference(images_nchw, w_conv, b_conv, w_fc, b_fc):
    """Pure-JAX f32 reference of the same forward for a correctness check."""
    N, C_in, H, W = images_nchw.shape
    C_mid = w_conv.shape[-1]
    x = jnp.transpose(images_nchw, (0, 2, 3, 1))
    xp = jnp.pad(x, ((0, 0), (1, 1), (1, 1), (0, 0)))
    acc = jnp.zeros((N, H, W, C_mid), jnp.float32)
    for dy in range(3):
        for dx in range(3):
            acc = acc + jnp.einsum(
                'nhwc,cm->nhwm',
                xp[:, dy:dy + H, dx:dx + W, :], w_conv[dy, dx])
    acc = jnp.maximum(acc + b_conv, 0.0)
    pooled = acc.mean(axis=(1, 2))
    return pooled @ w_fc + b_fc


if __name__ == "__main__":
    # small shapes consistent with an image-classification forward;
    # N=16 -> block_b=8 -> 2 parallel grid blocks (both v7x TensorCores busy)
    N, C_in, H, W = 16, 4, 16, 16
    C_mid, NUM_CLASSES = 32, 10

    key = jax.random.PRNGKey(0)
    k_img, k_wc, k_bc, k_wf, k_bf = jax.random.split(key, 5)

    images = jax.random.normal(k_img, (N, C_in, H, W), jnp.float32)
    w_conv = jax.random.normal(k_wc, (3, 3, C_in, C_mid), jnp.float32) * 0.1
    b_conv = jax.random.normal(k_bc, (C_mid,), jnp.float32) * 0.1
    w_fc = jax.random.normal(k_wf, (C_mid, NUM_CLASSES), jnp.float32) * 0.1
    b_fc = jax.random.normal(k_bf, (NUM_CLASSES,), jnp.float32) * 0.1

    logits = clsnet_forward(images, w_conv, b_conv, w_fc, b_fc)
    jax.block_until_ready(logits)

    ref = clsnet_reference(images, w_conv, b_conv, w_fc, b_fc)
    assert logits.shape == (N, NUM_CLASSES)
    max_err = float(jnp.max(jnp.abs(logits - ref)))
    # bf16 conv operands with f32 accumulation and an all-f32 head
    assert jnp.allclose(logits, ref, atol=2e-2, rtol=2e-2), (
        f"Pallas output does not match reference (max_err={max_err})")

    # TODO(synk): training-path CrossEntropyLoss / topk inference (forward_d2)
    # and pixel mean/std preprocessing are not part of ClsNet.forward and are
    # left out of the kernel.
    print("KERNEL_OK")
</pallas_src>

<mosaic_0001>
module attributes {stable_mosaic.version = 11 : i64} {
  func.func @clsnet_kernel(%arg0: i32, %arg1: memref<8x18x72xbf16, #tpu.memory_space<vmem>>, %arg2: memref<3x72x512xbf16, #tpu.memory_space<vmem>>, %arg3: memref<1x512xf32, #tpu.memory_space<vmem>>, %arg4: memref<512x128xf32, #tpu.memory_space<vmem>>, %arg5: memref<1x128xf32, #tpu.memory_space<vmem>>, %arg6: memref<8x128xf32, #tpu.memory_space<vmem>>, %arg7: memref<8x512xf32, #tpu.memory_space<vmem>>) attributes {dimension_semantics = [#tpu.dimension_semantics<parallel>], iteration_bounds = array<i64: 2>, scalar_prefetch = 0 : i64, scratch_operands = 1 : i64, tpu.core_type = #tpu.core_type<tc>, window_params = [{transform_indices = @transform_0, window_bounds = array<i64: 8, 18, 72>}, {pipeline_mode = #tpu.pipeline_mode<synchronous>, transform_indices = @transform_1, window_bounds = array<i64: 3, 72, 512>}, {pipeline_mode = #tpu.pipeline_mode<synchronous>, transform_indices = @transform_2, window_bounds = array<i64: 1, 512>}, {pipeline_mode = #tpu.pipeline_mode<synchronous>, transform_indices = @transform_3, window_bounds = array<i64: 512, 128>}, {pipeline_mode = #tpu.pipeline_mode<synchronous>, transform_indices = @transform_4, window_bounds = array<i64: 1, 128>}, {transform_indices = @transform_5, window_bounds = array<i64: 8, 128>}]} {
    %c0 = arith.constant 0 : index
    %c0_0 = arith.constant 0 : index
    %c0_1 = arith.constant 0 : index
    %0 = vector.load %arg2[%c0, %c0_0, %c0_1] : memref<3x72x512xbf16, #tpu.memory_space<vmem>>, vector<1x72x512xbf16>
    %1 = vector.shape_cast %0 : vector<1x72x512xbf16> to vector<72x512xbf16>
    %c1 = arith.constant 1 : index
    %c0_2 = arith.constant 0 : index
    %c0_3 = arith.constant 0 : index
    %2 = vector.load %arg2[%c1, %c0_2, %c0_3] : memref<3x72x512xbf16, #tpu.memory_space<vmem>>, vector<1x72x512xbf16>
    %3 = vector.shape_cast %2 : vector<1x72x512xbf16> to vector<72x512xbf16>
    %c2 = arith.constant 2 : index
    %c0_4 = arith.constant 0 : index
    %c0_5 = arith.constant 0 : index
    %4 = vector.load %arg2[%c2, %c0_4, %c0_5] : memref<3x72x512xbf16, #tpu.memory_space<vmem>>, vector<1x72x512xbf16>
    %5 = vector.shape_cast %4 : vector<1x72x512xbf16> to vector<72x512xbf16>
    %c0_6 = arith.constant 0 : index
    %c0_7 = arith.constant 0 : index
    %c0_8 = arith.constant 0 : index
    %6 = vector.load %arg1[%c0_6, %c0_7, %c0_8] : memref<8x18x72xbf16, #tpu.memory_space<vmem>>, vector<1x16x72xbf16>
    %7 = vector.shape_cast %6 : vector<1x16x72xbf16> to vector<16x72xbf16>
    %cst = arith.constant dense<0.000000e+00> : vector<16x512xf32>
    %8 = tpu.matmul %7, %1, %cst {dimension_numbers = #tpu.dot_dimension_numbers<[1], [0], [0], [1], [0, 0, 1, 1], [], []>} : vector<16x72xbf16>, vector<72x512xbf16>, vector<16x512xf32> -> vector<16x512xf32>
    %c0_9 = arith.constant 0 : index
    %c1_10 = arith.constant 1 : index
    %c0_11 = arith.constant 0 : index
    %9 = vector.load %arg1[%c0_9, %c1_10, %c0_11] : memref<8x18x72xbf16, #tpu.memory_space<vmem>>, vector<1x16x72xbf16>
    %10 = vector.shape_cast %9 : vector<1x16x72xbf16> to vector<16x72xbf16>
    %cst_12 = arith.constant dense<0.000000e+00> : vector<16x512xf32>
    %11 = tpu.matmul %10, %3, %cst_12 {dimension_numbers = #tpu.dot_dimension_numbers<[1], [0], [0], [1], [0, 0, 1, 1], [], []>} : vector<16x72xbf16>, vector<72x512xbf16>, vector<16x512xf32> -> vector<16x512xf32>
    %12 = arith.addf %8, %11 : vector<16x512xf32>
    %c0_13 = arith.constant 0 : index
    %c2_14 = arith.constant 2 : index
    %c0_15 = arith.constant 0 : index
    %13 = vector.load %arg1[%c0_13, %c2_14, %c0_15] : memref<8x18x72xbf16, #tpu.memory_space<vmem>>, vector<1x16x72xbf16>
    %14 = vector.shape_cast %13 : vector<1x16x72xbf16> to vector<16x72xbf16>
    %cst_16 = arith.constant dense<0.000000e+00> : vector<16x512xf32>
    %15 = tpu.matmul %14, %5, %cst_16 {dimension_numbers = #tpu.dot_dimension_numbers<[1], [0], [0], [1], [0, 0, 1, 1], [], []>} : vector<16x72xbf16>, vector<72x512xbf16>, vector<16x512xf32> -> vector<16x512xf32>
    %16 = arith.addf %12, %15 : vector<16x512xf32>
    %c0_17 = arith.constant 0 : index
    %c0_18 = arith.constant 0 : index
    %17 = vector.load %arg3[%c0_17, %c0_18] : memref<1x512xf32, #tpu.memory_space<vmem>>, vector<1x512xf32>
    %18 = vector.broadcast %17 : vector<1x512xf32> to vector<16x512xf32>
    %19 = arith.addf %16, %18 : vector<16x512xf32>
    %cst_19 = arith.constant 0.000000e+00 : f32
    %20 = vector.broadcast %cst_19 : f32 to vector<16x512xf32>
    %21 = arith.maximumf %19, %20 : vector<16x512xf32>
    %cst_20 = arith.constant dense<0.000000e+00> : vector<512xf32>
    %22 = vector.multi_reduction <add>, %21, %cst_20 [0] : vector<16x512xf32> to vector<512xf32>
    %23 = vector.shape_cast %22 : vector<512xf32> to vector<1x512xf32>
    %c0_21 = arith.constant 0 : index
    %c0_22 = arith.constant 0 : index
    %24 = vector.load %arg7[%c0_21, %c0_22] : memref<8x512xf32, #tpu.memory_space<vmem>>, vector<1x512xf32>
    tpu.vector_store %arg7[%c0_21, %c0_22], %23 {strides = array<i32>} : memref<8x512xf32, #tpu.memory_space<vmem>>, vector<1x512xf32>,
    %c1_23 = arith.constant 1 : index
    %c0_24 = arith.constant 0 : index
    %c0_25 = arith.constant 0 : index
    %25 = vector.load %arg1[%c1_23, %c0_24, %c0_25] : memref<8x18x72xbf16, #tpu.memory_space<vmem>>, vector<1x16x72xbf16>
    %26 = vector.shape_cast %25 : vector<1x16x72xbf16> to vector<16x72xbf16>
    %cst_26 = arith.constant dense<0.000000e+00> : vector<16x512xf32>
    %27 = tpu.matmul %26, %1, %cst_26 {dimension_numbers = #tpu.dot_dimension_numbers<[1], [0], [0], [1], [0, 0, 1, 1], [], []>} : vector<16x72xbf16>, vector<72x512xbf16>, vector<16x512xf32> -> vector<16x512xf32>
    %c1_27 = arith.constant 1 : index
    %c1_28 = arith.constant 1 : index
    %c0_29 = arith.constant 0 : index
    %28 = vector.load %arg1[%c1_27, %c1_28, %c0_29] : memref<8x18x72xbf16, #tpu.memory_space<vmem>>, vector<1x16x72xbf16>
    %29 = vector.shape_cast %28 : vector<1x16x72xbf16> to vector<16x72xbf16>
    %cst_30 = arith.constant dense<0.000000e+00> : vector<16x512xf32>
    %30 = tpu.matmul %29, %3, %cst_30 {dimension_numbers = #tpu.dot_dimension_numbers<[1], [0], [0], [1], [0, 0, 1, 1], [], []>} : vector<16x72xbf16>, vector<72x512xbf16>, vector<16x512xf32> -> vector<16x512xf32>
    %31 = arith.addf %27, %30 : vector<16x512xf32>
    %c1_31 = arith.constant 1 : index
    %c2_32 = arith.constant 2 : index
    %c0_33 = arith.constant 0 : index
    %32 = vector.load %arg1[%c1_31, %c2_32, %c0_33] : memref<8x18x72xbf16, #tpu.memory_space<vmem>>, vector<1x16x72xbf16>
    %33 = vector.shape_cast %32 : vector<1x16x72xbf16> to vector<16x72xbf16>
    %cst_34 = arith.constant dense<0.000000e+00> : vector<16x512xf32>
    %34 = tpu.matmul %33, %5, %cst_34 {dimension_numbers = #tpu.dot_dimension_numbers<[1], [0], [0], [1], [0, 0, 1, 1], [], []>} : vector<16x72xbf16>, vector<72x512xbf16>, vector<16x512xf32> -> vector<16x512xf32>
    %35 = arith.addf %31, %34 : vector<16x512xf32>
    %c0_35 = arith.constant 0 : index
    %c0_36 = arith.constant 0 : index
    %36 = vector.load %arg3[%c0_35, %c0_36] : memref<1x512xf32, #tpu.memory_space<vmem>>, vector<1x512xf32>
    %37 = vector.broadcast %36 : vector<1x512xf32> to vector<16x512xf32>
    %38 = arith.addf %35, %37 : vector<16x512xf32>
    %cst_37 = arith.constant 0.000000e+00 : f32
    %39 = vector.broadcast %cst_37 : f32 to vector<16x512xf32>
    %40 = arith.maximumf %38, %39 : vector<16x512xf32>
    %cst_38 = arith.constant dense<0.000000e+00> : vector<512xf32>
    %41 = vector.multi_reduction <add>, %40, %cst_38 [0] : vector<16x512xf32> to vector<512xf32>
    %42 = vector.shape_cast %41 : vector<512xf32> to vector<1x512xf32>
    %c1_39 = arith.constant 1 : index
    %c0_40 = arith.constant 0 : index
    %43 = vector.load %arg7[%c1_39, %c0_40] : memref<8x512xf32, #tpu.memory_space<vmem>>, vector<1x512xf32>
    tpu.vector_store %arg7[%c1_39, %c0_40], %42 {strides = array<i32>} : memref<8x512xf32, #tpu.memory_space<vmem>>, vector<1x512xf32>,
    %c2_41 = arith.constant 2 : index
    %c0_42 = arith.constant 0 : index
    %c0_43 = arith.constant 0 : index
    %44 = vector.load %arg1[%c2_41, %c0_42, %c0_43] : memref<8x18x72xbf16, #tpu.memory_space<vmem>>, vector<1x16x72xbf16>
    %45 = vector.shape_cast %44 : vector<1x16x72xbf16> to vector<16x72xbf16>
    %cst_44 = arith.constant dense<0.000000e+00> : vector<16x512xf32>
    %46 = tpu.matmul %45, %1, %cst_44 {dimension_numbers = #tpu.dot_dimension_numbers<[1], [0], [0], [1], [0, 0, 1, 1], [], []>} : vector<16x72xbf16>, vector<72x512xbf16>, vector<16x512xf32> -> vector<16x512xf32>
    %c2_45 = arith.constant 2 : index
    %c1_46 = arith.constant 1 : index
    %c0_47 = arith.constant 0 : index
    %47 = vector.load %arg1[%c2_45, %c1_46, %c0_47] : memref<8x18x72xbf16, #tpu.memory_space<vmem>>, vector<1x16x72xbf16>
    %48 = vector.shape_cast %47 : vector<1x16x72xbf16> to vector<16x72xbf16>
    %cst_48 = arith.constant dense<0.000000e+00> : vector<16x512xf32>
    %49 = tpu.matmul %48, %3, %cst_48 {dimension_numbers = #tpu.dot_dimension_numbers<[1], [0], [0], [1], [0, 0, 1, 1], [], []>} : vector<16x72xbf16>, vector<72x512xbf16>, vector<16x512xf32> -> vector<16x512xf32>
    %50 = arith.addf %46, %49 : vector<16x512xf32>
    %c2_49 = arith.constant 2 : index
    %c2_50 = arith.constant 2 : index
    %c0_51 = arith.constant 0 : index
    %51 = vector.load %arg1[%c2_49, %c2_50, %c0_51] : memref<8x18x72xbf16, #tpu.memory_space<vmem>>, vector<1x16x72xbf16>
    %52 = vector.shape_cast %51 : vector<1x16x72xbf16> to vector<16x72xbf16>
    %cst_52 = arith.constant dense<0.000000e+00> : vector<16x512xf32>
    %53 = tpu.matmul %52, %5, %cst_52 {dimension_numbers = #tpu.dot_dimension_numbers<[1], [0], [0], [1], [0, 0, 1, 1], [], []>} : vector<16x72xbf16>, vector<72x512xbf16>, vector<16x512xf32> -> vector<16x512xf32>
    %54 = arith.addf %50, %53 : vector<16x512xf32>
    %c0_53 = arith.constant 0 : index
    %c0_54 = arith.constant 0 : index
    %55 = vector.load %arg3[%c0_53, %c0_54] : memref<1x512xf32, #tpu.memory_space<vmem>>, vector<1x512xf32>
    %56 = vector.broadcast %55 : vector<1x512xf32> to vector<16x512xf32>
    %57 = arith.addf %54, %56 : vector<16x512xf32>
    %cst_55 = arith.constant 0.000000e+00 : f32
    %58 = vector.broadcast %cst_55 : f32 to vector<16x512xf32>
    %59 = arith.maximumf %57, %58 : vector<16x512xf32>
    %cst_56 = arith.constant dense<0.000000e+00> : vector<512xf32>
    %60 = vector.multi_reduction <add>, %59, %cst_56 [0] : vector<16x512xf32> to vector<512xf32>
    %61 = vector.shape_cast %60 : vector<512xf32> to vector<1x512xf32>
    %c2_57 = arith.constant 2 : index
    %c0_58 = arith.constant 0 : index
    %62 = vector.load %arg7[%c2_57, %c0_58] : memref<8x512xf32, #tpu.memory_space<vmem>>, vector<1x512xf32>
    tpu.vector_store %arg7[%c2_57, %c0_58], %61 {strides = array<i32>} : memref<8x512xf32, #tpu.memory_space<vmem>>, vector<1x512xf32>,
    %c3 = arith.constant 3 : index
    %c0_59 = arith.constant 0 : index
    %c0_60 = arith.constant 0 : index
    %63 = vector.load %arg1[%c3, %c0_59, %c0_60] : memref<8x18x72xbf16, #tpu.memory_space<vmem>>, vector<1x16x72xbf16>
    %64 = vector.shape_cast %63 : vector<1x16x72xbf16> to vector<16x72xbf16>
    %cst_61 = arith.constant dense<0.000000e+00> : vector<16x512xf32>
    %65 = tpu.matmul %64, %1, %cst_61 {dimension_numbers = #tpu.dot_dimension_numbers<[1], [0], [0], [1], [0, 0, 1, 1], [], []>} : vector<16x72xbf16>, vector<72x512xbf16>, vector<16x512xf32> -> vector<16x512xf32>
    %c3_62 = arith.constant 3 : index
    %c1_63 = arith.constant 1 : index
    %c0_64 = arith.constant 0 : index
    %66 = vector.load %arg1[%c3_62, %c1_63, %c0_64] : memref<8x18x72xbf16, #tpu.memory_space<vmem>>, vector<1x16x72xbf16>
    %67 = vector.shape_cast %66 : vector<1x16x72xbf16> to vector<16x72xbf16>
    %cst_65 = arith.constant dense<0.000000e+00> : vector<16x512xf32>
    %68 = tpu.matmul %67, %3, %cst_65 {dimension_numbers = #tpu.dot_dimension_numbers<[1], [0], [0], [1], [0, 0, 1, 1], [], []>} : vector<16x72xbf16>, vector<72x512xbf16>, vector<16x512xf32> -> vector<16x512xf32>
    %69 = arith.addf %65, %68 : vector<16x512xf32>
    %c3_66 = arith.constant 3 : index
    %c2_67 = arith.constant 2 : index
    %c0_68 = arith.constant 0 : index
    %70 = vector.load %arg1[%c3_66, %c2_67, %c0_68] : memref<8x18x72xbf16, #tpu.memory_space<vmem>>, vector<1x16x72xbf16>
    %71 = vector.shape_cast %70 : vector<1x16x72xbf16> to vector<16x72xbf16>
    %cst_69 = arith.constant dense<0.000000e+00> : vector<16x512xf32>
    %72 = tpu.matmul %71, %5, %cst_69 {dimension_numbers = #tpu.dot_dimension_numbers<[1], [0], [0], [1], [0, 0, 1, 1], [], []>} : vector<16x72xbf16>, vector<72x512xbf16>, vector<16x512xf32> -> vector<16x512xf32>
    %73 = arith.addf %69, %72 : vector<16x512xf32>
    %c0_70 = arith.constant 0 : index
    %c0_71 = arith.constant 0 : index
    %74 = vector.load %arg3[%c0_70, %c0_71] : memref<1x512xf32, #tpu.memory_space<vmem>>, vector<1x512xf32>
    %75 = vector.broadcast %74 : vector<1x512xf32> to vector<16x512xf32>
    %76 = arith.addf %73, %75 : vector<16x512xf32>
    %cst_72 = arith.constant 0.000000e+00 : f32
    %77 = vector.broadcast %cst_72 : f32 to vector<16x512xf32>
    %78 = arith.maximumf %76, %77 : vector<16x512xf32>
    %cst_73 = arith.constant dense<0.000000e+00> : vector<512xf32>
    %79 = vector.multi_reduction <add>, %78, %cst_73 [0] : vector<16x512xf32> to vector<512xf32>
    %80 = vector.shape_cast %79 : vector<512xf32> to vector<1x512xf32>
    %c3_74 = arith.constant 3 : index
    %c0_75 = arith.constant 0 : index
    %81 = vector.load %arg7[%c3_74, %c0_75] : memref<8x512xf32, #tpu.memory_space<vmem>>, vector<1x512xf32>
    tpu.vector_store %arg7[%c3_74, %c0_75], %80 {strides = array<i32>} : memref<8x512xf32, #tpu.memory_space<vmem>>, vector<1x512xf32>,
    %c4 = arith.constant 4 : index
    %c0_76 = arith.constant 0 : index
    %c0_77 = arith.constant 0 : index
    %82 = vector.load %arg1[%c4, %c0_76, %c0_77] : memref<8x18x72xbf16, #tpu.memory_space<vmem>>, vector<1x16x72xbf16>
    %83 = vector.shape_cast %82 : vector<1x16x72xbf16> to vector<16x72xbf16>
    %cst_78 = arith.constant dense<0.000000e+00> : vector<16x512xf32>
    %84 = tpu.matmul %83, %1, %cst_78 {dimension_numbers = #tpu.dot_dimension_numbers<[1], [0], [0], [1], [0, 0, 1, 1], [], []>} : vector<16x72xbf16>, vector<72x512xbf16>, vector<16x512xf32> -> vector<16x512xf32>
    %c4_79 = arith.constant 4 : index
    %c1_80 = arith.constant 1 : index
    %c0_81 = arith.constant 0 : index
    %85 = vector.load %arg1[%c4_79, %c1_80, %c0_81] : memref<8x18x72xbf16, #tpu.memory_space<vmem>>, vector<1x16x72xbf16>
    %86 = vector.shape_cast %85 : vector<1x16x72xbf16> to vector<16x72xbf16>
    %cst_82 = arith.constant dense<0.000000e+00> : vector<16x512xf32>
    %87 = tpu.matmul %86, %3, %cst_82 {dimension_numbers = #tpu.dot_dimension_numbers<[1], [0], [0], [1], [0, 0, 1, 1], [], []>} : vector<16x72xbf16>, vector<72x512xbf16>, vector<16x512xf32> -> vector<16x512xf32>
    %88 = arith.addf %84, %87 : vector<16x512xf32>
    %c4_83 = arith.constant 4 : index
    %c2_84 = arith.constant 2 : index
    %c0_85 = arith.constant 0 : index
    %89 = vector.load %arg1[%c4_83, %c2_84, %c0_85] : memref<8x18x72xbf16, #tpu.memory_space<vmem>>, vector<1x16x72xbf16>
    %90 = vector.shape_cast %89 : vector<1x16x72xbf16> to vector<16x72xbf16>
    %cst_86 = arith.constant dense<0.000000e+00> : vector<16x512xf32>
    %91 = tpu.matmul %90, %5, %cst_86 {dimension_numbers = #tpu.dot_dimension_numbers<[1], [0], [0], [1], [0, 0, 1, 1], [], []>} : vector<16x72xbf16>, vector<72x512xbf16>, vector<16x512xf32> -> vector<16x512xf32>
    %92 = arith.addf %88, %91 : vector<16x512xf32>
    %c0_87 = arith.constant 0 : index
    %c0_88 = arith.constant 0 : index
    %93 = vector.load %arg3[%c0_87, %c0_88] : memref<1x512xf32, #tpu.memory_space<vmem>>, vector<1x512xf32>
    %94 = vector.broadcast %93 : vector<1x512xf32> to vector<16x512xf32>
    %95 = arith.addf %92, %94 : vector<16x512xf32>
    %cst_89 = arith.constant 0.000000e+00 : f32
    %96 = vector.broadcast %cst_89 : f32 to vector<16x512xf32>
    %97 = arith.maximumf %95, %96 : vector<16x512xf32>
    %cst_90 = arith.constant dense<0.000000e+00> : vector<512xf32>
    %98 = vector.multi_reduction <add>, %97, %cst_90 [0] : vector<16x512xf32> to vector<512xf32>
    %99 = vector.shape_cast %98 : vector<512xf32> to vector<1x512xf32>
    %c4_91 = arith.constant 4 : index
    %c0_92 = arith.constant 0 : index
    %100 = vector.load %arg7[%c4_91, %c0_92] : memref<8x512xf32, #tpu.memory_space<vmem>>, vector<1x512xf32>
    tpu.vector_store %arg7[%c4_91, %c0_92], %99 {strides = array<i32>} : memref<8x512xf32, #tpu.memory_space<vmem>>, vector<1x512xf32>,
    %c5 = arith.constant 5 : index
    %c0_93 = arith.constant 0 : index
    %c0_94 = arith.constant 0 : index
    %101 = vector.load %arg1[%c5, %c0_93, %c0_94] : memref<8x18x72xbf16, #tpu.memory_space<vmem>>, vector<1x16x72xbf16>
    %102 = vector.shape_cast %101 : vector<1x16x72xbf16> to vector<16x72xbf16>
    %cst_95 = arith.constant dense<0.000000e+00> : vector<16x512xf32>
    %103 = tpu.matmul %102, %1, %cst_95 {dimension_numbers = #tpu.dot_dimension_numbers<[1], [0], [0], [1], [0, 0, 1, 1], [], []>} : vector<16x72xbf16>, vector<72x512xbf16>, vector<16x512xf32> -> vector<16x512xf32>
    %c5_96 = arith.constant 5 : index
    %c1_97 = arith.constant 1 : index
    %c0_98 = arith.constant 0 : index
    %104 = vector.load %arg1[%c5_96, %c1_97, %c0_98] : memref<8x18x72xbf16, #tpu.memory_space<vmem>>, vector<1x16x72xbf16>
    %105 = vector.shape_cast %104 : vector<1x16x72xbf16> to vector<16x72xbf16>
    %cst_99 = arith.constant dense<0.000000e+00> : vector<16x512xf32>
    %106 = tpu.matmul %105, %3, %cst_99 {dimension_numbers = #tpu.dot_dimension_numbers<[1], [0], [0], [1], [0, 0, 1, 1], [], []>} : vector<16x72xbf16>, vector<72x512xbf16>, vector<16x512xf32> -> vector<16x512xf32>
    %107 = arith.addf %103, %106 : vector<16x512xf32>
    %c5_100 = arith.constant 5 : index
    %c2_101 = arith.constant 2 : index
    %c0_102 = arith.constant 0 : index
    %108 = vector.load %arg1[%c5_100, %c2_101, %c0_102] : memref<8x18x72xbf16, #tpu.memory_space<vmem>>, vector<1x16x72xbf16>
    %109 = vector.shape_cast %108 : vector<1x16x72xbf16> to vector<16x72xbf16>
    %cst_103 = arith.constant dense<0.000000e+00> : vector<16x512xf32>
    %110 = tpu.matmul %109, %5, %cst_103 {dimension_numbers = #tpu.dot_dimension_numbers<[1], [0], [0], [1], [0, 0, 1, 1], [], []>} : vector<16x72xbf16>, vector<72x512xbf16>, vector<16x512xf32> -> vector<16x512xf32>
    %111 = arith.addf %107, %110 : vector<16x512xf32>
    %c0_104 = arith.constant 0 : index
    %c0_105 = arith.constant 0 : index
    %112 = vector.load %arg3[%c0_104, %c0_105] : memref<1x512xf32, #tpu.memory_space<vmem>>, vector<1x512xf32>
    %113 = vector.broadcast %112 : vector<1x512xf32> to vector<16x512xf32>
    %114 = arith.addf %111, %113 : vector<16x512xf32>
    %cst_106 = arith.constant 0.000000e+00 : f32
    %115 = vector.broadcast %cst_106 : f32 to vector<16x512xf32>
    %116 = arith.maximumf %114, %115 : vector<16x512xf32>
    %cst_107 = arith.constant dense<0.000000e+00> : vector<512xf32>
    %117 = vector.multi_reduction <add>, %116, %cst_107 [0] : vector<16x512xf32> to vector<512xf32>
    %118 = vector.shape_cast %117 : vector<512xf32> to vector<1x512xf32>
    %c5_108 = arith.constant 5 : index
    %c0_109 = arith.constant 0 : index
    %119 = vector.load %arg7[%c5_108, %c0_109] : memref<8x512xf32, #tpu.memory_space<vmem>>, vector<1x512xf32>
    tpu.vector_store %arg7[%c5_108, %c0_109], %118 {strides = array<i32>} : memref<8x512xf32, #tpu.memory_space<vmem>>, vector<1x512xf32>,
    %c6 = arith.constant 6 : index
    %c0_110 = arith.constant 0 : index
    %c0_111 = arith.constant 0 : index
    %120 = vector.load %arg1[%c6, %c0_110, %c0_111] : memref<8x18x72xbf16, #tpu.memory_space<vmem>>, vector<1x16x72xbf16>
    %121 = vector.shape_cast %120 : vector<1x16x72xbf16> to vector<16x72xbf16>
    %cst_112 = arith.constant dense<0.000000e+00> : vector<16x512xf32>
    %122 = tpu.matmul %121, %1, %cst_112 {dimension_numbers = #tpu.dot_dimension_numbers<[1], [0], [0], [1], [0, 0, 1, 1], [], []>} : vector<16x72xbf16>, vector<72x512xbf16>, vector<16x512xf32> -> vector<16x512xf32>
    %c6_113 = arith.constant 6 : index
    %c1_114 = arith.constant 1 : index
    %c0_115 = arith.constant 0 : index
    %123 = vector.load %arg1[%c6_113, %c1_114, %c0_115] : memref<8x18x72xbf16, #tpu.memory_space<vmem>>, vector<1x16x72xbf16>
    %124 = vector.shape_cast %123 : vector<1x16x72xbf16> to vector<16x72xbf16>
    %cst_116 = arith.constant dense<0.000000e+00> : vector<16x512xf32>
    %125 = tpu.matmul %124, %3, %cst_116 {dimension_numbers = #tpu.dot_dimension_numbers<[1], [0], [0], [1], [0, 0, 1, 1], [], []>} : vector<16x72xbf16>, vector<72x512xbf16>, vector<16x512xf32> -> vector<16x512xf32>
    %126 = arith.addf %122, %125 : vector<16x512xf32>
    %c6_117 = arith.constant 6 : index
    %c2_118 = arith.constant 2 : index
    %c0_119 = arith.constant 0 : index
    %127 = vector.load %arg1[%c6_117, %c2_118, %c0_119] : memref<8x18x72xbf16, #tpu.memory_space<vmem>>, vector<1x16x72xbf16>
    %128 = vector.shape_cast %127 : vector<1x16x72xbf16> to vector<16x72xbf16>
    %cst_120 = arith.constant dense<0.000000e+00> : vector<16x512xf32>
    %129 = tpu.matmul %128, %5, %cst_120 {dimension_numbers = #tpu.dot_dimension_numbers<[1], [0], [0], [1], [0, 0, 1, 1], [], []>} : vector<16x72xbf16>, vector<72x512xbf16>, vector<16x512xf32> -> vector<16x512xf32>
    %130 = arith.addf %126, %129 : vector<16x512xf32>
    %c0_121 = arith.constant 0 : index
    %c0_122 = arith.constant 0 : index
    %131 = vector.load %arg3[%c0_121, %c0_122] : memref<1x512xf32, #tpu.memory_space<vmem>>, vector<1x512xf32>
    %132 = vector.broadcast %131 : vector<1x512xf32> to vector<16x512xf32>
    %133 = arith.addf %130, %132 : vector<16x512xf32>
    %cst_123 = arith.constant 0.000000e+00 : f32
    %134 = vector.broadcast %cst_123 : f32 to vector<16x512xf32>
    %135 = arith.maximumf %133, %134 : vector<16x512xf32>
    %cst_124 = arith.constant dense<0.000000e+00> : vector<512xf32>
    %136 = vector.multi_reduction <add>, %135, %cst_124 [0] : vector<16x512xf32> to vector<512xf32>
    %137 = vector.shape_cast %136 : vector<512xf32> to vector<1x512xf32>
    %c6_125 = arith.constant 6 : index
    %c0_126 = arith.constant 0 : index
    %138 = vector.load %arg7[%c6_125, %c0_126] : memref<8x512xf32, #tpu.memory_space<vmem>>, vector<1x512xf32>
    tpu.vector_store %arg7[%c6_125, %c0_126], %137 {strides = array<i32>} : memref<8x512xf32, #tpu.memory_space<vmem>>, vector<1x512xf32>,
    %c7 = arith.constant 7 : index
    %c0_127 = arith.constant 0 : index
    %c0_128 = arith.constant 0 : index
    %139 = vector.load %arg1[%c7, %c0_127, %c0_128] : memref<8x18x72xbf16, #tpu.memory_space<vmem>>, vector<1x16x72xbf16>
    %140 = vector.shape_cast %139 : vector<1x16x72xbf16> to vector<16x72xbf16>
    %cst_129 = arith.constant dense<0.000000e+00> : vector<16x512xf32>
    %141 = tpu.matmul %140, %1, %cst_129 {dimension_numbers = #tpu.dot_dimension_numbers<[1], [0], [0], [1], [0, 0, 1, 1], [], []>} : vector<16x72xbf16>, vector<72x512xbf16>, vector<16x512xf32> -> vector<16x512xf32>
    %c7_130 = arith.constant 7 : index
    %c1_131 = arith.constant 1 : index
    %c0_132 = arith.constant 0 : index
    %142 = vector.load %arg1[%c7_130, %c1_131, %c0_132] : memref<8x18x72xbf16, #tpu.memory_space<vmem>>, vector<1x16x72xbf16>
    %143 = vector.shape_cast %142 : vector<1x16x72xbf16> to vector<16x72xbf16>
    %cst_133 = arith.constant dense<0.000000e+00> : vector<16x512xf32>
    %144 = tpu.matmul %143, %3, %cst_133 {dimension_numbers = #tpu.dot_dimension_numbers<[1], [0], [0], [1], [0, 0, 1, 1], [], []>} : vector<16x72xbf16>, vector<72x512xbf16>, vector<16x512xf32> -> vector<16x512xf32>
    %145 = arith.addf %141, %144 : vector<16x512xf32>
    %c7_134 = arith.constant 7 : index
    %c2_135 = arith.constant 2 : index
    %c0_136 = arith.constant 0 : index
    %146 = vector.load %arg1[%c7_134, %c2_135, %c0_136] : memref<8x18x72xbf16, #tpu.memory_space<vmem>>, vector<1x16x72xbf16>
    %147 = vector.shape_cast %146 : vector<1x16x72xbf16> to vector<16x72xbf16>
    %cst_137 = arith.constant dense<0.000000e+00> : vector<16x512xf32>
    %148 = tpu.matmul %147, %5, %cst_137 {dimension_numbers = #tpu.dot_dimension_numbers<[1], [0], [0], [1], [0, 0, 1, 1], [], []>} : vector<16x72xbf16>, vector<72x512xbf16>, vector<16x512xf32> -> vector<16x512xf32>
    %149 = arith.addf %145, %148 : vector<16x512xf32>
    %c0_138 = arith.constant 0 : index
    %c0_139 = arith.constant 0 : index
    %150 = vector.load %arg3[%c0_138, %c0_139] : memref<1x512xf32, #tpu.memory_space<vmem>>, vector<1x512xf32>
    %151 = vector.broadcast %150 : vector<1x512xf32> to vector<16x512xf32>
    %152 = arith.addf %149, %151 : vector<16x512xf32>
    %cst_140 = arith.constant 0.000000e+00 : f32
    %153 = vector.broadcast %cst_140 : f32 to vector<16x512xf32>
    %154 = arith.maximumf %152, %153 : vector<16x512xf32>
    %cst_141 = arith.constant dense<0.000000e+00> : vector<512xf32>
    %155 = vector.multi_reduction <add>, %154, %cst_141 [0] : vector<16x512xf32> to vector<512xf32>
    %156 = vector.shape_cast %155 : vector<512xf32> to vector<1x512xf32>
    %c7_142 = arith.constant 7 : index
    %c0_143 = arith.constant 0 : index
    %157 = vector.load %arg7[%c7_142, %c0_143] : memref<8x512xf32, #tpu.memory_space<vmem>>, vector<1x512xf32>
    tpu.vector_store %arg7[%c7_142, %c0_143], %156 {strides = array<i32>} : memref<8x512xf32, #tpu.memory_space<vmem>>, vector<1x512xf32>,
    %c0_144 = arith.constant 0 : index
    %c0_145 = arith.constant 0 : index
    %158 = vector.load %arg7[%c0_144, %c0_145] : memref<8x512xf32, #tpu.memory_space<vmem>>, vector<8x512xf32>
    %c0_146 = arith.constant 0 : index
    %c0_147 = arith.constant 0 : index
    %159 = vector.load %arg4[%c0_146, %c0_147] : memref<512x128xf32, #tpu.memory_space<vmem>>, vector<512x128xf32>
    %cst_148 = arith.constant dense<0.000000e+00> : vector<8x128xf32>
    %160 = tpu.matmul %158, %159, %cst_148 {dimension_numbers = #tpu.dot_dimension_numbers<[1], [0], [0], [1], [0, 0, 1, 1], [], []>} : vector<8x512xf32>, vector<512x128xf32>, vector<8x128xf32> -> vector<8x128xf32>
    %c0_149 = arith.constant 0 : index
    %c0_150 = arith.constant 0 : index
    %161 = vector.load %arg5[%c0_149, %c0_150] : memref<1x128xf32, #tpu.memory_space<vmem>>, vector<1x128xf32>
    %162 = vector.broadcast %161 : vector<1x128xf32> to vector<8x128xf32>
    %163 = arith.addf %160, %162 : vector<8x128xf32>
    %c0_151 = arith.constant 0 : index
    %c0_152 = arith.constant 0 : index
    %164 = vector.load %arg6[%c0_151, %c0_152] : memref<8x128xf32, #tpu.memory_space<vmem>>, vector<8x128xf32>
    tpu.vector_store %arg6[%c0_151, %c0_152], %163 {strides = array<i32>} : memref<8x128xf32, #tpu.memory_space<vmem>>, vector<8x128xf32>,
    return
  }
  func.func @transform_0(%arg0: i32) -> (i32, i32, i32) {
    %c0_i32 = arith.constant 0 : i32
    %c0_i32_0 = arith.constant 0 : i32
    %c0_i32_1 = arith.constant 0 : i32
    return %arg0, %c0_i32, %c0_i32_0 : i32, i32, i32
  }
  func.func @transform_1(%arg0: i32) -> (i32, i32, i32) {
    %c0_i32 = arith.constant 0 : i32
    %c0_i32_0 = arith.constant 0 : i32
    %c0_i32_1 = arith.constant 0 : i32
    %c0_i32_2 = arith.constant 0 : i32
    return %c0_i32, %c0_i32_0, %c0_i32_1 : i32, i32, i32
  }
  func.func @transform_2(%arg0: i32) -> (i32, i32) {
    %c0_i32 = arith.constant 0 : i32
    %c0_i32_0 = arith.constant 0 : i32
    %c0_i32_1 = arith.constant 0 : i32
    return %c0_i32, %c0_i32_0 : i32, i32
  }
  func.func @transform_3(%arg0: i32) -> (i32, i32) {
    %c0_i32 = arith.constant 0 : i32
    %c0_i32_0 = arith.constant 0 : i32
    %c0_i32_1 = arith.constant 0 : i32
    return %c0_i32, %c0_i32_0 : i32, i32
  }
  func.func @transform_4(%arg0: i32) -> (i32, i32) {
    %c0_i32 = arith.constant 0 : i32
    %c0_i32_0 = arith.constant 0 : i32
    %c0_i32_1 = arith.constant 0 : i32
    return %c0_i32, %c0_i32_0 : i32, i32
  }
  func.func @transform_5(%arg0: i32) -> (i32, i32) {
    %c0_i32 = arith.constant 0 : i32
    %c0_i32_0 = arith.constant 0 : i32
    return %arg0, %c0_i32 : i32, i32
  }
}

</mosaic_0001>

<bundles_post_ra>
// kernel: clsnet_forward.1
= control target key start
LH: loop header
LB: loop body
LE: loop exit
PB: predicated region body
PF: predicated region fallthrough
CT: control target
= control target key end

     0   :  { %10 = vsyncpa [#allocation4], 0  ;;  %s5412_s0 = inlined_call_operand.vmem [shape: bf16[16,18,72], index: 0, kind: input, shape index: {}]   ;;  %s5413_s1 = inlined_call_operand.vmem [shape: bf16[3,72,512], index: 1, kind: input, shape index: {}]   ;;  %s5414_s2 = inlined_call_operand.vmem [shape: f32[1,512], index: 2, kind: input, shape index: {}]   ;;  %s5415_s3 = inlined_call_operand.vmem [shape: f32[512,128], index: 3, kind: input, shape index: {}]   ;;  %s5416_s4 = inlined_call_operand.vmem [shape: f32[1,128], index: 4, kind: input, shape index: {}]   ;;  %s5417_s5 = inlined_call_operand.hbm [shape: f32[16,128], index: 5, kind: output, shape index: {}]  }
   0x1   :  { %12 = vsyncpa [#allocation4 + $0x1], 0  ;;  %s3681_s18 = smov 0   ;;  %s3683_s19 = smov 0  }
   0x2   :  { %s3685_s20 = smov 0   ;;  %s3687_s21 = smov 0  }
   0x3 LB: > { %s3091_s22 = sadd.s32 4294967295, %s3649_s21   ;;  %s3092_s23 = sadd.s32 4294967294, %s3649_s21   ;;  %s3649_s21 = sphi %s3687_s21, %s5690_s21   ;;  %s3645_s20 = sphi %s3685_s20, %s5689_s20   ;;  %s3641_s19 = sphi %s3683_s19, %s5688_s19   ;;  %s3637_s18 = sphi %s3681_s18, %s5687_s18  }
   0x4   : > { %s3704_s24 = sadd.s32 1, %s3649_s21   ;;  %s135_s25 = sadd.s32 1, %s3645_s20 }
   0x5   : > { %s132_s26 = ssub.s32 %s3649_s21, %s3704_s24  ;;  %p145_p0 = scmp.ne.s32.totalorder %s3645_s20, %s3641_s19 }
   0x6   : > { %p133_p1 = scmp.eq.s32.totalorder %s132_s26, 0  ;;  %p146_p2 = scmp.eq.s32.totalorder %s3091_s22, 1 }
   0x7   : > { %p151_p3 = scmp.ne.s32.totalorder %s3641_s19, %s3637_s18  ;;  %p152_p4 = scmp.eq.s32.totalorder %s3092_s23, 1 }
   0x8   : > { %s3716_s27 = scalar_select %p133_p1, %s3645_s20, %s135_s25  }
   0x9   : > { %p3718_p5 = por %p146_p2, %p145_p0  ;;  %p3722_p6 = por %p152_p4, %p151_p3 }
   0xa   : > { %p3095_p7 = scmp.ge.s32.totalorder %s3649_s21, 1  ;;  %p192_p8 = scmp.lt.s32.totalorder %s3649_s21, 3 }
   0xc   : > { %p193_p9 = pnand %p3095_p7, %p192_p8 }
   0xe   : > { %196 = sbr.rel (%p193_p9) target bundleno = 817 (0x331), region = 40 }
  0x13   : > { %v3115_v0 = vld [vmem:[%s5413_s1 + $0x110] sm:$0xff]  ;;  %v3116_v1 = vld [vmem:[%s5413_s1 + $0x118] sm:$0xff]  ;;  %vm403_vm0 = vcmask 1043456   ;;  %v3485_v7 = vld [vmem:[%s5413_s1 + $0xfc] sm:$0xf0]  ;;  %s3811_s11 = sshll.u32 %s3091_s22, 3 }
  0x14   : > { %v359_v2 = vunpack.c.l.b16 %v3115_v0  ;;  %v360_v3 = vunpack.c.h.b16 %v3115_v0  ;;  %v361_v4 = vunpack.c.l.b16 %v3116_v1  ;;  %v362_v5 = vunpack.c.h.b16 %v3116_v1  ;;  %v3185_v6 = vld [vmem:[%s5413_s1 + $0xf0] sm:$0xf]  ;;  %v3483_v12 = vld [vmem:[%s5413_s1 + $0xf4] sm:$0xf]  ;;  %v3187_v13 = vld [vmem:[%s5413_s1 + $0x100] sm:$0xf0]  ;;  %s3028_s30 = scalar_lea.hbm %s5417_s5, %s3811_s11 }
  0x15   : > { %v3193_v14 = vld [vmem:[%s5413_s1 + $0xf8] sm:$0xf]  ;;  %v3486_v15 = vld [vmem:[%s5413_s1 + $0x104] sm:$0xf0]  ;;  %v3484_v16 = vld [vmem:[%s5413_s1 + $0xfc] sm:$0xf]  ;;  %v3772_v22 = vor.u32 %v3485_v7, %v3185_v6  ;;  %v3774_v23 = vor.u32 %v3483_v12, %v3187_v13 }
  0x16   : > { %v379_v8 = vpack.c.b16 %v359_v2, %v359_v2  ;;  %v380_v9 = vpack.c.b16 %v360_v3, %v360_v3  ;;  %v381_v10 = vpack.c.b16 %v361_v4, %v361_v4  ;;  %v382_v11 = vpack.c.b16 %v362_v5, %v362_v5  ;;  %v3195_v17 = vld [vmem:[%s5413_s1 + $0x108] sm:$0xf0]  ;;  %v3169_v24 = vld [vmem:[%s5413_s1 + $0xd0] sm:$0xf]  ;;  %v3481_v25 = vld [vmem:[%s5413_s1 + $0xdc] sm:$0xf0] }
  0x17   : > { %5519 = vst [vmem:[#allocation10_spill] sm:$0xff] %v3772_v22  ;;  %v3784_v26 = vor.u32 %v3486_v15, %v3193_v14  ;;  %v3786_v27 = vor.u32 %v3484_v16, %v3195_v17  ;;  %v3479_v28 = vld [vmem:[%s5413_s1 + $0xd4] sm:$0xf]  ;;  %v3171_v29 = vld [vmem:[%s5413_s1 + $0xe0] sm:$0xf0]  ;;  %v3815_v35 = vor.u32 %v3481_v25, %v3169_v24  ;;  %v246_v47 = vld [vmem:[%s5413_s1 + $0x88] sm:$0xff] }
  0x18   : > { %v3759_v18 = vsel %vm403_vm0, %v379_v8, 0  ;;  %v3762_v19 = vsel %vm403_vm0, %v380_v9, 0  ;;  %v3765_v20 = vsel %vm403_vm0, %v381_v10, 0  ;;  %v3768_v21 = vsel %vm403_vm0, %v382_v11, 0  ;;  %5520 = vst [vmem:[#allocation11_spill] sm:$0xff] %v3774_v23  ;;  %v245_v46 = vld [vmem:[%s5413_s1 + $0x80] sm:$0xff] }
  0x19   : > { %5515 = vst [vmem:[#allocation6_spill] sm:$0xff] %v3759_v18  ;;  %419 = vmatpush.bf16.msra.mxu0 %v3759_v18  ;;  %433 = vmatpush.bf16.msra.mxu1 %v3762_v19  ;;  %v3177_v30 = vld [vmem:[%s5413_s1 + $0xd8] sm:$0xf]  ;;  %v3482_v31 = vld [vmem:[%s5413_s1 + $0xe4] sm:$0xf0]  ;;  %v3817_v36 = vor.u32 %v3479_v28, %v3171_v29  ;;  %p222_p10 = scmp.lt.s32.totalorder %s3811_s11, 15  ;;  %v522_v49 = vunpack.c.l.b16 %v245_v46  ;;  %v523_v50 = vunpack.c.h.b16 %v245_v46  ;;  %v524_v55 = vunpack.c.l.b16 %v246_v47 }
  0x1a   : > { %5516 = vst [vmem:[#allocation7_spill] sm:$0xff] %v3762_v19  ;;  %447 = vmatpush.bf16.msra.mxu2 %v3765_v20  ;;  %461 = vmatpush.bf16.msra.mxu3 %v3768_v21  ;;  %v3480_v32 = vld [vmem:[%s5413_s1 + $0xdc] sm:$0xf]  ;;  %v3179_v33 = vld [vmem:[%s5413_s1 + $0xe8] sm:$0xf0]  ;;  %v3830_v40 = vor.u32 %v3482_v31, %v3177_v30  ;;  %v525_v56 = vunpack.c.h.b16 %v246_v47  ;;  %vm399_vm2 = vcmask 588800  }
  0x1b   : > { %5517 = vst [vmem:[#allocation8_spill] sm:$0xff] %v3765_v20  ;;  %v3153_v34 = vld [vmem:[%s5413_s1 + $0xb0] sm:$0xf]  ;;  %v3477_v37 = vld [vmem:[%s5413_s1 + $0xbc] sm:$0xf0]  ;;  %v3832_v41 = vor.u32 %v3480_v32, %v3179_v33  ;;  %s223_s25 = scalar_select %p222_p10, %s3811_s11, 15  ;;  %v542_v1 = vpack.c.b16 %v522_v49, %v522_v49  ;;  %v543_v2 = vpack.c.b16 %v523_v50, %v523_v50  ;;  %v544_v4 = vpack.c.b16 %v524_v55, %v524_v55 }
  0x1c   : > { %5518 = vst [vmem:[#allocation9_spill] sm:$0xff] %v3768_v21  ;;  %v3475_v38 = vld [vmem:[%s5413_s1 + $0xb4] sm:$0xf]  ;;  %v3155_v39 = vld [vmem:[%s5413_s1 + $0xc0] sm:$0xf0]  ;;  %v3858_v51 = vor.u32 %v3477_v37, %v3153_v34  ;;  %v545_v5 = vpack.c.b16 %v525_v56, %v525_v56  ;;  %v3134_v55 = vld [vmem:[%s5413_s1 + $0x1a8] sm:$0xff] }
  0x1d   : > { %5521 = vst [vmem:[#allocation12_spill] sm:$0xff] %v3784_v26  ;;  %420 = vmatpush.bf16.msra.mxu0 %v3772_v22  ;;  %434 = vmatpush.bf16.msra.mxu1 %v3774_v23  ;;  %v3161_v42 = vld [vmem:[%s5413_s1 + $0xb8] sm:$0xf]  ;;  %v3478_v43 = vld [vmem:[%s5413_s1 + $0xc4] sm:$0xf0]  ;;  %v3860_v52 = vor.u32 %v3475_v38, %v3155_v39  ;;  %s3534_s15 = smul.u32 12, %s223_s25 }
  0x1e   : > { %5522 = vst [vmem:[#allocation13_spill] sm:$0xff] %v3786_v27  ;;  %448 = vmatpush.bf16.msra.mxu2 %v3784_v26  ;;  %462 = vmatpush.bf16.msra.mxu3 %v3786_v27  ;;  %v3476_v44 = vld [vmem:[%s5413_s1 + $0xbc] sm:$0xf]  ;;  %v3163_v45 = vld [vmem:[%s5413_s1 + $0xc8] sm:$0xf0]  ;;  %v3871_v57 = vor.u32 %v3478_v43, %v3161_v42  ;;  %v3920_v15 = vsel %vm403_vm0, %v542_v1, 0 }
  0x1f   : > { %5523 = vst [vmem:[#allocation14_spill] sm:$0xff] %v3815_v35  ;;  %v3137_v48 = vld [vmem:[%s5413_s1 + $0x90] sm:$0xf]  ;;  %v3473_v53 = vld [vmem:[%s5413_s1 + $0x9c] sm:$0xf0]  ;;  %v3873_v58 = vor.u32 %v3476_v44, %v3163_v45  ;;  %s3899_s17 = scalar_lea.vmem %s5412_s0, %s3534_s15  ;;  %v3923_v16 = vsel %vm403_vm0, %v543_v2, 0 }
  0x20   : > { %5524 = vst [vmem:[#allocation15_spill] sm:$0xff] %v3817_v36  ;;  %v3471_v54 = vld [vmem:[%s5413_s1 + $0x94] sm:$0xf]  ;;  %v3139_v59 = vld [vmem:[%s5413_s1 + $0xa0] sm:$0xf0]  ;;  %v3890_v0 = vor.u32 %v3473_v53, %v3137_v48  ;;  %v3934_v25 = vsel %vm403_vm0, %v544_v4, 0 }
  0x21   : > { %5525 = vst [vmem:[#allocation16_spill] sm:$0xff] %v3830_v40  ;;  %421 = vmatpush.bf16.msra.mxu0 %v3815_v35  ;;  %435 = vmatpush.bf16.msra.mxu1 %v3817_v36  ;;  %v3145_v60 = vld [vmem:[%s5413_s1 + $0x98] sm:$0xf]  ;;  %v3474_v61 = vld [vmem:[%s5413_s1 + $0xa4] sm:$0xf0]  ;;  %v3894_v3 = vor.u32 %v3471_v54, %v3139_v59  ;;  %v3908_v8 = vld [vmem:[%s3899_s17] sm:$0xff]  }
  0x22   : > { %5526 = vst [vmem:[#allocation17_spill] sm:$0xff] %v3832_v41  ;;  %449 = vmatpush.bf16.msra.mxu2 %v3830_v40  ;;  %463 = vmatpush.bf16.msra.mxu3 %v3832_v41  ;;  %v3472_v62 = vld [vmem:[%s5413_s1 + $0x9c] sm:$0xf]  ;;  %v3147_v63 = vld [vmem:[%s5413_s1 + $0xa8] sm:$0xf0]  ;;  %v3903_v6 = vor.u32 %v3474_v61, %v3145_v60  ;;  %v298_v11 = vshrl.u32 %v3908_v8, 16 }
  0x23   : > { %5527 = vst [vmem:[#allocation18_spill] sm:$0xff] %v3858_v51  ;;  %v3905_v7 = vor.u32 %v3472_v62, %v3147_v63  ;;  %v287_v9 = vld [vmem:[%s3899_s17 + $0x8] sm:$0x1]  ;;  %vm296_vm1 = vsmask.f32 7424  ;;  %v300_v12 = vshll.u32 %v3908_v8, 16 }
  0x24   : > { %5528 = vst [vmem:[#allocation19_spill] sm:$0xff] %v3860_v52  ;;  %v293_v10 = vunpack.c.l.b16 %v287_v9  ;;  %v3253_v13 = vld [vmem:[%s5413_s1 + $0x60] sm:$0xf]  ;;  %v3469_v14 = vld [vmem:[%s5413_s1 + $0x6c] sm:$0xf0]  ;;  %v3937_v28 = vsel %vm403_vm0, %v545_v5, 0 }
  0x25   : > { %5529 = vst [vmem:[#allocation20_spill] sm:$0xff] %v3871_v57  ;;  %422 = vmatpush.bf16.msra.mxu0 %v3858_v51  ;;  %436 = vmatpush.bf16.msra.mxu1 %v3860_v52  ;;  %v3467_v17 = vld [vmem:[%s5413_s1 + $0x64] sm:$0xf]  ;;  %v3255_v24 = vld [vmem:[%s5413_s1 + $0x70] sm:$0xf0]  ;;  %v302_v30 = vrot.slane %v300_v12, 1  ;;  %v3955_v38 = vor.u32 %v3469_v14, %v3253_v13 }
  0x26   : > { %5530 = vst [vmem:[#allocation21_spill] sm:$0xff] %v3894_v3  ;;  %450 = vmatpush.bf16.msra.mxu2 %v3871_v57  ;;  %464 = vmatpush.bf16.msra.mxu3 %v3873_v58  ;;  %v3939_v29 = vpack.c.b16 %v293_v10, %v293_v10  ;;  %v3261_v31 = vld [vmem:[%s5413_s1 + $0x68] sm:$0xf]  ;;  %v3470_v32 = vld [vmem:[%s5413_s1 + $0x74] sm:$0xf0]  ;;  %v3957_v39 = vor.u32 %v3467_v17, %v3255_v24  ;;  %v3133_v48 = vld [vmem:[%s5413_s1 + $0x1a0] sm:$0xff]  ;;  %v692_v10 = vunpack.c.l.b16 %v3134_v55 }
  0x27   : > { %5531 = vst [vmem:[#allocation22_spill] sm:$0xff] %v3903_v6  ;;  %v3468_v33 = vld [vmem:[%s5413_s1 + $0x6c] sm:$0xf]  ;;  %v303_v34 = vor.u32 %v302_v30, %v298_v11  ;;  %v3263_v42 = vld [vmem:[%s5413_s1 + $0x78] sm:$0xf0]  ;;  %v3979_v49 = vor.u32 %v3470_v32, %v3261_v31  ;;  %v690_v5 = vunpack.c.l.b16 %v3133_v48  ;;  %v691_v9 = vunpack.c.h.b16 %v3133_v48  ;;  %s218_s22 = sand.u32 1, %s3641_s19  }
  0x28   : > { %5532 = vst [vmem:[#allocation23_spill] sm:$0xff] %v3905_v7  ;;  %v305_v37 = vshll.u32 %v3939_v29, 16  ;;  %v3237_v43 = vld [vmem:[%s5413_s1 + $0x40] sm:$0xf]  ;;  %v3465_v44 = vld [vmem:[%s5413_s1 + $0x4c] sm:$0xf0]  ;;  %v3981_v50 = vor.u32 %v3468_v33, %v3263_v42  ;;  %v693_v11 = vunpack.c.h.b16 %v3134_v55 }
  0x29   : > { %5533 = vst [vmem:[#allocation24_spill] sm:$0xff] %v3920_v15  ;;  %423 = vmatpush.bf16.msra.mxu0 %v3890_v0  ;;  %437 = vmatpush.bf16.msra.mxu1 %v3894_v3  ;;  %v3463_v45 = vld [vmem:[%s5413_s1 + $0x44] sm:$0xf]  ;;  %v3239_v46 = vld [vmem:[%s5413_s1 + $0x50] sm:$0xf0]  ;;  %v3995_v59 = vor.u32 %v3465_v44, %v3237_v43  ;;  %v710_v43 = vpack.c.b16 %v690_v5, %v690_v5  ;;  %vm636_vm3 = vcmask 1046528  }
  0x2a   : > { %5534 = vst [vmem:[#allocation25_spill] sm:$0xff] %v3923_v16  ;;  %451 = vmatpush.bf16.msra.mxu2 %v3903_v6  ;;  %465 = vmatpush.bf16.msra.mxu3 %v3905_v7  ;;  %v307_v47 = vrot.slane %v305_v37, 1  ;;  %v3245_v53 = vld [vmem:[%s5413_s1 + $0x48] sm:$0xf]  ;;  %v3466_v54 = vld [vmem:[%s5413_s1 + $0x54] sm:$0xf0]  ;;  %v3997_v60 = vor.u32 %v3463_v45, %v3239_v46  ;;  %v711_v44 = vpack.c.b16 %v691_v9, %v691_v9 }
  0x2b   : > { %5535 = vst [vmem:[#allocation26_spill] sm:$0xff] %v3934_v25  ;;  %v3464_v61 = vld [vmem:[%s5413_s1 + $0x4c] sm:$0xf]  ;;  %v3247_v62 = vld [vmem:[%s5413_s1 + $0x58] sm:$0xf0]  ;;  %v4023_v12 = vor.u32 %v3466_v54, %v3245_v53  ;;  %v712_v45 = vpack.c.b16 %v692_v10, %v692_v10  ;;  %v713_v46 = vpack.c.b16 %v693_v11, %v693_v11  ;;  %vm870_vm4 = vcmask 1040384  }
  0x2c   : > { %5536 = vst [vmem:[#allocation27_spill] sm:$0xff] %v3937_v28  ;;  %v308_v56 = vsel %vm296_vm1, %v303_v34, %v307_v47  ;;  %v3221_v63 = vld [vmem:[%s5413_s1 + $0x20] sm:$0xf]  ;;  %v3461_v1 = vld [vmem:[%s5413_s1 + $0x2c] sm:$0xf0]  ;;  %v4025_v13 = vor.u32 %v3464_v61, %v3247_v62  ;;  %vm872_vm5 = vcmask 1042434  }
  0x2d   : > { %579 = vmatpush.bf16.msrb.mxu0 %v3920_v15  ;;  %593 = vmatpush.bf16.msrb.mxu1 %v3923_v16  ;;  %5537 = vst [vmem:[#allocation28_spill] sm:$0xff] %v3979_v49  ;;  %v3459_v2 = vld [vmem:[%s5413_s1 + $0x24] sm:$0xf]  ;;  %v3223_v4 = vld [vmem:[%s5413_s1 + $0x30] sm:$0xf0]  ;;  %v4035_v24 = vor.u32 %v3461_v1, %v3221_v63  ;;  %v4082_v63 = vsel %vm403_vm0, %v710_v43, 0 }
  0x2e   : > { %607 = vmatpush.bf16.msrb.mxu2 %v3934_v25  ;;  %621 = vmatpush.bf16.msrb.mxu3 %v3937_v28  ;;  %5538 = vst [vmem:[#allocation29_spill] sm:$0xff] %v3981_v50  ;;  %v3229_v14 = vld [vmem:[%s5413_s1 + $0x28] sm:$0xf]  ;;  %v3462_v17 = vld [vmem:[%s5413_s1 + $0x34] sm:$0xf0]  ;;  %v4037_v30 = vor.u32 %v3459_v2, %v3223_v4  ;;  %v4085_v1 = vsel %vm403_vm0, %v711_v44, 0 }
  0x2f   : > { %3199 = vmatmul.msk.bf16.vlgmr.msra.gmra.mxu0 %vm399_vm2, %v308_v56  ;;  %3200 = vmatmul.msk.bf16.vlgmr.msra.gmra.mxu1 %vm399_vm2, %v308_v56  ;;  %5539 = vst [vmem:[#allocation30_spill] sm:$0xff] %v4025_v13  ;;  %v3460_v31 = vld [vmem:[%s5413_s1 + $0x2c] sm:$0xf]  ;;  %v3231_v32 = vld [vmem:[%s5413_s1 + $0x38] sm:$0xf0]  ;;  %v4059_v47 = vor.u32 %v3462_v17, %v3229_v14  ;;  %v4088_v2 = vsel %vm403_vm0, %v712_v45, 0 }
  0x30   : > { %3201 = vmatmul.msk.bf16.vlgmr.msra.gmra.mxu2 %vm399_vm2, %v308_v56  ;;  %3202 = vmatmul.msk.bf16.vlgmr.msra.gmra.mxu3 %vm399_vm2, %v308_v56  ;;  %v3205_v33 = vld [vmem:[%s5413_s1] sm:$0xf]  ;;  %v3457_v34 = vld [vmem:[%s5413_s1 + $0xc] sm:$0xf0]  ;;  %v3455_v37 = vld [vmem:[%s5413_s1 + $0x4] sm:$0xf]  ;;  %v4061_v48 = vor.u32 %v3460_v31, %v3231_v32 }
  0x31   : > { %580 = vmatpush.bf16.msrb.mxu0 %v3955_v38  ;;  %594 = vmatpush.bf16.msrb.mxu1 %v3957_v39  ;;  %v3207_v42 = vld [vmem:[%s5413_s1 + $0x10] sm:$0xf0]  ;;  %v3213_v53 = vld [vmem:[%s5413_s1 + $0x8] sm:$0xf]  ;;  %v4068_v54 = vor.u32 %v3457_v34, %v3205_v33  ;;  %v3458_v56 = vld [vmem:[%s5413_s1 + $0x14] sm:$0xf0] }
  0x32   : > { %608 = vmatpush.bf16.msrb.mxu2 %v3979_v49  ;;  %622 = vmatpush.bf16.msrb.mxu3 %v3981_v50  ;;  %v4070_v55 = vor.u32 %v3455_v37, %v3207_v42  ;;  %v3456_v61 = vld [vmem:[%s5413_s1 + $0xc] sm:$0xf]  ;;  %v3215_v62 = vld [vmem:[%s5413_s1 + $0x18] sm:$0xf0]  ;;  %5540 = vst [vmem:[#allocation31_spill] sm:$0xff] %v4088_v2  ;;  %v4091_v4 = vsel %vm403_vm0, %v713_v46, 0  ;;  %v4095_v5 = vor.u32 %v3458_v56, %v3213_v53 }
  0x33   : > { %5541 = vst [vmem:[#allocation32_spill] sm:$0xff] %v4091_v4  ;;  %v4097_v9 = vor.u32 %v3456_v61, %v3215_v62  ;;  %v3321_v10 = vld [vmem:[%s5413_s1 + $0x180] sm:$0xf]  ;;  %v3501_v11 = vld [vmem:[%s5413_s1 + $0x18c] sm:$0xf0]  ;;  %vm874_vm6 = vcmask 1041408  }
  0x34   : > { %v3499_v14 = vld [vmem:[%s5413_s1 + $0x184] sm:$0xf]  ;;  %v3323_v17 = vld [vmem:[%s5413_s1 + $0x190] sm:$0xf0]  ;;  %v3329_v31 = vld [vmem:[%s5413_s1 + $0x188] sm:$0xf]  ;;  %v4129_v37 = vor.u32 %v3501_v11, %v3321_v10 }
  0x35   : > { %581 = vmatpush.bf16.msrb.mxu0 %v3995_v59  ;;  %595 = vmatpush.bf16.msrb.mxu1 %v3997_v60  ;;  %v3502_v32 = vld [vmem:[%s5413_s1 + $0x194] sm:$0xf0]  ;;  %v3500_v33 = vld [vmem:[%s5413_s1 + $0x18c] sm:$0xf]  ;;  %v3331_v34 = vld [vmem:[%s5413_s1 + $0x198] sm:$0xf0]  ;;  %v4131_v42 = vor.u32 %v3499_v14, %v3323_v17 }
  0x36   : > { %609 = vmatpush.bf16.msrb.mxu2 %v4023_v12  ;;  %623 = vmatpush.bf16.msrb.mxu3 %v4025_v13  ;;  %5542 = vst [vmem:[#allocation33_spill] sm:$0xff] %v4129_v37  ;;  %v3305_v43 = vld [vmem:[%s5413_s1 + $0x160] sm:$0xf]  ;;  %v3497_v44 = vld [vmem:[%s5413_s1 + $0x16c] sm:$0xf0]  ;;  %v4141_v45 = vor.u32 %v3502_v32, %v3329_v31  ;;  %v4143_v46 = vor.u32 %v3500_v33, %v3331_v34  ;;  %s3096_s23 = sshll.u32 %s218_s22, 3 }
  0x37   : > { %5543 = vst [vmem:[#allocation34_spill] sm:$0xff] %v4131_v42  ;;  %v3495_v53 = vld [vmem:[%s5413_s1 + $0x164] sm:$0xf]  ;;  %v3307_v56 = vld [vmem:[%s5413_s1 + $0x170] sm:$0xf0]  ;;  %v4176_v17 = vor.u32 %v3497_v44, %v3305_v43  ;;  %s220_s6 = scalar_lea.vmem [#allocation3], %s3096_s23 }
  0x38   : > { %5544 = vst [vmem:[#allocation35_spill] sm:$0xff] %v4141_v45  ;;  %v3313_v61 = vld [vmem:[%s5413_s1 + $0x168] sm:$0xf]  ;;  %v3498_v62 = vld [vmem:[%s5413_s1 + $0x174] sm:$0xf0]  ;;  %v4178_v31 = vor.u32 %v3495_v53, %v3307_v56  ;;  %s3030_s7 = sshll.u32 %s220_s6, 4  ;;  %s3031_s7 = int_to_ptr.vmem [resolvable:$true] %s3030_s7 }
  0x39   : > { %582 = vmatpush.bf16.msrb.mxu0 %v4035_v24  ;;  %596 = vmatpush.bf16.msrb.mxu1 %v4037_v30  ;;  %5545 = vst [vmem:[#allocation36_spill] sm:$0xff] %v4143_v46  ;;  %v3496_v10 = vld [vmem:[%s5413_s1 + $0x16c] sm:$0xf]  ;;  %v3315_v11 = vld [vmem:[%s5413_s1 + $0x178] sm:$0xf0]  ;;  %v4191_v34 = vor.u32 %v3498_v62, %v3313_v61  ;;  %s3032_s8 = sshll.u32 %s3028_s30, 4  ;;  %s3033_s8 = int_to_ptr.hbm [resolvable:$true] %s3032_s8 }
  0x3a   : > { %610 = vmatpush.bf16.msrb.mxu2 %v4059_v47  ;;  %624 = vmatpush.bf16.msrb.mxu3 %v4061_v48  ;;  %v3289_v14 = vld [vmem:[%s5413_s1 + $0x140] sm:$0xf]  ;;  %5546 = vst [vmem:[#allocation37_spill] sm:$0xff] %v4176_v17  ;;  %v3493_v32 = vld [vmem:[%s5413_s1 + $0x14c] sm:$0xf0]  ;;  %v4193_v43 = vor.u32 %v3496_v10, %v3315_v11  ;;  %s3601_s9 = sshra.s32 %s3033_s8, 4  ;;  %s3602_s9 = int_to_ptr.hbm [resolvable:$true] %s3601_s9 }
  0x3b   : > { %5547 = vst [vmem:[#allocation38_spill] sm:$0xff] %v4178_v31  ;;  %v3291_v33 = vld [vmem:[%s5413_s1 + $0x150] sm:$0xf0]  ;;  %v3297_v44 = vld [vmem:[%s5413_s1 + $0x148] sm:$0xf]  ;;  %v4211_v10 = vor.u32 %v3493_v32, %v3289_v14  ;;  %s3603_s10 = scalar_lea.hbm %s3602_s9, 8  ;;  %p3608_p0 = scmp.lt.s32.totalorder %s3602_s9, %s5417_s5 }
  0x3c   : > { %5548 = vst [vmem:[#allocation39_spill] sm:$0xff] %v4191_v34  ;;  %v3494_v53 = vld [vmem:[%s5413_s1 + $0x154] sm:$0xf0]  ;;  %v3492_v56 = vld [vmem:[%s5413_s1 + $0x14c] sm:$0xf]  ;;  %p3604_p11 = scmp.ne.s32.totalorder %s3602_s9, %s3603_s10  ;;  %s3607_s13 = scalar_lea.hbm %s5417_s5, 16 }
  0x3d   : > { %583 = vmatpush.bf16.msrb.mxu0 %v4068_v54  ;;  %597 = vmatpush.bf16.msrb.mxu1 %v4070_v55  ;;  %5549 = vst [vmem:[#allocation40_spill] sm:$0xff] %v4193_v43  ;;  %v3519_v61 = vld [vmem:[%s3899_s17] sm:$0xf0]  ;;  %v3520_v62 = vld [vmem:[%s3899_s17] sm:$0xe]  ;;  %p3609_p1 = scmp.lt.s32.totalorder %s3607_s13, %s3603_s10 }
  0x3e   : > { %611 = vmatpush.bf16.msrb.mxu2 %v4095_v5  ;;  %625 = vmatpush.bf16.msrb.mxu3 %v4097_v9  ;;  %5550 = vst [vmem:[#allocation41_spill] sm:$0xff] %v4211_v10  ;;  %v3487_v32 = vld [vmem:[%s5413_s1 + $0x124] sm:$0xf]  ;;  %p3605_p12 = pnand %p3604_p11, %p3718_p5 }
  0x3f   : > { %p3610_p2 = por %p3609_p1, %p3608_p0 }
  0x40   : > { %3267 = vmatmul.msk.bf16.vlgmr.msrb.gmra.mxu0 %vm399_vm2, %v3908_v8  ;;  %3268 = vmatmul.msk.bf16.vlgmr.msrb.gmra.mxu1 %vm399_vm2, %v3908_v8  ;;  %p3606_p13 = pneg %p3605_p12 }
  0x41   : > { %748 = vmatpush.bf16.msra.mxu0 %v4082_v63  ;;  %762 = vmatpush.bf16.msra.mxu1 %v4085_v1 }
  0x42   : > { %776 = vmatpush.bf16.msra.mxu2 %v4088_v2  ;;  %790 = vmatpush.bf16.msra.mxu3 %v4091_v4  ;;  %p3611_p3 = pnand %p3610_p2, %p3606_p13 }
  0x43   : > { %3269 = vmatmul.msk.bf16.vlgmr.msrb.gmra.mxu2 %vm399_vm2, %v3908_v8  ;;  %3270 = vmatmul.msk.bf16.vlgmr.msrb.gmra.mxu3 %vm399_vm2, %v3908_v8  ;;  %v3491_v8 = vld [vmem:[%s5413_s1 + $0x144] sm:$0xf] }
  0x44   : > { %v4213_v11 = vor.u32 %v3491_v8, %v3291_v33  ;;  %v3275_v8 = vld [vmem:[%s5413_s1 + $0x130] sm:$0xf0]  ;;  %v3281_v33 = vld [vmem:[%s5413_s1 + $0x128] sm:$0xf] }
  0x45   : > { %749 = vmatpush.bf16.msra.mxu0 %v4129_v37  ;;  %763 = vmatpush.bf16.msra.mxu1 %v4131_v42  ;;  %v3489_v42 = vld [vmem:[%s5413_s1 + $0x12c] sm:$0xf0] }
  0x46   : > { %777 = vmatpush.bf16.msra.mxu2 %v4141_v45  ;;  %791 = vmatpush.bf16.msra.mxu3 %v4143_v46  ;;  %v3299_v46 = vld [vmem:[%s5413_s1 + $0x158] sm:$0xf0]  ;;  %5551 = vst [vmem:[#allocation42_spill] sm:$0xff] %v4213_v11  ;;  %v3273_v45 = vld [vmem:[%s5413_s1 + $0x120] sm:$0xf] }
  0x47   : > { %v4225_v14 = vor.u32 %v3492_v56, %v3299_v46  ;;  %v3488_v46 = vld [vmem:[%s5413_s1 + $0x12c] sm:$0xf]  ;;  %v4247_v56 = vor.u32 %v3489_v42, %v3273_v45  ;;  %v3341_v42 = vld [vmem:[%s3899_s17 + $0x14] sm:$0x1] }
  0x49   : > { %750 = vmatpush.bf16.msra.mxu0 %v4176_v17  ;;  %764 = vmatpush.bf16.msra.mxu1 %v4178_v31  ;;  %v4223_v17 = vor.u32 %v3494_v53, %v3297_v44  ;;  %5553 = vst [vmem:[#allocation44_spill] sm:$0xff] %v4225_v14  ;;  %v3490_v44 = vld [vmem:[%s5413_s1 + $0x134] sm:$0xf0]  ;;  %v3283_v53 = vld [vmem:[%s5413_s1 + $0x138] sm:$0xf0] }
  0x4a   : > { %778 = vmatpush.bf16.msra.mxu2 %v4191_v34  ;;  %792 = vmatpush.bf16.msra.mxu3 %v4193_v43  ;;  %v3521_v34 = vor.u32 %v3520_v62, %v3519_v61  ;;  %5554 = vst [vmem:[#allocation45_spill] sm:$0xff] %v4247_v56  ;;  %v4249_v61 = vor.u32 %v3487_v32, %v3275_v8  ;;  %v4252_v62 = vld [vmem:[%s3899_s17 + $0xc] sm:$0xff]  }
  0x4b   : > { %5552 = vst [vmem:[#allocation43_spill] sm:$0xff] %v4223_v17  ;;  %v4255_v43 = vld [vmem:[%s3899_s17 + $0xc] sm:$0xf0]  ;;  %v4259_v31 = vor.u32 %v3490_v44, %v3281_v33  ;;  %v4261_v37 = vor.u32 %v3488_v46, %v3283_v53  ;;  %v5557_v53 = vld [vmem:[#allocation32_spill] sm:$0xff] }
  0x4c   : > { %5555 = vst [vmem:[#allocation46_spill] sm:$0xff] %v4249_v61  ;;  %v637_v4 = vrot.slane %v3521_v34, 1  ;;  %v898_v34 = vshll.u32 %v4252_v62, 16 }
  0x4d   : > { %751 = vmatpush.bf16.msra.mxu0 %v4211_v10  ;;  %765 = vmatpush.bf16.msra.mxu1 %v4213_v11  ;;  %5556 = vst [vmem:[#allocation47_spill] sm:$0xff] %v4261_v37  ;;  %v638_v10 = vrot.slane %v3939_v29, 1  ;;  %v892_v29 = vunpack.c.l.b16 %v3341_v42  ;;  %v3576_v42 = vld [vmem:[%s3899_s17 + $0xc] sm:$0xe] }
  0x4e   : > { %779 = vmatpush.bf16.msra.mxu2 %v4223_v17  ;;  %793 = vmatpush.bf16.msra.mxu3 %v4225_v14  ;;  %v900_v32 = vrot.slane %v898_v34, 1  ;;  %v5560_v34 = vld [vmem:[#allocation35_spill] sm:$0xff] }
  0x4f   : > { %v639_v45 = vsel %vm636_vm3, %v637_v4, %v638_v10  ;;  %v4282_v4 = vpack.c.b16 %v892_v29, %v892_v29  ;;  %v896_v10 = vshrl.u32 %v4252_v62, 16  ;;  %v5559_v29 = vld [vmem:[#allocation34_spill] sm:$0xff] }
  0x51   : > { %752 = vmatpush.bf16.msra.mxu0 %v4247_v56  ;;  %766 = vmatpush.bf16.msra.mxu1 %v4249_v61  ;;  %v903_v8 = vshll.u32 %v4282_v4, 16  ;;  %v901_v33 = vor.u32 %v900_v32, %v896_v10  ;;  %v5561_v10 = vld [vmem:[#allocation36_spill] sm:$0xff]  ;;  %v5562_v32 = vld [vmem:[#allocation37_spill] sm:$0xff] }
  0x52   : > { %780 = vmatpush.bf16.msra.mxu2 %v4259_v31  ;;  %794 = vmatpush.bf16.msra.mxu3 %v4261_v37 }
  0x53   : > { %v905_v44 = vrot.slane %v903_v8, 1  ;;  %v5563_v8 = vld [vmem:[#allocation38_spill] sm:$0xff] }
  0x54   : > { %3335 = vmatmul.msk.bf16.vlgmr.msra.gmra.mxu0 %vm399_vm2, %v639_v45  ;;  %3336 = vmatmul.msk.bf16.vlgmr.msra.gmra.mxu1 %vm399_vm2, %v639_v45 }
  0x55   : > { %913 = vmatpush.bf16.msrb.mxu0 %v3759_v18  ;;  %927 = vmatpush.bf16.msrb.mxu1 %v3762_v19  ;;  %v906_v46 = vsel %vm296_vm1, %v901_v33, %v905_v44  ;;  %v5564_v33 = vld [vmem:[#allocation39_spill] sm:$0xff]  ;;  %v5565_v44 = vld [vmem:[#allocation40_spill] sm:$0xff] }
  0x56   : > { %941 = vmatpush.bf16.msrb.mxu2 %v3765_v20  ;;  %955 = vmatpush.bf16.msrb.mxu3 %v3768_v21 }
  0x57   : > { %3337 = vmatmul.msk.bf16.vlgmr.msra.gmra.mxu2 %vm399_vm2, %v639_v45  ;;  %3338 = vmatmul.msk.bf16.vlgmr.msra.gmra.mxu3 %vm399_vm2, %v639_v45  ;;  %v5558_v45 = vld [vmem:[#allocation33_spill] sm:$0xff] }
  0x59   : > { %914 = vmatpush.bf16.msrb.mxu0 %v3772_v22  ;;  %928 = vmatpush.bf16.msrb.mxu1 %v3774_v23 }
  0x5a   : > { %942 = vmatpush.bf16.msrb.mxu2 %v3784_v26  ;;  %956 = vmatpush.bf16.msrb.mxu3 %v3786_v27 }
  0x5d   : > { %915 = vmatpush.bf16.msrb.mxu0 %v3815_v35  ;;  %929 = vmatpush.bf16.msrb.mxu1 %v3817_v36 }
  0x5e   : > { %943 = vmatpush.bf16.msrb.mxu2 %v3830_v40  ;;  %957 = vmatpush.bf16.msrb.mxu3 %v3832_v41 }
  0x61   : > { %916 = vmatpush.bf16.msrb.mxu0 %v3858_v51  ;;  %930 = vmatpush.bf16.msrb.mxu1 %v3860_v52 }
  0x62   : > { %944 = vmatpush.bf16.msrb.mxu2 %v3871_v57  ;;  %958 = vmatpush.bf16.msrb.mxu3 %v3873_v58 }
  0x65   : > { %917 = vmatpush.bf16.msrb.mxu0 %v3890_v0  ;;  %931 = vmatpush.bf16.msrb.mxu1 %v3894_v3 }
  0x66   : > { %945 = vmatpush.bf16.msrb.mxu2 %v3903_v6  ;;  %959 = vmatpush.bf16.msrb.mxu3 %v3905_v7 }
  0x68   : > { %3342 = vmatmul.msk.bf16.vlgmr.msrb.gmra.mxu0 %vm399_vm2, %v906_v46  ;;  %3343 = vmatmul.msk.bf16.vlgmr.msrb.gmra.mxu1 %vm399_vm2, %v906_v46 }
  0x69   : > { %971 = vmatpush.bf16.msra.mxu0 %v3920_v15  ;;  %985 = vmatpush.bf16.msra.mxu1 %v3923_v16 }
  0x6a   : > { %999 = vmatpush.bf16.msra.mxu2 %v3934_v25  ;;  %1013 = vmatpush.bf16.msra.mxu3 %v3937_v28 }
  0x6b   : > { %3344 = vmatmul.msk.bf16.vlgmr.msrb.gmra.mxu2 %vm399_vm2, %v906_v46  ;;  %3345 = vmatmul.msk.bf16.vlgmr.msrb.gmra.mxu3 %vm399_vm2, %v906_v46  ;;  %v3577_v46 = vor.u32 %v3576_v42, %v4255_v43  ;;  %v3522_v42 = vld [vmem:[%s3899_s17 + $0x18] sm:$0xff]  }
  0x6d   : > { %972 = vmatpush.bf16.msra.mxu0 %v3955_v38  ;;  %986 = vmatpush.bf16.msra.mxu1 %v3957_v39 }
  0x6e   : > { %1000 = vmatpush.bf16.msra.mxu2 %v3979_v49  ;;  %1014 = vmatpush.bf16.msra.mxu3 %v3981_v50 }
  0x71   : > { %973 = vmatpush.bf16.msra.mxu0 %v3995_v59  ;;  %987 = vmatpush.bf16.msra.mxu1 %v3997_v60 }
  0x72   : > { %1001 = vmatpush.bf16.msra.mxu2 %v4023_v12  ;;  %1015 = vmatpush.bf16.msra.mxu3 %v4025_v13 }
  0x75   : > { %974 = vmatpush.bf16.msra.mxu0 %v4035_v24  ;;  %988 = vmatpush.bf16.msra.mxu1 %v4037_v30 }
  0x76   : > { %1002 = vmatpush.bf16.msra.mxu2 %v4059_v47  ;;  %1016 = vmatpush.bf16.msra.mxu3 %v4061_v48 }
  0x79   : > { %975 = vmatpush.bf16.msra.mxu0 %v4068_v54  ;;  %989 = vmatpush.bf16.msra.mxu1 %v4070_v55 }
  0x7a   : > { %1003 = vmatpush.bf16.msra.mxu2 %v4095_v5  ;;  %1017 = vmatpush.bf16.msra.mxu3 %v4097_v9 }
  0x7c   : > { %3346 = vmatmul.msk.bf16.vlgmr.msra.gmra.mxu0 %vm399_vm2, %v4252_v62  ;;  %3347 = vmatmul.msk.bf16.vlgmr.msra.gmra.mxu1 %vm399_vm2, %v4252_v62 }
  0x7d   : > { %1037 = vmatpush.bf16.msrb.mxu0 %v4082_v63  ;;  %1051 = vmatpush.bf16.msrb.mxu1 %v4085_v1 }
  0x7e   : > { %1065 = vmatpush.bf16.msrb.mxu2 %v4088_v2  ;;  %1079 = vmatpush.bf16.msrb.mxu3 %v5557_v53 }
  0x7f   : > { %3348 = vmatmul.msk.bf16.vlgmr.msra.gmra.mxu2 %vm399_vm2, %v4252_v62  ;;  %3349 = vmatmul.msk.bf16.vlgmr.msra.gmra.mxu3 %vm399_vm2, %v4252_v62  ;;  %v5566_v62 = vld [vmem:[#allocation41_spill] sm:$0xff] }
  0x81   : > { %1038 = vmatpush.bf16.msrb.mxu0 %v5558_v45  ;;  %1052 = vmatpush.bf16.msrb.mxu1 %v5559_v29 }
  0x82   : > { %1066 = vmatpush.bf16.msrb.mxu2 %v5560_v34  ;;  %1080 = vmatpush.bf16.msrb.mxu3 %v5561_v10  ;;  %v1028_v10 = vrot.slane %v3577_v46, 1 }
  0x85   : > { %1039 = vmatpush.bf16.msrb.mxu0 %v5562_v32  ;;  %1053 = vmatpush.bf16.msrb.mxu1 %v5563_v8  ;;  %v1029_v32 = vrot.slane %v4282_v4, 1 }
  0x86   : > { %1067 = vmatpush.bf16.msrb.mxu2 %v5564_v33  ;;  %1081 = vmatpush.bf16.msrb.mxu3 %v5565_v44  ;;  %v3357_v33 = vld [vmem:[%s3899_s17 + $0x20] sm:$0x1] }
  0x87   : > { %v1030_v43 = vsel %vm636_vm3, %v1028_v10, %v1029_v32  ;;  %v1175_v4 = vunpack.c.l.b16 %v3357_v33  ;;  %v1181_v32 = vshll.u32 %v3522_v42, 16  ;;  %v1179_v33 = vshrl.u32 %v3522_v42, 16 }
  0x89   : > { %1040 = vmatpush.bf16.msrb.mxu0 %v5566_v62  ;;  %1054 = vmatpush.bf16.msrb.mxu1 %v4213_v11  ;;  %v4370_v10 = vpack.c.b16 %v1175_v4, %v1175_v4  ;;  %v1183_v46 = vrot.slane %v1181_v32, 1 }
  0x8a   : > { %1068 = vmatpush.bf16.msrb.mxu2 %v4223_v17  ;;  %1082 = vmatpush.bf16.msrb.mxu3 %v4225_v14 }
  0x8b   : > { %v1184_v4 = vor.u32 %v1183_v46, %v1179_v33  ;;  %v5567_v46 = vld [vmem:[#allocation36_spill] sm:$0xff] }
  0x8d   : > { %1041 = vmatpush.bf16.msrb.mxu0 %v4247_v56  ;;  %1055 = vmatpush.bf16.msrb.mxu1 %v4249_v61 }
  0x8e   : > { %1069 = vmatpush.bf16.msrb.mxu2 %v4259_v31  ;;  %1083 = vmatpush.bf16.msrb.mxu3 %v4261_v37 }
  0x90   : > { %3351 = vmatmul.msk.bf16.vlgmr.msrb.gmra.mxu0 %vm399_vm2, %v1030_v43  ;;  %3352 = vmatmul.msk.bf16.vlgmr.msrb.gmra.mxu1 %vm399_vm2, %v1030_v43 }
  0x91   : > { %1196 = vmatpush.bf16.msra.mxu0 %v3759_v18  ;;  %1210 = vmatpush.bf16.msra.mxu1 %v3762_v19 }
  0x92   : > { %1224 = vmatpush.bf16.msra.mxu2 %v3765_v20  ;;  %1238 = vmatpush.bf16.msra.mxu3 %v3768_v21 }
  0x93   : > { %3353 = vmatmul.msk.bf16.vlgmr.msrb.gmra.mxu2 %vm399_vm2, %v1030_v43  ;;  %3354 = vmatmul.msk.bf16.vlgmr.msrb.gmra.mxu3 %vm399_vm2, %v1030_v43  ;;  %v1186_v43 = vshll.u32 %v4370_v10, 16 }
  0x95   : > { %1197 = vmatpush.bf16.msra.mxu0 %v3772_v22  ;;  %1211 = vmatpush.bf16.msra.mxu1 %v3774_v23 }
  0x96   : > { %1225 = vmatpush.bf16.msra.mxu2 %v3784_v26  ;;  %1239 = vmatpush.bf16.msra.mxu3 %v3786_v27 }
  0x99   : > { %1198 = vmatpush.bf16.msra.mxu0 %v3815_v35  ;;  %1212 = vmatpush.bf16.msra.mxu1 %v3817_v36  ;;  %v1188_v35 = vrot.slane %v1186_v43, 1  ;;  %v3523_v43 = vld [vmem:[%s3899_s17 + $0x18] sm:$0xf0] }
  0x9a   : > { %1226 = vmatpush.bf16.msra.mxu2 %v3830_v40  ;;  %1240 = vmatpush.bf16.msra.mxu3 %v3832_v41 }
  0x9b   : > { %v1189_v32 = vsel %vm296_vm1, %v1184_v4, %v1188_v35  ;;  %v3524_v4 = vld [vmem:[%s3899_s17 + $0x18] sm:$0xe] }
  0x9d   : > { %1199 = vmatpush.bf16.msra.mxu0 %v3858_v51  ;;  %1213 = vmatpush.bf16.msra.mxu1 %v3860_v52 }
  0x9e   : > { %1227 = vmatpush.bf16.msra.mxu2 %v3871_v57  ;;  %1241 = vmatpush.bf16.msra.mxu3 %v3873_v58 }
  0xa1   : > { %1200 = vmatpush.bf16.msra.mxu0 %v3890_v0  ;;  %1214 = vmatpush.bf16.msra.mxu1 %v3894_v3 }
  0xa2   : > { %1228 = vmatpush.bf16.msra.mxu2 %v3903_v6  ;;  %1242 = vmatpush.bf16.msra.mxu3 %v3905_v7 }
  0xa4   : > { %3358 = vmatmul.msk.bf16.vlgmr.msra.gmra.mxu0 %vm399_vm2, %v1189_v32  ;;  %3359 = vmatmul.msk.bf16.vlgmr.msra.gmra.mxu1 %vm399_vm2, %v1189_v32 }
  0xa5   : > { %1254 = vmatpush.bf16.msrb.mxu0 %v3920_v15  ;;  %1268 = vmatpush.bf16.msrb.mxu1 %v3923_v16 }
  0xa6   : > { %1282 = vmatpush.bf16.msrb.mxu2 %v3934_v25  ;;  %1296 = vmatpush.bf16.msrb.mxu3 %v3937_v28 }
  0xa7   : > { %3360 = vmatmul.msk.bf16.vlgmr.msra.gmra.mxu2 %vm399_vm2, %v1189_v32  ;;  %3361 = vmatmul.msk.bf16.vlgmr.msra.gmra.mxu3 %vm399_vm2, %v1189_v32  ;;  %v5568_v32 = vld [vmem:[#allocation37_spill] sm:$0xff] }
  0xa9   : > { %1255 = vmatpush.bf16.msrb.mxu0 %v3955_v38  ;;  %1269 = vmatpush.bf16.msrb.mxu1 %v3957_v39 }
  0xaa   : > { %1283 = vmatpush.bf16.msrb.mxu2 %v3979_v49  ;;  %1297 = vmatpush.bf16.msrb.mxu3 %v3981_v50 }
  0xac   : > { %v4418_v35 = vpop.f32.mrf.mxu0  ;;  %v4420_v33 = vpop.f32.mrf.mxu1 }
  0xad   : > { %1256 = vmatpush.bf16.msrb.mxu0 %v3995_v59  ;;  %1270 = vmatpush.bf16.msrb.mxu1 %v3997_v60 }
  0xae   : > { %1284 = vmatpush.bf16.msrb.mxu2 %v4023_v12  ;;  %1298 = vmatpush.bf16.msrb.mxu3 %v4025_v13 }
  0xb1   : > { %1257 = vmatpush.bf16.msrb.mxu0 %v4035_v24  ;;  %1271 = vmatpush.bf16.msrb.mxu1 %v4037_v30 }
  0xb2   : > { %1285 = vmatpush.bf16.msrb.mxu2 %v4059_v47  ;;  %1299 = vmatpush.bf16.msrb.mxu3 %v4061_v48 }
  0xb5   : > { %1258 = vmatpush.bf16.msrb.mxu0 %v4068_v54  ;;  %1272 = vmatpush.bf16.msrb.mxu1 %v4070_v55 }
  0xb6   : > { %1286 = vmatpush.bf16.msrb.mxu2 %v4095_v5  ;;  %1300 = vmatpush.bf16.msrb.mxu3 %v4097_v9 }
  0xb8   : > { %3362 = vmatmul.msk.bf16.vlgmr.msrb.gmra.mxu0 %vm399_vm2, %v3522_v42  ;;  %3363 = vmatmul.msk.bf16.vlgmr.msrb.gmra.mxu1 %vm399_vm2, %v3522_v42 }
  0xb9   : > { %1320 = vmatpush.bf16.msra.mxu0 %v4082_v63  ;;  %1334 = vmatpush.bf16.msra.mxu1 %v4085_v1 }
  0xba   : > { %1348 = vmatpush.bf16.msra.mxu2 %v4088_v2  ;;  %1362 = vmatpush.bf16.msra.mxu3 %v5557_v53  ;;  %v4432_v53 = vpop.f32.mrf.mxu2  ;;  %v4438_v2 = vpop.f32.mrf.mxu1 }
  0xbb   : > { %3364 = vmatmul.msk.bf16.vlgmr.msrb.gmra.mxu2 %vm399_vm2, %v3522_v42  ;;  %3365 = vmatmul.msk.bf16.vlgmr.msrb.gmra.mxu3 %vm399_vm2, %v3522_v42  ;;  %v5569_v42 = vld [vmem:[#allocation39_spill] sm:$0xff] }
  0xbd   : > { %1321 = vmatpush.bf16.msra.mxu0 %v5558_v45  ;;  %1335 = vmatpush.bf16.msra.mxu1 %v5559_v29  ;;  %v3525_v45 = vor.u32 %v3524_v4, %v3523_v43  ;;  %v4434_v29 = vpop.f32.mrf.mxu3  ;;  %v1312_v4 = vrot.slane %v4370_v10, 1 }
  0xbe   : > { %1349 = vmatpush.bf16.msra.mxu2 %v5560_v34  ;;  %1363 = vmatpush.bf16.msra.mxu3 %v5567_v46  ;;  %v4436_v34 = vpop.f32.mrf.mxu0 }
  0xbf   : > { %v1311_v43 = vrot.slane %v3525_v45, 1 }
  0xc1   : > { %1322 = vmatpush.bf16.msra.mxu0 %v5568_v32  ;;  %1336 = vmatpush.bf16.msra.mxu1 %v5563_v8  ;;  %v4443_v32 = vld [vmem:[%s3899_s17 + $0x24] sm:$0xff]  }
  0xc2   : > { %1350 = vmatpush.bf16.msra.mxu2 %v5569_v42  ;;  %1364 = vmatpush.bf16.msra.mxu3 %v5565_v44  ;;  %v4446_v8 = vld [vmem:[%s3899_s17 + $0x24] sm:$0xf0]  ;;  %v3373_v44 = vld [vmem:[%s3899_s17 + $0x2c] sm:$0x1] }
  0xc5   : > { %1323 = vmatpush.bf16.msra.mxu0 %v5566_v62  ;;  %1337 = vmatpush.bf16.msra.mxu1 %v4213_v11  ;;  %v1313_v11 = vsel %vm636_vm3, %v1311_v43, %v1312_v4  ;;  %v4461_v45 = vpop.f32.mrf.mxu3  ;;  %v5570_v4 = vld [vmem:[#allocation14_spill] sm:$0xff] }
  0xc6   : > { %1351 = vmatpush.bf16.msra.mxu2 %v4223_v17  ;;  %1365 = vmatpush.bf16.msra.mxu3 %v4225_v14  ;;  %v4459_v17 = vpop.f32.mrf.mxu2  ;;  %v585_v10 = vpop.f32.mrf.mxu0 }
  0xc9   : > { %1324 = vmatpush.bf16.msra.mxu0 %v4247_v56  ;;  %1338 = vmatpush.bf16.msra.mxu1 %v4249_v61  ;;  %v599_v61 = vpop.f32.mrf.mxu1  ;;  %v1458_v56 = vunpack.c.l.b16 %v3373_v44  ;;  %v1464_v44 = vshll.u32 %v4443_v32, 16 }
  0xca   : > { %1352 = vmatpush.bf16.msra.mxu2 %v4259_v31  ;;  %1366 = vmatpush.bf16.msra.mxu3 %v4261_v37 }
  0xcb   : > { %v4473_v43 = vpack.c.b16 %v1458_v56, %v1458_v56 }
  0xcc   : > { %3367 = vmatmul.msk.bf16.vlgmr.msra.gmra.mxu0 %vm399_vm2, %v1313_v11  ;;  %3368 = vmatmul.msk.bf16.vlgmr.msra.gmra.mxu1 %vm399_vm2, %v1313_v11 }
  0xcd   : > { %1479 = vmatpush.bf16.msrb.mxu0 %v3759_v18  ;;  %1493 = vmatpush.bf16.msrb.mxu1 %v3762_v19  ;;  %v1469_v56 = vshll.u32 %v4473_v43, 16 }
  0xce   : > { %1507 = vmatpush.bf16.msrb.mxu2 %v3765_v20  ;;  %1521 = vmatpush.bf16.msrb.mxu3 %v3768_v21  ;;  %v613_v21 = vpop.f32.mrf.mxu2  ;;  %v627_v20 = vpop.f32.mrf.mxu3 }
  0xcf   : > { %3369 = vmatmul.msk.bf16.vlgmr.msra.gmra.mxu2 %vm399_vm2, %v1313_v11  ;;  %3370 = vmatmul.msk.bf16.vlgmr.msra.gmra.mxu3 %vm399_vm2, %v1313_v11  ;;  %v587_v11 = vpop.f32.mrf.mxu0 }
  0xd1   : > { %1480 = vmatpush.bf16.msrb.mxu0 %v3772_v22  ;;  %1494 = vmatpush.bf16.msrb.mxu1 %v3774_v23  ;;  %v601_v23 = vpop.f32.mrf.mxu1  ;;  %v1466_v22 = vrot.slane %v1464_v44, 1 }
  0xd2   : > { %1508 = vmatpush.bf16.msrb.mxu2 %v3784_v26  ;;  %1522 = vmatpush.bf16.msrb.mxu3 %v3786_v27  ;;  %v1462_v26 = vshrl.u32 %v4443_v32, 16 }
  0xd5   : > { %1481 = vmatpush.bf16.msrb.mxu0 %v5570_v4  ;;  %1495 = vmatpush.bf16.msrb.mxu1 %v3817_v36  ;;  %v1467_v36 = vor.u32 %v1466_v22, %v1462_v26  ;;  %v1471_v4 = vrot.slane %v1469_v56, 1  ;;  %v600_v56 = vadd.f32 %v599_v61, %v4420_v33 }
  0xd6   : > { %1509 = vmatpush.bf16.msrb.mxu2 %v3830_v40  ;;  %1523 = vmatpush.bf16.msrb.mxu3 %v3832_v41  ;;  %v615_v41 = vpop.f32.mrf.mxu2  ;;  %v629_v40 = vpop.f32.mrf.mxu3 }
  0xd7   : > { %v1472_v44 = vsel %vm296_vm1, %v1467_v36, %v1471_v4  ;;  %v754_v22 = vpop.f32.mrf.mxu0  ;;  %v4502_v36 = vld [vmem:[%s5414_s2] sm:$0xf]  ;;  %v586_v4 = vadd.f32 %v585_v10, %v4418_v35  ;;  %v602_v35 = vadd.f32 %v601_v23, %v4438_v2  ;;  %v614_v10 = vadd.f32 %v613_v21, %v4432_v53 }
  0xd8   : > { %v628_v23 = vadd.f32 %v627_v20, %v4434_v29  ;;  %v616_v29 = vadd.f32 %v615_v41, %v4459_v17 }
  0xd9   : > { %1482 = vmatpush.bf16.msrb.mxu0 %v3858_v51  ;;  %1496 = vmatpush.bf16.msrb.mxu1 %v3860_v52  ;;  %v768_v26 = vpop.f32.mrf.mxu1 }
  0xda   : > { %1510 = vmatpush.bf16.msrb.mxu2 %v3871_v57  ;;  %1524 = vmatpush.bf16.msrb.mxu3 %v3873_v58 }
  0xdd   : > { %1483 = vmatpush.bf16.msrb.mxu0 %v3890_v0  ;;  %1497 = vmatpush.bf16.msrb.mxu1 %v3894_v3 }
  0xde   : > { %1511 = vmatpush.bf16.msrb.mxu2 %v3903_v6  ;;  %1525 = vmatpush.bf16.msrb.mxu3 %v3905_v7  ;;  %v782_v61 = vpop.f32.mrf.mxu2  ;;  %v796_v33 = vpop.f32.mrf.mxu3 }
  0xdf   : > { %v803_v2 = vadd.f32 %v782_v61, %v614_v10 }
  0xe0   : > { %3374 = vmatmul.msk.bf16.vlgmr.msrb.gmra.mxu0 %vm399_vm2, %v1472_v44  ;;  %3375 = vmatmul.msk.bf16.vlgmr.msrb.gmra.mxu1 %vm399_vm2, %v1472_v44 }
  0xe1   : > { %1537 = vmatpush.bf16.msra.mxu0 %v3920_v15  ;;  %1551 = vmatpush.bf16.msra.mxu1 %v3923_v16  ;;  %v812_v16 = vperm.slane %v4502_v36, 1  ;;  %v588_v15 = vadd.f32 %v587_v11, %v4436_v34  ;;  %v813_v11 = vperm.slane %v4502_v36, 2 }
  0xe2   : > { %1565 = vmatpush.bf16.msra.mxu2 %v3934_v25  ;;  %1579 = vmatpush.bf16.msra.mxu3 %v3937_v28  ;;  %v801_v28 = vadd.f32 %v754_v22, %v586_v4  ;;  %v802_v25 = vadd.f32 %v768_v26, %v600_v56  ;;  %v756_v22 = vpop.f32.mrf.mxu0  ;;  %v770_v26 = vpop.f32.mrf.mxu1 }
  0xe3   : > { %3376 = vmatmul.msk.bf16.vlgmr.msrb.gmra.mxu2 %vm399_vm2, %v1472_v44  ;;  %3377 = vmatmul.msk.bf16.vlgmr.msrb.gmra.mxu3 %vm399_vm2, %v1472_v44  ;;  %v811_v44 = vperm.slane %v4502_v36, 0  ;;  %v806_v34 = vadd.f32 %v770_v26, %v602_v35  ;;  %v821_v61 = vadd.f32 %v813_v11, %v803_v2 }
  0xe4   : > { %v820_v56 = vadd.f32 %v812_v16, %v802_v25  ;;  %v814_v25 = vperm.slane %v4502_v36, 3 }
  0xe5   : > { %1538 = vmatpush.bf16.msra.mxu0 %v3955_v38  ;;  %1552 = vmatpush.bf16.msra.mxu1 %v3957_v39  ;;  %v819_v4 = vadd.f32 %v811_v44, %v801_v28  ;;  %v824_v53 = vadd.f32 %v812_v16, %v806_v34  ;;  %v829_v2 = vmax.f32 %v821_v61, 0.0 }
  0xe6   : > { %1566 = vmatpush.bf16.msra.mxu2 %v3979_v49  ;;  %1580 = vmatpush.bf16.msra.mxu3 %v3981_v50  ;;  %v805_v50 = vadd.f32 %v756_v22, %v588_v15  ;;  %v828_v28 = vmax.f32 %v820_v56, 0.0  ;;  %v630_v22 = vadd.f32 %v629_v40, %v4461_v45  ;;  %v784_v16 = vpop.f32.mrf.mxu2  ;;  %v5571_v40 = vld [vmem:[#allocation31_spill] sm:$0xff]  ;;  %v5572_v45 = vld [vmem:[#allocation32_spill] sm:$0xff] }
  0xe7   : > { %v827_v15 = vmax.f32 %v819_v4, 0.0  ;;  %v832_v20 = vmax.f32 %v824_v53, 0.0  ;;  %v807_v36 = vadd.f32 %v784_v16, %v616_v29  ;;  %v5575_v29 = vld [vmem:[#allocation35_spill] sm:$0xff] }
  0xe8   : > { %v823_v21 = vadd.f32 %v811_v44, %v805_v50  ;;  %v798_v50 = vpop.f32.mrf.mxu3 }
  0xe9   : > { %1539 = vmatpush.bf16.msra.mxu0 %v3995_v59  ;;  %1553 = vmatpush.bf16.msra.mxu1 %v3997_v60  ;;  %v842_v26 = vadd.f32 %v832_v20, %v828_v28  ;;  %v825_v4 = vadd.f32 %v813_v11, %v807_v36  ;;  %v5574_v20 = vld [vmem:[#allocation34_spill] sm:$0xff] }
  0xea   : > { %1567 = vmatpush.bf16.msra.mxu2 %v4023_v12  ;;  %1581 = vmatpush.bf16.msra.mxu3 %v4025_v13  ;;  %v804_v13 = vadd.f32 %v796_v33, %v628_v23  ;;  %v831_v35 = vmax.f32 %v823_v21, 0.0  ;;  %v808_v33 = vadd.f32 %v798_v50, %v630_v22  ;;  %v4536_v34 = vpop.f32.mrf.mxu0  ;;  %v3579_v23 = vld [vmem:[%s3899_s17 + $0x24] sm:$0xe] }
  0xeb   : > { %v843_v17 = vrot.slane %v842_v26, 4  ;;  %v833_v11 = vmax.f32 %v825_v4, 0.0 }
  0xec   : > { %v835_v10 = vadd.f32 %v831_v35, %v827_v15  ;;  %v822_v44 = vadd.f32 %v814_v25, %v804_v13  ;;  %v826_v56 = vadd.f32 %v814_v25, %v808_v33  ;;  %v4538_v13 = vpop.f32.mrf.mxu1  ;;  %v5573_v35 = vld [vmem:[#allocation33_spill] sm:$0xff] }
  0xed   : > { %1540 = vmatpush.bf16.msra.mxu0 %v4035_v24  ;;  %1554 = vmatpush.bf16.msra.mxu1 %v4037_v30  ;;  %v844_v21 = vadd.f32 %v843_v17, %v842_v26  ;;  %v849_v22 = vadd.f32 %v833_v11, %v829_v2  ;;  %v5578_v2 = vld [vmem:[#allocation40_spill] sm:$0xff] }
  0xee   : > { %1568 = vmatpush.bf16.msra.mxu2 %v4059_v47  ;;  %1582 = vmatpush.bf16.msra.mxu3 %v4061_v48  ;;  %v836_v41 = vrot.slane %v835_v10, 4  ;;  %v830_v53 = vmax.f32 %v822_v44, 0.0  ;;  %v834_v25 = vmax.f32 %v826_v56, 0.0  ;;  %v5576_v44 = vld [vmem:[#allocation37_spill] sm:$0xff]  ;;  %v4555_v36 = vpop.f32.mrf.mxu2 }
  0xef   : > { %v845_v28 = vrot.slane %v844_v21, 2  ;;  %v850_v16 = vrot.slane %v849_v22, 4 }
  0xf0   : > { %v837_v15 = vadd.f32 %v836_v41, %v835_v10  ;;  %v856_v61 = vadd.f32 %v834_v25, %v830_v53  ;;  %v4557_v33 = vpop.f32.mrf.mxu3  ;;  %v3580_v41 = vor.u32 %v3579_v23, %v4446_v8 }
  0xf1   : > { %1541 = vmatpush.bf16.msra.mxu0 %v4068_v54  ;;  %1555 = vmatpush.bf16.msra.mxu1 %v4070_v55  ;;  %v846_v10 = vadd.f32 %v845_v28, %v844_v21  ;;  %v851_v4 = vadd.f32 %v850_v16, %v849_v22  ;;  %v5580_v16 = vld [vmem:[#allocation43_spill] sm:$0xff] }
  0xf2   : > { %1569 = vmatpush.bf16.msra.mxu2 %v4095_v5  ;;  %1583 = vmatpush.bf16.msra.mxu3 %v4097_v9  ;;  %v838_v26 = vrot.slane %v837_v15, 2  ;;  %v857_v50 = vrot.slane %v856_v61, 4  ;;  %v4562_v21 = vpop.f32.mrf.mxu0  ;;  %v1594_v8 = vrot.slane %v3580_v41, 1 }
  0xf3   : > { %v847_v17 = vrot.slane %v846_v10, 1  ;;  %v852_v25 = vrot.slane %v851_v4, 2 }
  0xf4   : > { %3378 = vmatmul.msk.bf16.vlgmr.msra.gmra.mxu0 %vm399_vm2, %v4443_v32  ;;  %3379 = vmatmul.msk.bf16.vlgmr.msra.gmra.mxu1 %vm399_vm2, %v4443_v32  ;;  %v858_v56 = vadd.f32 %v857_v50, %v856_v61  ;;  %v4564_v53 = vpop.f32.mrf.mxu1  ;;  %v839_v11 = vadd.f32 %v838_v26, %v837_v15  ;;  %v1595_v50 = vrot.slane %v4473_v43, 1  ;;  %v877_v26 = vlaneseq }
  0xf5   : > { %1603 = vmatpush.bf16.msrb.mxu0 %v4082_v63  ;;  %1617 = vmatpush.bf16.msrb.mxu1 %v4085_v1  ;;  %v848_v23 = vadd.f32 %v847_v17, %v846_v10  ;;  %v853_v22 = vadd.f32 %v852_v25, %v851_v4  ;;  %v3389_v10 = vld [vmem:[%s3899_s17 + $0x38] sm:$0x1] }
  0xf6   : > { %1631 = vmatpush.bf16.msrb.mxu2 %v5571_v40  ;;  %1645 = vmatpush.bf16.msrb.mxu3 %v5572_v45  ;;  %v859_v28 = vrot.slane %v858_v56, 2  ;;  %v1596_v43 = vsel %vm636_vm3, %v1594_v8, %v1595_v50  ;;  %vm4585_vm7 = vcmp.lt.s32.totalorder %v877_v26, 512  ;;  %v5585_v8 = vmov 0  ;;  %v4592_v50 = vld [vmem:[%s3899_s17 + $0x30] sm:$0xff]  }
  0xf7   : > { %3380 = vmatmul.msk.bf16.vlgmr.msra.gmra.mxu2 %vm399_vm2, %v4443_v32  ;;  %3381 = vmatmul.msk.bf16.vlgmr.msra.gmra.mxu3 %vm399_vm2, %v4443_v32  ;;  %v5577_v32 = vld [vmem:[#allocation38_spill] sm:$0xff]  ;;  %v867_v17 = vrot.slane %v848_v23, 7  ;;  %v5583_v23 = vld [vmem:[#allocation8_spill] sm:$0xff]  ;;  %v5586_v8 = vsel %vm4585_vm7, 4294967295, %v5585_v8 }
  0xf8   : > { %v860_v61 = vadd.f32 %v859_v28, %v858_v56  ;;  %v4575_v41 = vpop.f32.mrf.mxu3  ;;  %5587 = vst [vmem:[#allocation36_spill] sm:$0xff] %v5586_v8  ;;  %v5588_v26 = vld [vmem:[#allocation10_spill] sm:$0xff] }
  0xf9   : > { %1604 = vmatpush.bf16.msrb.mxu0 %v5573_v35  ;;  %1618 = vmatpush.bf16.msrb.mxu1 %v5574_v20 }
  0xfa   : > { %1632 = vmatpush.bf16.msrb.mxu2 %v5575_v29  ;;  %1646 = vmatpush.bf16.msrb.mxu3 %v5567_v46  ;;  %v861_v15 = vrot.slane %v860_v61, 1 }
  0xfc   : > { %v862_v56 = vadd.f32 %v861_v15, %v860_v61  ;;  %v991_v61 = vpop.f32.mrf.mxu1  ;;  %v1741_v15 = vunpack.c.l.b16 %v3389_v10 }
  0xfd   : > { %1605 = vmatpush.bf16.msrb.mxu0 %v5576_v44  ;;  %1619 = vmatpush.bf16.msrb.mxu1 %v5577_v32  ;;  %v5579_v32 = vld [vmem:[#allocation42_spill] sm:$0xff]  ;;  %v5581_v44 = vld [vmem:[#allocation45_spill] sm:$0xff] }
  0xfe   : > { %1633 = vmatpush.bf16.msrb.mxu2 %v5569_v42  ;;  %1647 = vmatpush.bf16.msrb.mxu3 %v5578_v2  ;;  %v840_v2 = vrot.slane %v839_v11, 1  ;;  %v854_v42 = vrot.slane %v853_v22, 1 }
 0x100   : > { %v855_v4 = vadd.f32 %v854_v42, %v853_v22  ;;  %v841_v25 = vadd.f32 %v840_v2, %v839_v11  ;;  %v5584_v42 = vld [vmem:[#allocation9_spill] sm:$0xff]  ;;  %v977_v22 = vpop.f32.mrf.mxu0 }
 0x101   : > { %1606 = vmatpush.bf16.msrb.mxu0 %v5566_v62  ;;  %1620 = vmatpush.bf16.msrb.mxu1 %v5579_v32  ;;  %v5582_v62 = vld [vmem:[#allocation46_spill] sm:$0xff]  ;;  %v4573_v32 = vpop.f32.mrf.mxu2 }
 0x102   : > { %1634 = vmatpush.bf16.msrb.mxu2 %v5580_v16  ;;  %1648 = vmatpush.bf16.msrb.mxu3 %v4225_v14  ;;  %v868_v28 = vrot.slane %v855_v4, 6  ;;  %v871_v2 = vsel %vm870_vm4, %v841_v25, %v867_v17  ;;  %v5589_v4 = vld [vmem:[#allocation11_spill] sm:$0xff]  ;;  %v4605_v17 = vpack.c.b16 %v1741_v15, %v1741_v15  ;;  %v5591_v25 = vld [vmem:[#allocation14_spill] sm:$0xff] }
 0x104   : > { %v1752_v15 = vshll.u32 %v4605_v17, 16 }
 0x105   : > { %1607 = vmatpush.bf16.msrb.mxu0 %v5581_v44  ;;  %1621 = vmatpush.bf16.msrb.mxu1 %v5582_v62  ;;  %v869_v62 = vrot.slane %v862_v56, 5  ;;  %v5590_v56 = vld [vmem:[#allocation12_spill] sm:$0xff] }
 0x106   : > { %1635 = vmatpush.bf16.msrb.mxu2 %v4259_v31  ;;  %1649 = vmatpush.bf16.msrb.mxu3 %v4261_v37 }
 0x107   : > { %v873_v11 = vsel %vm872_vm5, %v868_v28, %v869_v62  ;;  %v1747_v62 = vshll.u32 %v4592_v50, 16 }
 0x108   : > { %3383 = vmatmul.msk.bf16.vlgmr.msrb.gmra.mxu0 %vm399_vm2, %v1596_v43  ;;  %3384 = vmatmul.msk.bf16.vlgmr.msrb.gmra.mxu1 %vm399_vm2, %v1596_v43  ;;  %v875_v10 = vsel %vm874_vm6, %v871_v2, %v873_v11  ;;  %v1019_v2 = vpop.f32.mrf.mxu3  ;;  %v5593_v11 = vld [vmem:[#allocation16_spill] sm:$0xff]  ;;  %v979_v8 = vpop.f32.mrf.mxu0 }
 0x109   : > { %1762 = vmatpush.bf16.msra.mxu0 %v3759_v18  ;;  %1776 = vmatpush.bf16.msra.mxu1 %v3762_v19  ;;  %881 = vst.msk [vmem:[#allocation2] ss:$8 sm:$0xf] %vm4585_vm7, %v875_v10  ;;  %v1005_v28 = vpop.f32.mrf.mxu2  ;;  %v993_v10 = vpop.f32.mrf.mxu1 }
 0x10a   : > { %1790 = vmatpush.bf16.msra.mxu2 %v5583_v23  ;;  %1804 = vmatpush.bf16.msra.mxu3 %v5584_v42 }
 0x10b   : > { %3385 = vmatmul.msk.bf16.vlgmr.msrb.gmra.mxu2 %vm399_vm2, %v1596_v43  ;;  %3386 = vmatmul.msk.bf16.vlgmr.msrb.gmra.mxu3 %vm399_vm2, %v1596_v43  ;;  %v5592_v43 = vld [vmem:[#allocation15_spill] sm:$0xff] }
 0x10d   : > { %1763 = vmatpush.bf16.msra.mxu0 %v5588_v26  ;;  %1777 = vmatpush.bf16.msra.mxu1 %v5589_v4  ;;  %v5594_v4 = vld [vmem:[#allocation17_spill] sm:$0xff]  ;;  %v1749_v26 = vrot.slane %v1747_v62, 1 }
 0x10e   : > { %1791 = vmatpush.bf16.msra.mxu2 %v5590_v56  ;;  %1805 = vmatpush.bf16.msra.mxu3 %v3786_v27  ;;  %v1745_v56 = vshrl.u32 %v4592_v50, 16 }
 0x111   : > { %1764 = vmatpush.bf16.msra.mxu0 %v5591_v25  ;;  %1778 = vmatpush.bf16.msra.mxu1 %v5592_v43  ;;  %v1750_v43 = vor.u32 %v1749_v26, %v1745_v56  ;;  %v1754_v25 = vrot.slane %v1752_v15, 1  ;;  %v5598_v26 = vld [vmem:[#allocation27_spill] sm:$0xff]  ;;  %v1043_v56 = vpop.f32.mrf.mxu0  ;;  %v1057_v15 = vpop.f32.mrf.mxu1 }
 0x112   : > { %1792 = vmatpush.bf16.msra.mxu2 %v5593_v11  ;;  %1806 = vmatpush.bf16.msra.mxu3 %v5594_v4  ;;  %v1007_v4 = vpop.f32.mrf.mxu2  ;;  %v1021_v11 = vpop.f32.mrf.mxu3 }
 0x113   : > { %v1755_v62 = vsel %vm296_vm1, %v1750_v43, %v1754_v25  ;;  %v4634_v25 = vld [vmem:[%s5414_s2] sm:$0xf]  ;;  %v978_v43 = vadd.f32 %v977_v22, %v4536_v34  ;;  %v994_v34 = vadd.f32 %v993_v10, %v4564_v53  ;;  %v1020_v53 = vadd.f32 %v1019_v2, %v4557_v33 }
 0x114   : > { %v1102_v10 = vperm.slane %v4634_v25, 2  ;;  %v1008_v2 = vadd.f32 %v1007_v4, %v4573_v32 }
 0x115   : > { %1765 = vmatpush.bf16.msra.mxu0 %v3858_v51  ;;  %1779 = vmatpush.bf16.msra.mxu1 %v3860_v52  ;;  %v5595_v51 = vld [vmem:[#allocation24_spill] sm:$0xff]  ;;  %v5596_v52 = vld [vmem:[#allocation25_spill] sm:$0xff] }
 0x116   : > { %1793 = vmatpush.bf16.msra.mxu2 %v3871_v57  ;;  %1807 = vmatpush.bf16.msra.mxu3 %v3873_v58  ;;  %v5597_v57 = vld [vmem:[#allocation26_spill] sm:$0xff] }
 0x119   : > { %1766 = vmatpush.bf16.msra.mxu0 %v3890_v0  ;;  %1780 = vmatpush.bf16.msra.mxu1 %v3894_v3 }
 0x11a   : > { %1794 = vmatpush.bf16.msra.mxu2 %v3903_v6  ;;  %1808 = vmatpush.bf16.msra.mxu3 %v3905_v7  ;;  %v1101_v7 = vperm.slane %v4634_v25, 1  ;;  %v980_v6 = vadd.f32 %v979_v8, %v4562_v21  ;;  %v1085_v22 = vpop.f32.mrf.mxu3 }
 0x11c   : > { %3390 = vmatmul.msk.bf16.vlgmr.msra.gmra.mxu0 %vm399_vm2, %v1755_v62  ;;  %3391 = vmatmul.msk.bf16.vlgmr.msra.gmra.mxu1 %vm399_vm2, %v1755_v62 }
 0x11d   : > { %1820 = vmatpush.bf16.msrb.mxu0 %v5595_v51  ;;  %1834 = vmatpush.bf16.msrb.mxu1 %v5596_v52  ;;  %v1090_v52 = vadd.f32 %v1043_v56, %v978_v43  ;;  %v5600_v56 = vld [vmem:[#allocation30_spill] sm:$0xff]  ;;  %v1045_v43 = vpop.f32.mrf.mxu0 }
 0x11e   : > { %1848 = vmatpush.bf16.msrb.mxu2 %v5597_v57  ;;  %1862 = vmatpush.bf16.msrb.mxu3 %v5598_v26  ;;  %v992_v57 = vadd.f32 %v991_v61, %v4538_v13  ;;  %v5599_v26 = vld [vmem:[#allocation29_spill] sm:$0xff]  ;;  %v1071_v13 = vpop.f32.mrf.mxu2  ;;  %v1006_v61 = vadd.f32 %v1005_v28, %v4555_v36 }
 0x11f   : > { %3392 = vmatmul.msk.bf16.vlgmr.msra.gmra.mxu2 %vm399_vm2, %v1755_v62  ;;  %3393 = vmatmul.msk.bf16.vlgmr.msra.gmra.mxu3 %vm399_vm2, %v1755_v62  ;;  %v1100_v62 = vperm.slane %v4634_v25, 0 }
 0x120   : > { %v1091_v51 = vadd.f32 %v1057_v15, %v992_v57  ;;  %v1059_v57 = vpop.f32.mrf.mxu1  ;;  %v1092_v8 = vadd.f32 %v1071_v13, %v1006_v61 }
 0x121   : > { %1821 = vmatpush.bf16.msrb.mxu0 %v3955_v38  ;;  %1835 = vmatpush.bf16.msrb.mxu1 %v3957_v39  ;;  %v1108_v15 = vadd.f32 %v1100_v62, %v1090_v52  ;;  %v1095_v21 = vadd.f32 %v1059_v57, %v994_v34 }
 0x122   : > { %1849 = vmatpush.bf16.msrb.mxu2 %v3979_v49  ;;  %1863 = vmatpush.bf16.msrb.mxu3 %v5599_v26  ;;  %v1109_v26 = vadd.f32 %v1101_v7, %v1091_v51  ;;  %v1094_v49 = vadd.f32 %v1045_v43, %v980_v6  ;;  %v1103_v51 = vperm.slane %v4634_v25, 3  ;;  %v1022_v43 = vadd.f32 %v1021_v11, %v4575_v41 }
 0x123   : > { %v1113_v28 = vadd.f32 %v1101_v7, %v1095_v21  ;;  %v1116_v52 = vmax.f32 %v1108_v15, 0.0  ;;  %v1110_v13 = vadd.f32 %v1102_v10, %v1092_v8 }
 0x124   : > { %v1112_v36 = vadd.f32 %v1100_v62, %v1094_v49  ;;  %v1117_v6 = vmax.f32 %v1109_v26, 0.0  ;;  %v1087_v49 = vpop.f32.mrf.mxu3 }
 0x125   : > { %1822 = vmatpush.bf16.msrb.mxu0 %v3995_v59  ;;  %1836 = vmatpush.bf16.msrb.mxu1 %v3997_v60  ;;  %v1121_v33 = vmax.f32 %v1113_v28, 0.0  ;;  %v1097_v25 = vadd.f32 %v1087_v49, %v1022_v43  ;;  %v4668_v11 = vpop.f32.mrf.mxu0  ;;  %v1118_v15 = vmax.f32 %v1110_v13, 0.0 }
 0x126   : > { %1850 = vmatpush.bf16.msrb.mxu2 %v4023_v12  ;;  %1864 = vmatpush.bf16.msrb.mxu3 %v5600_v56  ;;  %v1093_v56 = vadd.f32 %v1085_v22, %v1020_v53  ;;  %v1120_v34 = vmax.f32 %v1112_v36, 0.0  ;;  %v1073_v7 = vpop.f32.mrf.mxu2 }
 0x127   : > { %v1131_v57 = vadd.f32 %v1121_v33, %v1117_v6  ;;  %v1096_v26 = vadd.f32 %v1073_v7, %v1008_v2  ;;  %v1115_v4 = vadd.f32 %v1103_v51, %v1097_v25  ;;  %v3527_v6 = vld [vmem:[%s3899_s17 + $0x30] sm:$0xf0] }
 0x128   : > { %v1124_v61 = vadd.f32 %v1120_v34, %v1116_v52  ;;  %v1111_v62 = vadd.f32 %v1103_v51, %v1093_v56  ;;  %v4670_v56 = vpop.f32.mrf.mxu1  ;;  %v3528_v34 = vld [vmem:[%s3899_s17 + $0x30] sm:$0xe] }
 0x129   : > { %1823 = vmatpush.bf16.msrb.mxu0 %v4035_v24  ;;  %1837 = vmatpush.bf16.msrb.mxu1 %v4037_v30  ;;  %v1132_v32 = vrot.slane %v1131_v57, 4  ;;  %v1114_v41 = vadd.f32 %v1102_v10, %v1096_v26  ;;  %v1123_v36 = vmax.f32 %v1115_v4, 0.0  ;;  %v3529_v49 = vor.u32 %v3528_v34, %v3527_v6 }
 0x12a   : > { %1851 = vmatpush.bf16.msrb.mxu2 %v4059_v47  ;;  %1865 = vmatpush.bf16.msrb.mxu3 %v4061_v48  ;;  %v1125_v22 = vrot.slane %v1124_v61, 4  ;;  %v1119_v53 = vmax.f32 %v1111_v62, 0.0 }
 0x12b   : > { %v1133_v21 = vadd.f32 %v1132_v32, %v1131_v57  ;;  %v1122_v10 = vmax.f32 %v1114_v41, 0.0  ;;  %v5604_v32 = vld [vmem:[#allocation40_spill] sm:$0xff] }
 0x12c   : > { %v1126_v8 = vadd.f32 %v1125_v22, %v1124_v61  ;;  %v1145_v52 = vadd.f32 %v1123_v36, %v1119_v53  ;;  %v5602_v61 = vld [vmem:[#allocation38_spill] sm:$0xff]  ;;  %v4690_v7 = vpop.f32.mrf.mxu3  ;;  %v5603_v22 = vld [vmem:[#allocation39_spill] sm:$0xff]  ;;  %v4702_v36 = vld [vmem:[%s3899_s17 + $0x3c] sm:$0xf0] }
 0x12d   : > { %1824 = vmatpush.bf16.msrb.mxu0 %v4068_v54  ;;  %1838 = vmatpush.bf16.msrb.mxu1 %v4070_v55  ;;  %v1134_v28 = vrot.slane %v1133_v21, 2  ;;  %v1138_v51 = vadd.f32 %v1122_v10, %v1118_v15  ;;  %v4694_v41 = vpop.f32.mrf.mxu0  ;;  %v4699_v10 = vld [vmem:[%s3899_s17 + $0x3c] sm:$0xff]   ;;  %5605 = vst [vmem:[#allocation31_spill] sm:$0xff] %v4702_v36  ;;  %v5608_v36 = vld [vmem:[#allocation46_spill] sm:$0xff] }
 0x12e   : > { %1852 = vmatpush.bf16.msrb.mxu2 %v4095_v5  ;;  %1866 = vmatpush.bf16.msrb.mxu3 %v4097_v9  ;;  %v1127_v2 = vrot.slane %v1126_v8, 2  ;;  %v1146_v13 = vrot.slane %v1145_v52, 4  ;;  %v4688_v57 = vpop.f32.mrf.mxu2 }
 0x12f   : > { %v1135_v33 = vadd.f32 %v1134_v28, %v1133_v21  ;;  %v1139_v43 = vrot.slane %v1138_v51, 4  ;;  %v5606_v28 = vld [vmem:[#allocation41_spill] sm:$0xff] }
 0x130   : > { %3394 = vmatmul.msk.bf16.vlgmr.msrb.gmra.mxu0 %vm399_vm2, %v4592_v50  ;;  %3395 = vmatmul.msk.bf16.vlgmr.msrb.gmra.mxu1 %vm399_vm2, %v4592_v50  ;;  %v1147_v25 = vadd.f32 %v1146_v13, %v1145_v52  ;;  %v4696_v4 = vpop.f32.mrf.mxu1  ;;  %v1128_v15 = vadd.f32 %v1127_v2, %v1126_v8  ;;  %v1877_v52 = vrot.slane %v3529_v49, 1  ;;  %v1878_v8 = vrot.slane %v4605_v17, 1 }
 0x131   : > { %1886 = vmatpush.bf16.msra.mxu0 %v4082_v63  ;;  %1900 = vmatpush.bf16.msra.mxu1 %v4085_v1  ;;  %v1136_v62 = vrot.slane %v1135_v33, 1  ;;  %v1140_v26 = vadd.f32 %v1139_v43, %v1138_v51  ;;  %v5607_v51 = vld [vmem:[#allocation42_spill] sm:$0xff] }
 0x132   : > { %1914 = vmatpush.bf16.msra.mxu2 %v5571_v40  ;;  %1928 = vmatpush.bf16.msra.mxu3 %v5572_v45  ;;  %v1148_v53 = vrot.slane %v1147_v25, 2  ;;  %v1129_v2 = vrot.slane %v1128_v15, 1  ;;  %v1879_v17 = vsel %vm636_vm3, %v1877_v52, %v1878_v8  ;;  %v5618_v8 = vld [vmem:[#allocation19_spill] sm:$0xff] }
 0x133   : > { %3396 = vmatmul.msk.bf16.vlgmr.msrb.gmra.mxu2 %vm399_vm2, %v4592_v50  ;;  %3397 = vmatmul.msk.bf16.vlgmr.msrb.gmra.mxu3 %vm399_vm2, %v4592_v50  ;;  %v5601_v50 = vld [vmem:[#allocation37_spill] sm:$0xff]  ;;  %v1141_v21 = vrot.slane %v1140_v26, 2  ;;  %v1137_v6 = vadd.f32 %v1136_v62, %v1135_v33 }
 0x134   : > { %v1149_v43 = vadd.f32 %v1148_v53, %v1147_v25  ;;  %v4714_v49 = vpop.f32.mrf.mxu3 }
 0x135   : > { %1887 = vmatpush.bf16.msra.mxu0 %v5573_v35  ;;  %1901 = vmatpush.bf16.msra.mxu1 %v5574_v20  ;;  %v1142_v34 = vadd.f32 %v1141_v21, %v1140_v26  ;;  %v1156_v33 = vrot.slane %v1137_v6, 7  ;;  %v1130_v21 = vadd.f32 %v1129_v2, %v1128_v15  ;;  %v1260_v6 = vpop.f32.mrf.mxu0  ;;  %v5609_v15 = vld [vmem:[#allocation10_spill] sm:$0xff]  ;;  %v5612_v2 = vld [vmem:[#allocation12_spill] sm:$0xff] }
 0x136   : > { %1915 = vmatpush.bf16.msra.mxu2 %v5575_v29  ;;  %1929 = vmatpush.bf16.msra.mxu3 %v5567_v46 }
 0x137   : > { %v1143_v13 = vrot.slane %v1142_v34, 1  ;;  %v1159_v52 = vsel %vm870_vm4, %v1130_v21, %v1156_v33  ;;  %v5613_v33 = vld [vmem:[#allocation14_spill] sm:$0xff]  ;;  %v5615_v21 = vld [vmem:[#allocation16_spill] sm:$0xff] }
 0x139   : > { %1888 = vmatpush.bf16.msra.mxu0 %v5601_v50  ;;  %1902 = vmatpush.bf16.msra.mxu1 %v5602_v61  ;;  %v1144_v62 = vadd.f32 %v1143_v13, %v1142_v34 }
 0x13a   : > { %1916 = vmatpush.bf16.msra.mxu2 %v5603_v22  ;;  %1930 = vmatpush.bf16.msra.mxu3 %v5604_v32  ;;  %v1150_v32 = vrot.slane %v1149_v43, 1  ;;  %v3405_v22 = vld [vmem:[%s3899_s17 + $0x44] sm:$0x1] }
 0x13b   : > { %v2024_v25 = vunpack.c.l.b16 %v3405_v22  ;;  %v1157_v53 = vrot.slane %v1144_v62, 6  ;;  %v5614_v62 = vld [vmem:[#allocation15_spill] sm:$0xff] }
 0x13c   : > { %v1151_v26 = vadd.f32 %v1150_v32, %v1149_v43  ;;  %v1274_v32 = vpop.f32.mrf.mxu1  ;;  %v5610_v43 = vld [vmem:[#allocation11_spill] sm:$0xff] }
 0x13d   : > { %1889 = vmatpush.bf16.msra.mxu0 %v5606_v28  ;;  %1903 = vmatpush.bf16.msra.mxu1 %v5607_v51  ;;  %v4712_v28 = vpop.f32.mrf.mxu2  ;;  %v4736_v13 = vpack.c.b16 %v2024_v25, %v2024_v25 }
 0x13e   : > { %1917 = vmatpush.bf16.msra.mxu2 %v5580_v16  ;;  %1931 = vmatpush.bf16.msra.mxu3 %v4225_v14 }
 0x13f   : > { %v2035_v25 = vshll.u32 %v4736_v13, 16 }
 0x141   : > { %1890 = vmatpush.bf16.msra.mxu0 %v5581_v44  ;;  %1904 = vmatpush.bf16.msra.mxu1 %v5608_v36  ;;  %v1158_v36 = vrot.slane %v1151_v26, 5 }
 0x142   : > { %1918 = vmatpush.bf16.msra.mxu2 %v4259_v31  ;;  %1932 = vmatpush.bf16.msra.mxu3 %v4261_v37 }
 0x143   : > { %v1160_v34 = vsel %vm872_vm5, %v1157_v53, %v1158_v36  ;;  %v2030_v36 = vshll.u32 %v4699_v10, 16  ;;  %v5616_v53 = vld [vmem:[#allocation17_spill] sm:$0xff] }
 0x144   : > { %3399 = vmatmul.msk.bf16.vlgmr.msra.gmra.mxu0 %vm399_vm2, %v1879_v17  ;;  %3400 = vmatmul.msk.bf16.vlgmr.msra.gmra.mxu1 %vm399_vm2, %v1879_v17  ;;  %v1161_v22 = vsel %vm874_vm6, %v1159_v52, %v1160_v34  ;;  %v1262_v52 = vpop.f32.mrf.mxu0  ;;  %v1276_v34 = vpop.f32.mrf.mxu1 }
 0x145   : > { %2045 = vmatpush.bf16.msrb.mxu0 %v3759_v18  ;;  %2059 = vmatpush.bf16.msrb.mxu1 %v3762_v19  ;;  %1164 = vst.msk [vmem:[#allocation2 + $0x1] ss:$8 sm:$0xf] %vm4585_vm7, %v1161_v22  ;;  %v1288_v26 = vpop.f32.mrf.mxu2  ;;  %v2028_v22 = vshrl.u32 %v4699_v10, 16 }
 0x146   : > { %2073 = vmatpush.bf16.msrb.mxu2 %v5583_v23  ;;  %2087 = vmatpush.bf16.msrb.mxu3 %v5584_v42  ;;  %v5622_v42 = vld [vmem:[#allocation24_spill] sm:$0xff] }
 0x147   : > { %3401 = vmatmul.msk.bf16.vlgmr.msra.gmra.mxu2 %vm399_vm2, %v1879_v17  ;;  %3402 = vmatmul.msk.bf16.vlgmr.msra.gmra.mxu3 %vm399_vm2, %v1879_v17  ;;  %v1302_v17 = vpop.f32.mrf.mxu3 }
 0x149   : > { %2046 = vmatpush.bf16.msrb.mxu0 %v5609_v15  ;;  %2060 = vmatpush.bf16.msrb.mxu1 %v5610_v43  ;;  %v2037_v43 = vrot.slane %v2035_v25, 1  ;;  %v5620_v15 = vld [vmem:[#allocation22_spill] sm:$0xff] }
 0x14a   : > { %2074 = vmatpush.bf16.msrb.mxu2 %v5612_v2  ;;  %2088 = vmatpush.bf16.msrb.mxu3 %v3786_v27  ;;  %v2032_v2 = vrot.slane %v2030_v36, 1  ;;  %v5617_v27 = vld [vmem:[#allocation18_spill] sm:$0xff]  ;;  %v5621_v36 = vld [vmem:[#allocation23_spill] sm:$0xff] }
 0x14c   : > { %v1340_v25 = vpop.f32.mrf.mxu1 }
 0x14d   : > { %2047 = vmatpush.bf16.msrb.mxu0 %v5613_v33  ;;  %2061 = vmatpush.bf16.msrb.mxu1 %v5614_v62  ;;  %v5619_v33 = vld [vmem:[#allocation20_spill] sm:$0xff]  ;;  %v2033_v62 = vor.u32 %v2032_v2, %v2028_v22  ;;  %v5625_v2 = vld [vmem:[#allocation27_spill] sm:$0xff]  ;;  %v1326_v22 = vpop.f32.mrf.mxu0 }
 0x14e   : > { %2075 = vmatpush.bf16.msrb.mxu2 %v5615_v21  ;;  %2089 = vmatpush.bf16.msrb.mxu3 %v5616_v53  ;;  %v1290_v53 = vpop.f32.mrf.mxu2 }
 0x14f   : > { %v1304_v21 = vpop.f32.mrf.mxu3 }
 0x151   : > { %2048 = vmatpush.bf16.msrb.mxu0 %v5617_v27  ;;  %2062 = vmatpush.bf16.msrb.mxu1 %v5618_v8  ;;  %v2038_v27 = vsel %vm296_vm1, %v2033_v62, %v2037_v43  ;;  %v5623_v8 = vld [vmem:[#allocation25_spill] sm:$0xff]  ;;  %v4765_v43 = vld [vmem:[%s5414_s2] sm:$0xf]  ;;  %v1261_v62 = vadd.f32 %v1260_v6, %v4668_v11  ;;  %v1277_v11 = vadd.f32 %v1276_v34, %v4696_v4 }
 0x152   : > { %2076 = vmatpush.bf16.msrb.mxu2 %v5619_v33  ;;  %2090 = vmatpush.bf16.msrb.mxu3 %v3873_v58  ;;  %v5624_v33 = vld [vmem:[#allocation26_spill] sm:$0xff]  ;;  %v1303_v4 = vadd.f32 %v1302_v17, %v4690_v7  ;;  %v1385_v34 = vperm.slane %v4765_v43, 2  ;;  %v1291_v17 = vadd.f32 %v1290_v53, %v4712_v28 }
 0x155   : > { %2049 = vmatpush.bf16.msrb.mxu0 %v3890_v0  ;;  %2063 = vmatpush.bf16.msrb.mxu1 %v3894_v3  ;;  %v1263_v3 = vadd.f32 %v1262_v52, %v4694_v41 }
 0x156   : > { %2077 = vmatpush.bf16.msrb.mxu2 %v5620_v15  ;;  %2091 = vmatpush.bf16.msrb.mxu3 %v5621_v36  ;;  %v1384_v15 = vperm.slane %v4765_v43, 1 }
 0x157   : > { %v1368_v6 = vpop.f32.mrf.mxu3 }
 0x158   : > { %3406 = vmatmul.msk.bf16.vlgmr.msrb.gmra.mxu0 %vm399_vm2, %v2038_v27  ;;  %3407 = vmatmul.msk.bf16.vlgmr.msrb.gmra.mxu1 %vm399_vm2, %v2038_v27 }
 0x159   : > { %2103 = vmatpush.bf16.msra.mxu0 %v5622_v42  ;;  %2117 = vmatpush.bf16.msra.mxu1 %v5623_v8  ;;  %v5627_v8 = vld [vmem:[#allocation29_spill] sm:$0xff]  ;;  %v1373_v42 = vadd.f32 %v1326_v22, %v1261_v62  ;;  %v5628_v22 = vld [vmem:[#allocation30_spill] sm:$0xff]  ;;  %v1328_v62 = vpop.f32.mrf.mxu0 }
 0x15a   : > { %2131 = vmatpush.bf16.msra.mxu2 %v5624_v33  ;;  %2145 = vmatpush.bf16.msra.mxu3 %v5625_v2  ;;  %v1275_v33 = vadd.f32 %v1274_v32, %v4670_v56  ;;  %v5626_v2 = vld [vmem:[#allocation28_spill] sm:$0xff]  ;;  %v1354_v56 = vpop.f32.mrf.mxu2  ;;  %v1289_v32 = vadd.f32 %v1288_v26, %v4688_v57 }
 0x15b   : > { %3408 = vmatmul.msk.bf16.vlgmr.msrb.gmra.mxu2 %vm399_vm2, %v2038_v27  ;;  %3409 = vmatmul.msk.bf16.vlgmr.msrb.gmra.mxu3 %vm399_vm2, %v2038_v27  ;;  %v1383_v27 = vperm.slane %v4765_v43, 0 }
 0x15c   : > { %v1374_v36 = vadd.f32 %v1340_v25, %v1275_v33  ;;  %v1342_v33 = vpop.f32.mrf.mxu1  ;;  %v1375_v52 = vadd.f32 %v1354_v56, %v1289_v32 }
 0x15d   : > { %2104 = vmatpush.bf16.msra.mxu0 %v3955_v38  ;;  %2118 = vmatpush.bf16.msra.mxu1 %v3957_v39  ;;  %v1391_v25 = vadd.f32 %v1383_v27, %v1373_v42  ;;  %v1378_v41 = vadd.f32 %v1342_v33, %v1277_v11  ;;  %v1386_v42 = vperm.slane %v4765_v43, 3 }
 0x15e   : > { %2132 = vmatpush.bf16.msra.mxu2 %v5626_v2  ;;  %2146 = vmatpush.bf16.msra.mxu3 %v5627_v8  ;;  %v1392_v8 = vadd.f32 %v1384_v15, %v1374_v36  ;;  %v1377_v2 = vadd.f32 %v1328_v62, %v1263_v3  ;;  %v1305_v62 = vadd.f32 %v1304_v21, %v4714_v49 }
 0x15f   : > { %v1396_v26 = vadd.f32 %v1384_v15, %v1378_v41  ;;  %v1399_v3 = vmax.f32 %v1391_v25, 0.0  ;;  %v1393_v56 = vadd.f32 %v1385_v34, %v1375_v52  ;;  %v3582_v25 = vld [vmem:[%s3899_s17 + $0x3c] sm:$0xe] }
 0x160   : > { %v1395_v57 = vadd.f32 %v1383_v27, %v1377_v2  ;;  %v1400_v36 = vmax.f32 %v1392_v8, 0.0  ;;  %v1370_v2 = vpop.f32.mrf.mxu3 }
 0x161   : > { %2105 = vmatpush.bf16.msra.mxu0 %v3995_v59  ;;  %2119 = vmatpush.bf16.msra.mxu1 %v3997_v60  ;;  %v1404_v7 = vmax.f32 %v1396_v26, 0.0  ;;  %v1380_v43 = vadd.f32 %v1370_v2, %v1305_v62  ;;  %v1401_v41 = vmax.f32 %v1393_v56, 0.0 }
 0x162   : > { %2133 = vmatpush.bf16.msra.mxu2 %v4023_v12  ;;  %2147 = vmatpush.bf16.msra.mxu3 %v5628_v22  ;;  %v1376_v22 = vadd.f32 %v1368_v6, %v1303_v4  ;;  %v1403_v11 = vmax.f32 %v1395_v57, 0.0  ;;  %v1356_v15 = vpop.f32.mrf.mxu2  ;;  %v4799_v6 = vpop.f32.mrf.mxu0 }
 0x163   : > { %v1414_v33 = vadd.f32 %v1404_v7, %v1400_v36  ;;  %v1379_v8 = vadd.f32 %v1356_v15, %v1291_v17  ;;  %v1398_v21 = vadd.f32 %v1386_v42, %v1380_v43  ;;  %v5631_v43 = vld [vmem:[#allocation40_spill] sm:$0xff] }
 0x164   : > { %v1407_v32 = vadd.f32 %v1403_v11, %v1399_v3  ;;  %v1394_v27 = vadd.f32 %v1386_v42, %v1376_v22  ;;  %v4801_v22 = vpop.f32.mrf.mxu1 }
 0x165   : > { %2106 = vmatpush.bf16.msra.mxu0 %v4035_v24  ;;  %2120 = vmatpush.bf16.msra.mxu1 %v4037_v30  ;;  %v1415_v53 = vrot.slane %v1414_v33, 4  ;;  %v1397_v49 = vadd.f32 %v1385_v34, %v1379_v8  ;;  %v1406_v26 = vmax.f32 %v1398_v21, 0.0  ;;  %v5630_v8 = vld [vmem:[#allocation39_spill] sm:$0xff] }
 0x166   : > { %2134 = vmatpush.bf16.msra.mxu2 %v4059_v47  ;;  %2148 = vmatpush.bf16.msra.mxu3 %v4061_v48  ;;  %v1408_v28 = vrot.slane %v1407_v32, 4  ;;  %v1402_v52 = vmax.f32 %v1394_v27, 0.0 }
 0x167   : > { %v1416_v4 = vadd.f32 %v1415_v53, %v1414_v33  ;;  %v1405_v34 = vmax.f32 %v1397_v49, 0.0 }
 0x168   : > { %v1409_v57 = vadd.f32 %v1408_v28, %v1407_v32  ;;  %v1428_v36 = vadd.f32 %v1406_v26, %v1402_v52  ;;  %v4820_v56 = vpop.f32.mrf.mxu3  ;;  %v5629_v32 = vld [vmem:[#allocation31_spill] sm:$0xff] }
 0x169   : > { %2107 = vmatpush.bf16.msra.mxu0 %v4068_v54  ;;  %2121 = vmatpush.bf16.msra.mxu1 %v4070_v55  ;;  %v1417_v42 = vrot.slane %v1416_v4, 2  ;;  %v1421_v3 = vadd.f32 %v1405_v34, %v1401_v41  ;;  %v3583_v33 = vor.u32 %v3582_v25, %v5629_v32 }
 0x16a   : > { %2135 = vmatpush.bf16.msra.mxu2 %v4095_v5  ;;  %2149 = vmatpush.bf16.msra.mxu3 %v4097_v9  ;;  %v1410_v7 = vrot.slane %v1409_v57, 2  ;;  %v1429_v62 = vrot.slane %v1428_v36, 4  ;;  %v4825_v28 = vpop.f32.mrf.mxu0 }
 0x16b   : > { %v1418_v11 = vadd.f32 %v1417_v42, %v1416_v4  ;;  %v1422_v17 = vrot.slane %v1421_v3, 4  ;;  %v5632_v4 = vld [vmem:[#allocation41_spill] sm:$0xff]  ;;  %v2160_v25 = vrot.slane %v3583_v33, 1  ;;  %v2161_v42 = vrot.slane %v4736_v13, 1 }
 0x16c   : > { %3410 = vmatmul.msk.bf16.vlgmr.msra.gmra.mxu0 %vm399_vm2, %v4699_v10  ;;  %3411 = vmatmul.msk.bf16.vlgmr.msra.gmra.mxu1 %vm399_vm2, %v4699_v10  ;;  %v1430_v27 = vadd.f32 %v1429_v62, %v1428_v36  ;;  %v4827_v53 = vpop.f32.mrf.mxu1  ;;  %v1411_v49 = vadd.f32 %v1410_v7, %v1409_v57  ;;  %v5633_v7 = vld [vmem:[#allocation46_spill] sm:$0xff] }
 0x16d   : > { %2169 = vmatpush.bf16.msrb.mxu0 %v4082_v63  ;;  %2183 = vmatpush.bf16.msrb.mxu1 %v4085_v1  ;;  %v1419_v15 = vrot.slane %v1418_v11, 1  ;;  %v1423_v2 = vadd.f32 %v1422_v17, %v1421_v3  ;;  %v2162_v13 = vsel %vm636_vm3, %v2160_v25, %v2161_v42 }
 0x16e   : > { %2197 = vmatpush.bf16.msrb.mxu2 %v5571_v40  ;;  %2211 = vmatpush.bf16.msrb.mxu3 %v5572_v45  ;;  %v1431_v41 = vrot.slane %v1430_v27, 2  ;;  %v1412_v3 = vrot.slane %v1411_v49, 1 }
 0x16f   : > { %3412 = vmatmul.msk.bf16.vlgmr.msra.gmra.mxu2 %vm399_vm2, %v4699_v10  ;;  %3413 = vmatmul.msk.bf16.vlgmr.msra.gmra.mxu3 %vm399_vm2, %v4699_v10  ;;  %v4818_v10 = vpop.f32.mrf.mxu2  ;;  %v1424_v21 = vrot.slane %v1423_v2, 2  ;;  %v1420_v52 = vadd.f32 %v1419_v15, %v1418_v11  ;;  %v3421_v11 = vld [vmem:[%s3899_s17 + $0x50] sm:$0x1] }
 0x170   : > { %v1432_v26 = vadd.f32 %v1431_v41, %v1430_v27  ;;  %v4838_v62 = vpop.f32.mrf.mxu3  ;;  %v5634_v41 = vld [vmem:[#allocation9_spill] sm:$0xff] }
 0x171   : > { %2170 = vmatpush.bf16.msrb.mxu0 %v5573_v35  ;;  %2184 = vmatpush.bf16.msrb.mxu1 %v5574_v20  ;;  %v1425_v34 = vadd.f32 %v1424_v21, %v1423_v2  ;;  %v1439_v32 = vrot.slane %v1420_v52, 7  ;;  %v1413_v2 = vadd.f32 %v1412_v3, %v1411_v49  ;;  %v5635_v3 = vld [vmem:[#allocation10_spill] sm:$0xff] }
 0x172   : > { %2198 = vmatpush.bf16.msrb.mxu2 %v5575_v29  ;;  %2212 = vmatpush.bf16.msrb.mxu3 %v5567_v46  ;;  %v1433_v57 = vrot.slane %v1432_v26, 1  ;;  %v1543_v52 = vpop.f32.mrf.mxu0 }
 0x173   : > { %v1426_v36 = vrot.slane %v1425_v34, 1  ;;  %v1442_v25 = vsel %vm870_vm4, %v1413_v2, %v1439_v32 }
 0x174   : > { %v1434_v15 = vadd.f32 %v1433_v57, %v1432_v26  ;;  %v2307_v26 = vunpack.c.l.b16 %v3421_v11  ;;  %v5636_v57 = vld [vmem:[#allocation11_spill] sm:$0xff] }
 0x175   : > { %2171 = vmatpush.bf16.msrb.mxu0 %v5601_v50  ;;  %2185 = vmatpush.bf16.msrb.mxu1 %v5602_v61  ;;  %v1427_v33 = vadd.f32 %v1426_v36, %v1425_v34  ;;  %v1557_v34 = vpop.f32.mrf.mxu1  ;;  %v4851_v36 = vld [vmem:[%s3899_s17 + $0x48] sm:$0xff]  }
 0x176   : > { %2199 = vmatpush.bf16.msrb.mxu2 %v5630_v8  ;;  %2213 = vmatpush.bf16.msrb.mxu3 %v5631_v43  ;;  %v1441_v21 = vrot.slane %v1434_v15, 5  ;;  %v5639_v15 = vld [vmem:[#allocation13_spill] sm:$0xff]  ;;  %v4864_v32 = vpack.c.b16 %v2307_v26, %v2307_v26  ;;  %v2313_v2 = vshll.u32 %v4851_v36, 16 }
 0x177   : > { %v4836_v17 = vpop.f32.mrf.mxu2  ;;  %v1440_v27 = vrot.slane %v1427_v33, 6  ;;  %v5638_v33 = vld [vmem:[#allocation12_spill] sm:$0xff] }
 0x178   : > { %v2318_v26 = vshll.u32 %v4864_v32, 16 }
 0x179   : > { %2172 = vmatpush.bf16.msrb.mxu0 %v5632_v4  ;;  %2186 = vmatpush.bf16.msrb.mxu1 %v5607_v51  ;;  %v1443_v42 = vsel %vm872_vm5, %v1440_v27, %v1441_v21  ;;  %v5640_v27 = vld [vmem:[#allocation14_spill] sm:$0xff] }
 0x17a   : > { %2200 = vmatpush.bf16.msrb.mxu2 %v5580_v16  ;;  %2214 = vmatpush.bf16.msrb.mxu3 %v4225_v14  ;;  %v1444_v49 = vsel %vm874_vm6, %v1442_v25, %v1443_v42  ;;  %v1585_v25 = vpop.f32.mrf.mxu3  ;;  %v5642_v42 = vld [vmem:[#allocation16_spill] sm:$0xff]  ;;  %v1545_v11 = vpop.f32.mrf.mxu0 }
 0x17b   : > { %1447 = vst.msk [vmem:[#allocation2 + $0x2] ss:$8 sm:$0xf] %vm4585_vm7, %v1444_v49 }
 0x17d   : > { %2173 = vmatpush.bf16.msrb.mxu0 %v5581_v44  ;;  %2187 = vmatpush.bf16.msrb.mxu1 %v5633_v7  ;;  %v1559_v49 = vpop.f32.mrf.mxu1 }
 0x17e   : > { %2201 = vmatpush.bf16.msrb.mxu2 %v4259_v31  ;;  %2215 = vmatpush.bf16.msrb.mxu3 %v4261_v37  ;;  %v5650_v37 = vld [vmem:[#allocation24_spill] sm:$0xff] }
 0x17f   : > { %v1571_v21 = vpop.f32.mrf.mxu2 }
 0x180   : > { %3415 = vmatmul.msk.bf16.vlgmr.msrb.gmra.mxu0 %vm399_vm2, %v2162_v13  ;;  %3416 = vmatmul.msk.bf16.vlgmr.msrb.gmra.mxu1 %vm399_vm2, %v2162_v13 }
 0x181   : > { %2328 = vmatpush.bf16.msra.mxu0 %v3759_v18  ;;  %2342 = vmatpush.bf16.msra.mxu1 %v3762_v19  ;;  %v5648_v18 = vld [vmem:[#allocation22_spill] sm:$0xff] }
 0x182   : > { %2356 = vmatpush.bf16.msra.mxu2 %v5583_v23  ;;  %2370 = vmatpush.bf16.msra.mxu3 %v5634_v41  ;;  %v5645_v41 = vld [vmem:[#allocation19_spill] sm:$0xff]  ;;  %v2320_v23 = vrot.slane %v2318_v26, 1  ;;  %v1587_v19 = vpop.f32.mrf.mxu3 }
 0x183   : > { %3417 = vmatmul.msk.bf16.vlgmr.msrb.gmra.mxu2 %vm399_vm2, %v2162_v13  ;;  %3418 = vmatmul.msk.bf16.vlgmr.msrb.gmra.mxu3 %vm399_vm2, %v2162_v13  ;;  %v5641_v13 = vld [vmem:[#allocation15_spill] sm:$0xff] }
 0x185   : > { %2329 = vmatpush.bf16.msra.mxu0 %v5635_v3  ;;  %2343 = vmatpush.bf16.msra.mxu1 %v5636_v57  ;;  %v5643_v57 = vld [vmem:[#allocation17_spill] sm:$0xff]  ;;  %v2315_v3 = vrot.slane %v2313_v2, 1  ;;  %v5649_v2 = vld [vmem:[#allocation23_spill] sm:$0xff]  ;;  %v1623_v26 = vpop.f32.mrf.mxu1 }
 0x186   : > { %2357 = vmatpush.bf16.msra.mxu2 %v5638_v33  ;;  %2371 = vmatpush.bf16.msra.mxu3 %v5639_v15  ;;  %v2311_v33 = vshrl.u32 %v4851_v36, 16  ;;  %v5644_v15 = vld [vmem:[#allocation18_spill] sm:$0xff] }
 0x189   : > { %2330 = vmatpush.bf16.msra.mxu0 %v5640_v27  ;;  %2344 = vmatpush.bf16.msra.mxu1 %v5641_v13  ;;  %v5646_v27 = vld [vmem:[#allocation20_spill] sm:$0xff]  ;;  %v2316_v13 = vor.u32 %v2315_v3, %v2311_v33  ;;  %v5653_v3 = vld [vmem:[#allocation27_spill] sm:$0xff]  ;;  %v1609_v33 = vpop.f32.mrf.mxu0 }
 0x18a   : > { %2358 = vmatpush.bf16.msra.mxu2 %v5642_v42  ;;  %2372 = vmatpush.bf16.msra.mxu3 %v5643_v57  ;;  %v5647_v57 = vld [vmem:[#allocation21_spill] sm:$0xff]  ;;  %v1573_v42 = vpop.f32.mrf.mxu2 }
 0x18d   : > { %2331 = vmatpush.bf16.msra.mxu0 %v5644_v15  ;;  %2345 = vmatpush.bf16.msra.mxu1 %v5645_v41  ;;  %v2321_v15 = vsel %vm296_vm1, %v2316_v13, %v2320_v23  ;;  %v5651_v41 = vld [vmem:[#allocation25_spill] sm:$0xff]  ;;  %v4893_v23 = vld [vmem:[%s5414_s2] sm:$0xf]  ;;  %v1544_v13 = vadd.f32 %v1543_v52, %v4799_v6  ;;  %v1560_v6 = vadd.f32 %v1559_v49, %v4827_v53 }
 0x18e   : > { %2359 = vmatpush.bf16.msra.mxu2 %v5646_v27  ;;  %2373 = vmatpush.bf16.msra.mxu3 %v3873_v58  ;;  %v5652_v27 = vld [vmem:[#allocation26_spill] sm:$0xff]  ;;  %v1651_v52 = vpop.f32.mrf.mxu3  ;;  %v1586_v53 = vadd.f32 %v1585_v25, %v4820_v56  ;;  %v1668_v49 = vperm.slane %v4893_v23, 2  ;;  %v1574_v25 = vadd.f32 %v1573_v42, %v4836_v17 }
 0x191   : > { %2332 = vmatpush.bf16.msra.mxu0 %v3890_v0  ;;  %2346 = vmatpush.bf16.msra.mxu1 %v5647_v57  ;;  %v1546_v57 = vadd.f32 %v1545_v11, %v4825_v28 }
 0x192   : > { %2360 = vmatpush.bf16.msra.mxu2 %v5648_v18  ;;  %2374 = vmatpush.bf16.msra.mxu3 %v5649_v2  ;;  %v1667_v18 = vperm.slane %v4893_v23, 1 }
 0x194   : > { %3422 = vmatmul.msk.bf16.vlgmr.msra.gmra.mxu0 %vm399_vm2, %v2321_v15  ;;  %3423 = vmatmul.msk.bf16.vlgmr.msra.gmra.mxu1 %vm399_vm2, %v2321_v15 }
 0x195   : > { %2386 = vmatpush.bf16.msrb.mxu0 %v5650_v37  ;;  %2400 = vmatpush.bf16.msrb.mxu1 %v5651_v41  ;;  %v5655_v41 = vld [vmem:[#allocation29_spill] sm:$0xff]  ;;  %v1656_v37 = vadd.f32 %v1609_v33, %v1544_v13  ;;  %v5656_v33 = vld [vmem:[#allocation30_spill] sm:$0xff]  ;;  %v1611_v13 = vpop.f32.mrf.mxu0 }
 0x196   : > { %2414 = vmatpush.bf16.msrb.mxu2 %v5652_v27  ;;  %2428 = vmatpush.bf16.msrb.mxu3 %v5653_v3  ;;  %v1558_v27 = vadd.f32 %v1557_v34, %v4801_v22  ;;  %v5654_v3 = vld [vmem:[#allocation28_spill] sm:$0xff]  ;;  %v1637_v22 = vpop.f32.mrf.mxu2  ;;  %v1572_v34 = vadd.f32 %v1571_v21, %v4818_v10 }
 0x197   : > { %3424 = vmatmul.msk.bf16.vlgmr.msra.gmra.mxu2 %vm399_vm2, %v2321_v15  ;;  %3425 = vmatmul.msk.bf16.vlgmr.msra.gmra.mxu3 %vm399_vm2, %v2321_v15  ;;  %v1666_v15 = vperm.slane %v4893_v23, 0 }
 0x198   : > { %v1657_v2 = vadd.f32 %v1623_v26, %v1558_v27  ;;  %v1625_v27 = vpop.f32.mrf.mxu1  ;;  %v1658_v11 = vadd.f32 %v1637_v22, %v1572_v34 }
 0x199   : > { %2387 = vmatpush.bf16.msrb.mxu0 %v3955_v38  ;;  %2401 = vmatpush.bf16.msrb.mxu1 %v3957_v39  ;;  %v1674_v26 = vadd.f32 %v1666_v15, %v1656_v37  ;;  %v1661_v28 = vadd.f32 %v1625_v27, %v1560_v6  ;;  %v1669_v37 = vperm.slane %v4893_v23, 3 }
 0x19a   : > { %2415 = vmatpush.bf16.msrb.mxu2 %v5654_v3  ;;  %2429 = vmatpush.bf16.msrb.mxu3 %v5655_v41  ;;  %v1675_v41 = vadd.f32 %v1667_v18, %v1657_v2  ;;  %v1660_v3 = vadd.f32 %v1611_v13, %v1546_v57  ;;  %v1588_v13 = vadd.f32 %v1587_v19, %v4838_v62 }
 0x19b   : > { %v1679_v21 = vadd.f32 %v1667_v18, %v1661_v28  ;;  %v1682_v57 = vmax.f32 %v1674_v26, 0.0  ;;  %v1676_v22 = vadd.f32 %v1668_v49, %v1658_v11 }
 0x19c   : > { %v1678_v10 = vadd.f32 %v1666_v15, %v1660_v3  ;;  %v1683_v2 = vmax.f32 %v1675_v41, 0.0  ;;  %v1653_v3 = vpop.f32.mrf.mxu3 }
 0x19d   : > { %2388 = vmatpush.bf16.msrb.mxu0 %v3995_v59  ;;  %2402 = vmatpush.bf16.msrb.mxu1 %v3997_v60  ;;  %v1687_v56 = vmax.f32 %v1679_v21, 0.0  ;;  %v1663_v23 = vadd.f32 %v1653_v3, %v1588_v13  ;;  %v4927_v42 = vpop.f32.mrf.mxu0  ;;  %v1684_v26 = vmax.f32 %v1676_v22, 0.0 }
 0x19e   : > { %2416 = vmatpush.bf16.msrb.mxu2 %v4023_v12  ;;  %2430 = vmatpush.bf16.msrb.mxu3 %v5656_v33  ;;  %v1659_v33 = vadd.f32 %v1651_v52, %v1586_v53  ;;  %v1686_v6 = vmax.f32 %v1678_v10, 0.0  ;;  %v1639_v18 = vpop.f32.mrf.mxu2 }
 0x19f   : > { %v1697_v27 = vadd.f32 %v1687_v56, %v1683_v2  ;;  %v1662_v41 = vadd.f32 %v1639_v18, %v1574_v25  ;;  %v1681_v62 = vadd.f32 %v1669_v37, %v1663_v23  ;;  %v3531_v2 = vld [vmem:[%s3899_s17 + $0x48] sm:$0xf0] }
 0x1a0   : > { %v1690_v34 = vadd.f32 %v1686_v6, %v1682_v57  ;;  %v1677_v15 = vadd.f32 %v1669_v37, %v1659_v33  ;;  %v4929_v33 = vpop.f32.mrf.mxu1  ;;  %v3532_v6 = vld [vmem:[%s3899_s17 + $0x48] sm:$0xe] }
 0x1a1   : > { %2389 = vmatpush.bf16.msrb.mxu0 %v4035_v24  ;;  %2403 = vmatpush.bf16.msrb.mxu1 %v4037_v30  ;;  %v1698_v17 = vrot.slane %v1697_v27, 4  ;;  %v1680_v19 = vadd.f32 %v1668_v49, %v1662_v41  ;;  %v1689_v10 = vmax.f32 %v1681_v62, 0.0  ;;  %v4958_v62 = vld [vmem:[%s3899_s17 + $0x54] sm:$0xff]  }
 0x1a2   : > { %2417 = vmatpush.bf16.msrb.mxu2 %v4059_v47  ;;  %2431 = vmatpush.bf16.msrb.mxu3 %v4061_v48  ;;  %v1691_v52 = vrot.slane %v1690_v34, 4  ;;  %v1685_v53 = vmax.f32 %v1677_v15, 0.0 }
 0x1a3   : > { %v1699_v28 = vadd.f32 %v1698_v17, %v1697_v27  ;;  %v1688_v49 = vmax.f32 %v1680_v19, 0.0  ;;  %v3533_v27 = vor.u32 %v3532_v6, %v3531_v2  ;;  %v3437_v2 = vld [vmem:[%s3899_s17 + $0x5c] sm:$0x1] }
 0x1a4   : > { %v1692_v11 = vadd.f32 %v1691_v52, %v1690_v34  ;;  %v1711_v57 = vadd.f32 %v1689_v10, %v1685_v53  ;;  %v4949_v34 = vpop.f32.mrf.mxu3 }
 0x1a5   : > { %2390 = vmatpush.bf16.msrb.mxu0 %v4068_v54  ;;  %2404 = vmatpush.bf16.msrb.mxu1 %v4070_v55  ;;  %v1700_v21 = vrot.slane %v1699_v28, 2  ;;  %v1704_v37 = vadd.f32 %v1688_v49, %v1684_v26  ;;  %v4953_v41 = vpop.f32.mrf.mxu0  ;;  %v4961_v26 = vld [vmem:[%s3899_s17 + $0x54] sm:$0xf0] }
 0x1a6   : > { %2418 = vmatpush.bf16.msrb.mxu2 %v4095_v5  ;;  %2432 = vmatpush.bf16.msrb.mxu3 %v4097_v9  ;;  %v1693_v25 = vrot.slane %v1692_v11, 2  ;;  %v1712_v22 = vrot.slane %v1711_v57, 4 }
 0x1a7   : > { %v1701_v56 = vadd.f32 %v1700_v21, %v1699_v28  ;;  %v1705_v13 = vrot.slane %v1704_v37, 4  ;;  %v2443_v28 = vrot.slane %v3533_v27, 1  ;;  %v5657_v27 = vld [vmem:[#allocation47_spill] sm:$0xff] }
 0x1a8   : > { %3426 = vmatmul.msk.bf16.vlgmr.msrb.gmra.mxu0 %vm399_vm2, %v4851_v36  ;;  %3427 = vmatmul.msk.bf16.vlgmr.msrb.gmra.mxu1 %vm399_vm2, %v4851_v36  ;;  %v1713_v15 = vadd.f32 %v1712_v22, %v1711_v57  ;;  %v4955_v23 = vpop.f32.mrf.mxu1  ;;  %v1694_v52 = vadd.f32 %v1693_v25, %v1692_v11  ;;  %v2444_v11 = vrot.slane %v4864_v32, 1 }
 0x1a9   : > { %2452 = vmatpush.bf16.msra.mxu0 %v4082_v63  ;;  %2466 = vmatpush.bf16.msra.mxu1 %v4085_v1  ;;  %v1702_v18 = vrot.slane %v1701_v56, 1  ;;  %v1706_v3 = vadd.f32 %v1705_v13, %v1704_v37 }
 0x1aa   : > { %2480 = vmatpush.bf16.msra.mxu2 %v5571_v40  ;;  %2494 = vmatpush.bf16.msra.mxu3 %v5572_v45  ;;  %v1714_v19 = vrot.slane %v1713_v15, 2  ;;  %v1695_v21 = vrot.slane %v1694_v52, 1  ;;  %v2445_v32 = vsel %vm636_vm3, %v2443_v28, %v2444_v11  ;;  %v5662_v11 = vld [vmem:[#allocation10_spill] sm:$0xff] }
 0x1ab   : > { %3428 = vmatmul.msk.bf16.vlgmr.msrb.gmra.mxu2 %vm399_vm2, %v4851_v36  ;;  %3429 = vmatmul.msk.bf16.vlgmr.msrb.gmra.mxu3 %vm399_vm2, %v4851_v36  ;;  %v4947_v36 = vpop.f32.mrf.mxu2  ;;  %v1707_v17 = vrot.slane %v1706_v3, 2  ;;  %v1703_v53 = vadd.f32 %v1702_v18, %v1701_v56  ;;  %v5658_v18 = vld [vmem:[#allocation6_spill] sm:$0xff] }
 0x1ac   : > { %v1715_v10 = vadd.f32 %v1714_v19, %v1713_v15  ;;  %v4973_v25 = vpop.f32.mrf.mxu3  ;;  %v2590_v15 = vunpack.c.l.b16 %v3437_v2  ;;  %v5667_v2 = vld [vmem:[#allocation14_spill] sm:$0xff] }
 0x1ad   : > { %2453 = vmatpush.bf16.msra.mxu0 %v5573_v35  ;;  %2467 = vmatpush.bf16.msra.mxu1 %v5574_v20  ;;  %v1708_v49 = vadd.f32 %v1707_v17, %v1706_v3  ;;  %v1722_v56 = vrot.slane %v1703_v53, 7  ;;  %v5659_v3 = vld [vmem:[#allocation7_spill] sm:$0xff]  ;;  %v1696_v17 = vadd.f32 %v1695_v21, %v1694_v52  ;;  %v1826_v53 = vpop.f32.mrf.mxu0  ;;  %v5665_v21 = vld [vmem:[#allocation12_spill] sm:$0xff] }
 0x1ae   : > { %2481 = vmatpush.bf16.msra.mxu2 %v5575_v29  ;;  %2495 = vmatpush.bf16.msra.mxu3 %v5567_v46  ;;  %v1716_v57 = vrot.slane %v1715_v10, 1 }
 0x1af   : > { %v1709_v37 = vrot.slane %v1708_v49, 1  ;;  %v1725_v28 = vsel %vm870_vm4, %v1696_v17, %v1722_v56  ;;  %v5668_v56 = vld [vmem:[#allocation15_spill] sm:$0xff] }
 0x1b0   : > { %v1717_v22 = vadd.f32 %v1716_v57, %v1715_v10  ;;  %v4995_v57 = vpack.c.b16 %v2590_v15, %v2590_v15 }
 0x1b1   : > { %2454 = vmatpush.bf16.msra.mxu0 %v5601_v50  ;;  %2468 = vmatpush.bf16.msra.mxu1 %v5602_v61  ;;  %v1710_v13 = vadd.f32 %v1709_v37, %v1708_v49  ;;  %v1840_v49 = vpop.f32.mrf.mxu1  ;;  %v5666_v37 = vld [vmem:[#allocation13_spill] sm:$0xff] }
 0x1b2   : > { %2482 = vmatpush.bf16.msra.mxu2 %v5630_v8  ;;  %2496 = vmatpush.bf16.msra.mxu3 %v5631_v43  ;;  %v2601_v15 = vshll.u32 %v4995_v57, 16 }
 0x1b3   : > { %v4971_v6 = vpop.f32.mrf.mxu2  ;;  %v1723_v19 = vrot.slane %v1710_v13, 6 }
 0x1b5   : > { %2455 = vmatpush.bf16.msra.mxu0 %v5632_v4  ;;  %2469 = vmatpush.bf16.msra.mxu1 %v5607_v51 }
 0x1b6   : > { %2483 = vmatpush.bf16.msra.mxu2 %v5580_v16  ;;  %2497 = vmatpush.bf16.msra.mxu3 %v4225_v14  ;;  %v5661_v14 = vld [vmem:[#allocation9_spill] sm:$0xff] }
 0x1b9   : > { %2456 = vmatpush.bf16.msra.mxu0 %v5581_v44  ;;  %2470 = vmatpush.bf16.msra.mxu1 %v5633_v7  ;;  %v1724_v7 = vrot.slane %v1717_v22, 5  ;;  %v5660_v44 = vld [vmem:[#allocation8_spill] sm:$0xff]  ;;  %v1868_v22 = vpop.f32.mrf.mxu3  ;;  %v1842_v17 = vpop.f32.mrf.mxu1 }
 0x1ba   : > { %2484 = vmatpush.bf16.msra.mxu2 %v4259_v31  ;;  %2498 = vmatpush.bf16.msra.mxu3 %v5657_v27 }
 0x1bb   : > { %v1726_v10 = vsel %vm872_vm5, %v1723_v19, %v1724_v7  ;;  %v2596_v7 = vshll.u32 %v4958_v62, 16  ;;  %v1854_v13 = vpop.f32.mrf.mxu2  ;;  %v2594_v19 = vshrl.u32 %v4958_v62, 16 }
 0x1bc   : > { %3431 = vmatmul.msk.bf16.vlgmr.msra.gmra.mxu0 %vm399_vm2, %v2445_v32  ;;  %3432 = vmatmul.msk.bf16.vlgmr.msra.gmra.mxu1 %vm399_vm2, %v2445_v32  ;;  %v1727_v52 = vsel %vm874_vm6, %v1725_v28, %v1726_v10  ;;  %v5671_v10 = vld [vmem:[#allocation18_spill] sm:$0xff] }
 0x1bd   : > { %2611 = vmatpush.bf16.msrb.mxu0 %v5658_v18  ;;  %2625 = vmatpush.bf16.msrb.mxu1 %v5659_v3  ;;  %1730 = vst.msk [vmem:[#allocation2 + $0x3] ss:$8 sm:$0xf] %vm4585_vm7, %v1727_v52  ;;  %v5670_v18 = vld [vmem:[#allocation17_spill] sm:$0xff]  ;;  %v1828_v3 = vpop.f32.mrf.mxu0  ;;  %v2598_v28 = vrot.slane %v2596_v7, 1  ;;  %v5672_v52 = vld [vmem:[#allocation19_spill] sm:$0xff] }
 0x1be   : > { %2639 = vmatpush.bf16.msrb.mxu2 %v5660_v44  ;;  %2653 = vmatpush.bf16.msrb.mxu3 %v5661_v14  ;;  %v5663_v44 = vld [vmem:[#allocation11_spill] sm:$0xff] }
 0x1bf   : > { %3433 = vmatmul.msk.bf16.vlgmr.msra.gmra.mxu2 %vm399_vm2, %v2445_v32  ;;  %3434 = vmatmul.msk.bf16.vlgmr.msra.gmra.mxu3 %vm399_vm2, %v2445_v32  ;;  %v5669_v32 = vld [vmem:[#allocation16_spill] sm:$0xff]  ;;  %v5676_v7 = vld [vmem:[#allocation23_spill] sm:$0xff] }
 0x1c1   : > { %2612 = vmatpush.bf16.msrb.mxu0 %v5662_v11  ;;  %2626 = vmatpush.bf16.msrb.mxu1 %v5663_v44  ;;  %v5673_v11 = vld [vmem:[#allocation20_spill] sm:$0xff]  ;;  %v2599_v44 = vor.u32 %v2598_v28, %v2594_v19 }
 0x1c2   : > { %2640 = vmatpush.bf16.msrb.mxu2 %v5665_v21  ;;  %2654 = vmatpush.bf16.msrb.mxu3 %v5666_v37  ;;  %v2603_v21 = vrot.slane %v2601_v15, 1  ;;  %v5674_v37 = vld [vmem:[#allocation21_spill] sm:$0xff]  ;;  %v5024_v28 = vld [vmem:[%s5414_s2] sm:$0xf]  ;;  %v1827_v15 = vadd.f32 %v1826_v53, %v4927_v42  ;;  %v1843_v42 = vadd.f32 %v1842_v17, %v4955_v23  ;;  %v5683_v53 = vld [vmem:[#allocation30_spill] sm:$0xff]  ;;  %v1869_v23 = vadd.f32 %v1868_v22, %v4949_v34 }
 0x1c5   : > { %2613 = vmatpush.bf16.msrb.mxu0 %v5667_v2  ;;  %2627 = vmatpush.bf16.msrb.mxu1 %v5668_v56  ;;  %v1856_v2 = vpop.f32.mrf.mxu2  ;;  %v1870_v56 = vpop.f32.mrf.mxu3 }
 0x1c6   : > { %2641 = vmatpush.bf16.msrb.mxu2 %v5669_v32  ;;  %2655 = vmatpush.bf16.msrb.mxu3 %v5670_v18  ;;  %v5675_v32 = vld [vmem:[#allocation22_spill] sm:$0xff]  ;;  %v2604_v18 = vsel %vm296_vm1, %v2599_v44, %v2603_v21  ;;  %v1892_v19 = vpop.f32.mrf.mxu0  ;;  %v1841_v44 = vadd.f32 %v1840_v49, %v4929_v33  ;;  %v5681_v21 = vld [vmem:[#allocation28_spill] sm:$0xff]  ;;  %v1855_v33 = vadd.f32 %v1854_v13, %v4947_v36 }
 0x1c9   : > { %2614 = vmatpush.bf16.msrb.mxu0 %v5671_v10  ;;  %2628 = vmatpush.bf16.msrb.mxu1 %v5672_v52  ;;  %v5677_v10 = vld [vmem:[#allocation24_spill] sm:$0xff]  ;;  %v5678_v52 = vld [vmem:[#allocation25_spill] sm:$0xff] }
 0x1ca   : > { %2642 = vmatpush.bf16.msrb.mxu2 %v5673_v11  ;;  %2656 = vmatpush.bf16.msrb.mxu3 %v3873_v58  ;;  %v5679_v11 = vld [vmem:[#allocation26_spill] sm:$0xff]  ;;  %v5680_v58 = vld [vmem:[#allocation27_spill] sm:$0xff] }
 0x1cd   : > { %2615 = vmatpush.bf16.msrb.mxu0 %v3890_v0  ;;  %2629 = vmatpush.bf16.msrb.mxu1 %v5674_v37  ;;  %v1906_v0 = vpop.f32.mrf.mxu1  ;;  %v5682_v37 = vld [vmem:[#allocation29_spill] sm:$0xff] }
 0x1ce   : > { %2643 = vmatpush.bf16.msrb.mxu2 %v5675_v32  ;;  %2657 = vmatpush.bf16.msrb.mxu3 %v5676_v7  ;;  %v1939_v32 = vadd.f32 %v1892_v19, %v1827_v15  ;;  %v1949_v7 = vperm.slane %v5024_v28, 0  ;;  %v1894_v49 = vpop.f32.mrf.mxu0 }
 0x1d0   : > { %3439 = vmatmul.msk.bf16.vlgmr.msrb.gmra.mxu1 %vm399_vm2, %v2604_v18  ;;  %3438 = vmatmul.msk.bf16.vlgmr.msrb.gmra.mxu0 %vm399_vm2, %v2604_v18 }
 0x1d1   : > { %2669 = vmatpush.bf16.msra.mxu0 %v5677_v10  ;;  %2683 = vmatpush.bf16.msra.mxu1 %v5678_v52  ;;  %v1950_v10 = vperm.slane %v5024_v28, 1  ;;  %v1829_v52 = vadd.f32 %v1828_v3, %v4953_v41  ;;  %v1952_v3 = vperm.slane %v5024_v28, 3 }
 0x1d2   : > { %2697 = vmatpush.bf16.msra.mxu2 %v5679_v11  ;;  %2711 = vmatpush.bf16.msra.mxu3 %v5680_v58  ;;  %v1957_v58 = vadd.f32 %v1949_v7, %v1939_v32 }
 0x1d3   : > { %3440 = vmatmul.msk.bf16.vlgmr.msrb.gmra.mxu2 %vm399_vm2, %v2604_v18  ;;  %3441 = vmatmul.msk.bf16.vlgmr.msrb.gmra.mxu3 %vm399_vm2, %v2604_v18  ;;  %v1940_v18 = vadd.f32 %v1906_v0, %v1841_v44  ;;  %v1943_v0 = vadd.f32 %v1894_v49, %v1829_v52 }
 0x1d4   : > { %v1965_v17 = vmax.f32 %v1957_v58, 0.0 }
 0x1d5   : > { %2670 = vmatpush.bf16.msra.mxu0 %v3955_v38  ;;  %2684 = vmatpush.bf16.msra.mxu1 %v3957_v39  ;;  %v1920_v38 = vpop.f32.mrf.mxu2  ;;  %v1934_v39 = vpop.f32.mrf.mxu3  ;;  %v1958_v19 = vadd.f32 %v1950_v10, %v1940_v18  ;;  %v1961_v36 = vadd.f32 %v1949_v7, %v1943_v0 }
 0x1d6   : > { %2698 = vmatpush.bf16.msra.mxu2 %v5681_v21  ;;  %2712 = vmatpush.bf16.msra.mxu3 %v5682_v37  ;;  %v1908_v11 = vpop.f32.mrf.mxu1 }
 0x1d7   : > { %v1944_v41 = vadd.f32 %v1908_v11, %v1843_v42  ;;  %v1966_v15 = vmax.f32 %v1958_v19, 0.0  ;;  %v1969_v44 = vmax.f32 %v1961_v36, 0.0 }
 0x1d9   : > { %2671 = vmatpush.bf16.msra.mxu0 %v3995_v59  ;;  %2685 = vmatpush.bf16.msra.mxu1 %v3997_v60  ;;  %v1941_v59 = vadd.f32 %v1920_v38, %v1855_v33  ;;  %v1951_v60 = vperm.slane %v5024_v28, 2  ;;  %v1962_v13 = vadd.f32 %v1950_v10, %v1944_v41  ;;  %v1973_v21 = vadd.f32 %v1969_v44, %v1965_v17 }
 0x1da   : > { %2699 = vmatpush.bf16.msra.mxu2 %v4023_v12  ;;  %2713 = vmatpush.bf16.msra.mxu3 %v5683_v53  ;;  %v1942_v12 = vadd.f32 %v1934_v39, %v1869_v23 }
 0x1db   : > { %v1970_v34 = vmax.f32 %v1962_v13, 0.0  ;;  %v1959_v22 = vadd.f32 %v1951_v60, %v1941_v59  ;;  %v5685_v13 = vld [vmem:[#allocation45_spill] sm:$0xff] }
 0x1dc   : > { %v1960_v32 = vadd.f32 %v1952_v3, %v1942_v12  ;;  %v5686_v12 = vld [vmem:[#allocation46_spill] sm:$0xff] }
 0x1dd   : > { %2672 = vmatpush.bf16.msra.mxu0 %v4035_v24  ;;  %2686 = vmatpush.bf16.msra.mxu1 %v4037_v30  ;;  %v1857_v24 = vadd.f32 %v1856_v2, %v4971_v6  ;;  %v1871_v30 = vadd.f32 %v1870_v56, %v4973_v25  ;;  %v1980_v37 = vadd.f32 %v1970_v34, %v1966_v15  ;;  %v1974_v6 = vrot.slane %v1973_v21, 4  ;;  %v3585_v25 = vld [vmem:[%s3899_s17 + $0x54] sm:$0xe]  ;;  %s3018_s17 = scalar_lea.sflag [#allocation4], %s218_s22 }
 0x1de   : > { %2700 = vmatpush.bf16.msra.mxu2 %v4059_v47  ;;  %2714 = vmatpush.bf16.msra.mxu3 %v4061_v48  ;;  %v1922_v47 = vpop.f32.mrf.mxu2  ;;  %v1936_v48 = vpop.f32.mrf.mxu3  ;;  %v1967_v56 = vmax.f32 %v1959_v22, 0.0 }
 0x1df   : > { %v1945_v28 = vadd.f32 %v1922_v47, %v1857_v24  ;;  %v1946_v7 = vadd.f32 %v1936_v48, %v1871_v30  ;;  %v1981_v2 = vrot.slane %v1980_v37, 4 }
 0x1e1   : > { %2673 = vmatpush.bf16.msra.mxu0 %v4068_v54  ;;  %2687 = vmatpush.bf16.msra.mxu1 %v4070_v55  ;;  %v1963_v54 = vadd.f32 %v1951_v60, %v1945_v28  ;;  %v1964_v55 = vadd.f32 %v1952_v3, %v1946_v7  ;;  %v1982_v18 = vadd.f32 %v1981_v2, %v1980_v37  ;;  %v2230_v2 = vld [vmem:[%s5414_s2] sm:$0xf] }
 0x1e2   : > { %2701 = vmatpush.bf16.msra.mxu2 %v4095_v5  ;;  %2715 = vmatpush.bf16.msra.mxu3 %v4097_v9  ;;  %v5063_v5 = vpop.f32.mrf.mxu0  ;;  %v1975_v9 = vadd.f32 %v1974_v6, %v1973_v21 }
 0x1e3   : > { %v1983_v10 = vrot.slane %v1982_v18, 2 }
 0x1e4   : > { %3442 = vmatmul.msk.bf16.vlgmr.msra.gmra.mxu0 %vm399_vm2, %v4958_v62  ;;  %3443 = vmatmul.msk.bf16.vlgmr.msra.gmra.mxu1 %vm399_vm2, %v4958_v62  ;;  %v1976_v39 = vrot.slane %v1975_v9, 2 }
 0x1e5   : > { %2735 = vmatpush.bf16.msrb.mxu0 %v4082_v63  ;;  %2749 = vmatpush.bf16.msrb.mxu1 %v4085_v1  ;;  %v5065_v63 = vpop.f32.mrf.mxu1  ;;  %v1968_v1 = vmax.f32 %v1960_v32, 0.0  ;;  %v1984_v38 = vadd.f32 %v1983_v10, %v1982_v18 }
 0x1e6   : > { %2763 = vmatpush.bf16.msrb.mxu2 %v5571_v40  ;;  %2777 = vmatpush.bf16.msrb.mxu3 %v5572_v45  ;;  %v1971_v40 = vmax.f32 %v1963_v54, 0.0  ;;  %v1972_v45 = vmax.f32 %v1964_v55, 0.0  ;;  %v5075_v49 = vpop.f32.mrf.mxu2  ;;  %v1977_v19 = vadd.f32 %v1976_v39, %v1975_v9 }
 0x1e7   : > { %3444 = vmatmul.msk.bf16.vlgmr.msra.gmra.mxu2 %vm399_vm2, %v4958_v62  ;;  %3445 = vmatmul.msk.bf16.vlgmr.msra.gmra.mxu3 %vm399_vm2, %v4958_v62  ;;  %v5077_v62 = vpop.f32.mrf.mxu3 }
 0x1e8   : > { %v1987_v52 = vadd.f32 %v1971_v40, %v1967_v56  ;;  %v1994_v42 = vadd.f32 %v1972_v45, %v1968_v1  ;;  %v2232_v56 = vperm.slane %v2230_v2, 0  ;;  %v2233_v1 = vperm.slane %v2230_v2, 1 }
 0x1e9   : > { %2736 = vmatpush.bf16.msrb.mxu0 %v5573_v35  ;;  %2750 = vmatpush.bf16.msrb.mxu1 %v5574_v20  ;;  %v3586_v35 = vor.u32 %v3585_v25, %v4961_v26  ;;  %v1985_v20 = vrot.slane %v1984_v38, 1 }
 0x1ea   : > { %2764 = vmatpush.bf16.msrb.mxu2 %v5575_v29  ;;  %2778 = vmatpush.bf16.msrb.mxu3 %v5567_v46  ;;  %v1988_v33 = vrot.slane %v1987_v52, 4  ;;  %v1995_v53 = vrot.slane %v1994_v42, 4  ;;  %v2053_v46 = vpop.f32.mrf.mxu0 }
 0x1eb   : > { %v1986_v26 = vadd.f32 %v1985_v20, %v1984_v38 }
 0x1ec   : > { %v1989_v29 = vadd.f32 %v1988_v33, %v1987_v52  ;;  %v1996_v11 = vadd.f32 %v1995_v53, %v1994_v42 }
 0x1ed   : > { %2737 = vmatpush.bf16.msrb.mxu0 %v5601_v50  ;;  %2751 = vmatpush.bf16.msrb.mxu1 %v5602_v61  ;;  %v2067_v58 = vpop.f32.mrf.mxu1  ;;  %v2726_v50 = vrot.slane %v3586_v35, 1  ;;  %v2727_v61 = vrot.slane %v4995_v57, 1  ;;  %v2005_v17 = vrot.slane %v1986_v26, 7 }
 0x1ee   : > { %2765 = vmatpush.bf16.msrb.mxu2 %v5630_v8  ;;  %2779 = vmatpush.bf16.msrb.mxu3 %v5631_v43  ;;  %v1990_v0 = vrot.slane %v1989_v29, 2  ;;  %v1997_v41 = vrot.slane %v1996_v11, 2  ;;  %v5684_v8 = vld [vmem:[#allocation44_spill] sm:$0xff]  ;;  %v1978_v43 = vrot.slane %v1977_v19, 1 }
 0x1ef   : > { %v2095_v3 = vpop.f32.mrf.mxu3 }
 0x1f0   : > { %v1991_v23 = vadd.f32 %v1990_v0, %v1989_v29  ;;  %v1998_v59 = vadd.f32 %v1997_v41, %v1996_v11  ;;  %v2235_v0 = vperm.slane %v2230_v2, 3 }
 0x1f1   : > { %2738 = vmatpush.bf16.msrb.mxu0 %v5632_v4  ;;  %2752 = vmatpush.bf16.msrb.mxu1 %v5607_v51  ;;  %v2728_v4 = vsel %vm636_vm3, %v2726_v50, %v2727_v61  ;;  %v2081_v51 = vpop.f32.mrf.mxu2 }
 0x1f2   : > { %2766 = vmatpush.bf16.msrb.mxu2 %v5580_v16  ;;  %2780 = vmatpush.bf16.msrb.mxu3 %v5684_v8  ;;  %v1992_v60 = vrot.slane %v1991_v23, 1  ;;  %v1999_v36 = vrot.slane %v1998_v59, 1  ;;  %v1979_v16 = vadd.f32 %v1978_v43, %v1977_v19  ;;  %v2109_v24 = vpop.f32.mrf.mxu0 }
 0x1f3   : > { %v2110_v54 = vadd.f32 %v2109_v24, %v5063_v5 }
 0x1f4   : > { %v1993_v57 = vadd.f32 %v1992_v60, %v1991_v23  ;;  %v2000_v15 = vadd.f32 %v1999_v36, %v1998_v59  ;;  %v2008_v22 = vsel %vm870_vm4, %v1979_v16, %v2005_v17 }
 0x1f5   : > { %2739 = vmatpush.bf16.msrb.mxu0 %v5685_v13  ;;  %2753 = vmatpush.bf16.msrb.mxu1 %v5686_v12  ;;  %v2123_v30 = vpop.f32.mrf.mxu1 }
 0x1f6   : > { %2767 = vmatpush.bf16.msrb.mxu2 %v4259_v31  ;;  %2781 = vmatpush.bf16.msrb.mxu3 %v5657_v27  ;;  %v2006_v44 = vrot.slane %v1993_v57, 6  ;;  %v2007_v34 = vrot.slane %v2000_v15, 5  ;;  %v2124_v55 = vadd.f32 %v2123_v30, %v5065_v63  ;;  %v2234_v63 = vperm.slane %v2230_v2, 2 }
 0x1f7   : > { %v2151_v37 = vpop.f32.mrf.mxu3 }
 0x1f8   : > { %3447 = vmatmul.msk.bf16.vlgmr.msrb.gmra.mxu0 %vm399_vm2, %v2728_v4  ;;  %3448 = vmatmul.msk.bf16.vlgmr.msrb.gmra.mxu1 %vm399_vm2, %v2728_v4  ;;  %v2009_v21 = vsel %vm872_vm5, %v2006_v44, %v2007_v34  ;;  %v2152_v5 = vadd.f32 %v2151_v37, %v5077_v62 }
 0x1f9   : > { %3449 = vmatmul.msk.bf16.vlgmr.msrb.gmra.mxu2 %vm399_vm2, %v2728_v4  ;;  %3450 = vmatmul.msk.bf16.vlgmr.msrb.gmra.mxu3 %vm399_vm2, %v2728_v4  ;;  %v2010_v31 = vsel %vm874_vm6, %v2008_v22, %v2009_v21  ;;  %v2137_v27 = vpop.f32.mrf.mxu2 }
 0x1fa   : > { %2013 = vst.msk [vmem:[#allocation2 + $0x4] ss:$8 sm:$0xf] %vm4585_vm7, %v2010_v31  ;;  %v2111_v47 = vpop.f32.mrf.mxu0  ;;  %v2138_v52 = vadd.f32 %v2137_v27, %v5075_v49 }
 0x1fb   : > { %v2112_v9 = vadd.f32 %v2111_v47, %v2053_v46 }
 0x1fd   : > { %v2125_v48 = vpop.f32.mrf.mxu1 }
 0x1fe   : > { %v2126_v40 = vadd.f32 %v2125_v48, %v2067_v58 }
 0x1ff   : > { %v2153_v28 = vpop.f32.mrf.mxu3 }
 0x200   : > { %v2154_v49 = vadd.f32 %v2153_v28, %v2095_v3 }
 0x201   : > { %v2139_v32 = vpop.f32.mrf.mxu2 }
 0x202   : > { %v2175_v7 = vpop.f32.mrf.mxu0  ;;  %v2140_v61 = vadd.f32 %v2139_v32, %v2081_v51 }
 0x203   : > { %v2222_v25 = vadd.f32 %v2175_v7, %v2110_v54 }
 0x205   : > { %v2189_v6 = vpop.f32.mrf.mxu1  ;;  %v2240_v39 = vadd.f32 %v2232_v56, %v2222_v25 }
 0x206   : > { %v2223_v18 = vadd.f32 %v2189_v6, %v2124_v55 }
 0x207   : > { %v2217_v10 = vpop.f32.mrf.mxu3  ;;  %v2248_v46 = vmax.f32 %v2240_v39, 0.0 }
 0x208   : > { %v2241_v33 = vadd.f32 %v2233_v1, %v2223_v18  ;;  %v2225_v19 = vadd.f32 %v2217_v10, %v2152_v5 }
 0x209   : > { %v2203_v45 = vpop.f32.mrf.mxu2 }
 0x20a   : > { %v2177_v42 = vpop.f32.mrf.mxu0  ;;  %v2224_v20 = vadd.f32 %v2203_v45, %v2138_v52  ;;  %v2249_v58 = vmax.f32 %v2241_v33, 0.0  ;;  %v2243_v60 = vadd.f32 %v2235_v0, %v2225_v19 }
 0x20b   : > { %v2226_v53 = vadd.f32 %v2177_v42, %v2112_v9 }
 0x20c   : > { %v2242_v26 = vadd.f32 %v2234_v63, %v2224_v20  ;;  %v2251_v34 = vmax.f32 %v2243_v60, 0.0 }
 0x20d   : > { %v2191_v38 = vpop.f32.mrf.mxu1  ;;  %v2244_v29 = vadd.f32 %v2232_v56, %v2226_v53 }
 0x20e   : > { %v2227_v35 = vadd.f32 %v2191_v38, %v2126_v40  ;;  %v2250_v57 = vmax.f32 %v2242_v26, 0.0 }
 0x20f   : > { %v2252_v41 = vmax.f32 %v2244_v29, 0.0  ;;  %v2219_v43 = vpop.f32.mrf.mxu3 }
 0x210   : > { %v2245_v11 = vadd.f32 %v2233_v1, %v2227_v35  ;;  %v2229_v62 = vadd.f32 %v2219_v43, %v2154_v49 }
 0x211   : > { %v2256_v23 = vadd.f32 %v2252_v41, %v2248_v46  ;;  %v2205_v8 = vpop.f32.mrf.mxu2 }
 0x212   : > { %v2253_v50 = vmax.f32 %v2245_v11, 0.0  ;;  %v2228_v36 = vadd.f32 %v2205_v8, %v2140_v61  ;;  %v2247_v17 = vadd.f32 %v2235_v0, %v2229_v62  ;;  %v2334_v16 = vpop.f32.mrf.mxu0 }
 0x213   : > { %v2257_v13 = vrot.slane %v2256_v23, 4 }
 0x214   : > { %v2263_v59 = vadd.f32 %v2253_v50, %v2249_v58  ;;  %v2246_v4 = vadd.f32 %v2234_v63, %v2228_v36  ;;  %v2255_v3 = vmax.f32 %v2247_v17, 0.0 }
 0x215   : > { %v2348_v44 = vpop.f32.mrf.mxu1  ;;  %v2258_v24 = vadd.f32 %v2257_v13, %v2256_v23  ;;  %v2513_v23 = vld [vmem:[%s5414_s2] sm:$0xf] }
 0x216   : > { %v2264_v12 = vrot.slane %v2263_v59, 4  ;;  %v2254_v51 = vmax.f32 %v2246_v4, 0.0  ;;  %v2277_v21 = vadd.f32 %v2255_v3, %v2251_v34  ;;  %v2515_v60 = vperm.slane %v2513_v23, 0 }
 0x217   : > { %v2259_v27 = vrot.slane %v2258_v24, 2  ;;  %v2516_v62 = vperm.slane %v2513_v23, 1 }
 0x218   : > { %v2265_v15 = vadd.f32 %v2264_v12, %v2263_v59  ;;  %v2270_v22 = vadd.f32 %v2254_v51, %v2250_v57  ;;  %v2278_v47 = vrot.slane %v2277_v21, 4 }
 0x219   : > { %v2260_v55 = vadd.f32 %v2259_v27, %v2258_v24 }
 0x21a   : > { %v2266_v30 = vrot.slane %v2265_v15, 2  ;;  %v2271_v37 = vrot.slane %v2270_v22, 4  ;;  %v2362_v48 = vpop.f32.mrf.mxu2  ;;  %v2376_v32 = vpop.f32.mrf.mxu3  ;;  %v2279_v6 = vadd.f32 %v2278_v47, %v2277_v21 }
 0x21b   : > { %v2336_v2 = vpop.f32.mrf.mxu0  ;;  %v2261_v40 = vrot.slane %v2260_v55, 1 }
 0x21c   : > { %v2267_v31 = vadd.f32 %v2266_v30, %v2265_v15  ;;  %v2272_v7 = vadd.f32 %v2271_v37, %v2270_v22  ;;  %v2280_v56 = vrot.slane %v2279_v6, 2  ;;  %v2518_v37 = vperm.slane %v2513_v23, 3 }
 0x21d   : > { %v2350_v54 = vpop.f32.mrf.mxu1  ;;  %v2262_v53 = vadd.f32 %v2261_v40, %v2260_v55 }
 0x21e   : > { %v2268_v28 = vrot.slane %v2267_v31, 1  ;;  %v2273_v25 = vrot.slane %v2272_v7, 2  ;;  %v2281_v9 = vadd.f32 %v2280_v56, %v2279_v6 }
 0x220   : > { %v2269_v18 = vadd.f32 %v2268_v28, %v2267_v31  ;;  %v2274_v1 = vadd.f32 %v2273_v25, %v2272_v7  ;;  %v2282_v10 = vrot.slane %v2281_v9, 1  ;;  %v2517_v31 = vperm.slane %v2513_v23, 2 }
 0x222   : > { %v2275_v45 = vrot.slane %v2274_v1, 1  ;;  %v2364_v52 = vpop.f32.mrf.mxu2  ;;  %v2378_v42 = vpop.f32.mrf.mxu3  ;;  %v2288_v38 = vrot.slane %v2269_v18, 7  ;;  %v2283_v33 = vadd.f32 %v2282_v10, %v2281_v9 }
 0x224   : > { %v2276_v39 = vadd.f32 %v2275_v45, %v2274_v1  ;;  %v2290_v5 = vrot.slane %v2283_v33, 5  ;;  %v2291_v29 = vsel %vm870_vm4, %v2262_v53, %v2288_v38 }
 0x225   : > { %v2392_v20 = vpop.f32.mrf.mxu0  ;;  %v2406_v63 = vpop.f32.mrf.mxu1 }
 0x226   : > { %v2289_v35 = vrot.slane %v2276_v39, 6  ;;  %v2393_v59 = vadd.f32 %v2392_v20, %v2334_v16  ;;  %v2407_v8 = vadd.f32 %v2406_v63, %v2348_v44 }
 0x228   : > { %v2292_v11 = vsel %vm872_vm5, %v2289_v35, %v2290_v5 }
 0x229   : > { %v2293_v19 = vsel %vm874_vm6, %v2291_v29, %v2292_v11 }
 0x22a   : > { %2296 = vst.msk [vmem:[#allocation2 + $0x5] ss:$8 sm:$0xf] %vm4585_vm7, %v2293_v19 }
 0x22d   : > { %v2394_v58 = vpop.f32.mrf.mxu0  ;;  %v2408_v41 = vpop.f32.mrf.mxu1 }
 0x22e   : > { %v2420_v0 = vpop.f32.mrf.mxu2  ;;  %v2434_v46 = vpop.f32.mrf.mxu3  ;;  %v2395_v13 = vadd.f32 %v2394_v58, %v2336_v2  ;;  %v2409_v12 = vadd.f32 %v2408_v41, %v2350_v54 }
 0x22f   : > { %v2421_v57 = vadd.f32 %v2420_v0, %v2362_v48  ;;  %v2435_v22 = vadd.f32 %v2434_v46, %v2376_v32 }
 0x236   : > { %v2422_v50 = vpop.f32.mrf.mxu2  ;;  %v2436_v61 = vpop.f32.mrf.mxu3 }
 0x237   : > { %v2423_v2 = vadd.f32 %v2422_v50, %v2364_v52  ;;  %v2437_v54 = vadd.f32 %v2436_v61, %v2378_v42 }
 0x239   : > { %v2458_v49 = vpop.f32.mrf.mxu0  ;;  %v2472_v26 = vpop.f32.mrf.mxu1 }
 0x23a   : > { %v2505_v43 = vadd.f32 %v2458_v49, %v2393_v59  ;;  %v2506_v36 = vadd.f32 %v2472_v26, %v2407_v8 }
 0x23c   : > { %v2523_v24 = vadd.f32 %v2515_v60, %v2505_v43  ;;  %v2524_v51 = vadd.f32 %v2516_v62, %v2506_v36 }
 0x23e   : > { %v2531_v47 = vmax.f32 %v2523_v24, 0.0  ;;  %v2532_v28 = vmax.f32 %v2524_v51, 0.0 }
 0x241   : > { %v2460_v15 = vpop.f32.mrf.mxu0  ;;  %v2474_v34 = vpop.f32.mrf.mxu1 }
 0x242   : > { %v2486_v4 = vpop.f32.mrf.mxu2  ;;  %v2500_v17 = vpop.f32.mrf.mxu3  ;;  %v2509_v3 = vadd.f32 %v2460_v15, %v2395_v13  ;;  %v2510_v30 = vadd.f32 %v2474_v34, %v2409_v12 }
 0x243   : > { %v2507_v21 = vadd.f32 %v2486_v4, %v2421_v57  ;;  %v2508_v27 = vadd.f32 %v2500_v17, %v2435_v22 }
 0x244   : > { %v2527_v16 = vadd.f32 %v2515_v60, %v2509_v3  ;;  %v2528_v44 = vadd.f32 %v2516_v62, %v2510_v30 }
 0x245   : > { %v2525_v48 = vadd.f32 %v2517_v31, %v2507_v21  ;;  %v2526_v1 = vadd.f32 %v2518_v37, %v2508_v27  ;;  %v2915_v27 = vld [vmem:[%s5415_s3 + $0x178] sm:$0xff] }
 0x246   : > { %v2535_v7 = vmax.f32 %v2527_v16, 0.0  ;;  %v2536_v6 = vmax.f32 %v2528_v44, 0.0  ;;  %v2883_v16 = vld [vmem:[%s5415_s3 + $0x78] sm:$0xff]  ;;  %2976 = vmatpush.msra.mxu2 %v2915_v27  ;;  %v2889_v27 = vld [vmem:[%s5415_s3 + $0xa8] sm:$0xff] }
 0x247   : > { %v2533_v33 = vmax.f32 %v2525_v48, 0.0  ;;  %v2534_v52 = vmax.f32 %v2526_v1, 0.0  ;;  %v2899_v44 = vld [vmem:[%s5415_s3 + $0xf8] sm:$0xff]  ;;  %2936 = vmatpush.msra.mxu0 %v2883_v16  ;;  %v2930_v48 = vld [vmem:[%s5415_s3 + $0x1f0] sm:$0xff] }
 0x248   : > { %v2539_v55 = vadd.f32 %v2535_v7, %v2531_v47  ;;  %v2546_v25 = vadd.f32 %v2536_v6, %v2532_v28  ;;  %2956 = vmatpush.msra.mxu1 %v2899_v44  ;;  %v2931_v28 = vld [vmem:[%s5415_s3 + $0x1f8] sm:$0xff]  ;;  %v2882_v6 = vld [vmem:[%s5415_s3 + $0x70] sm:$0xff]  ;;  %v2873_v44 = vld [vmem:[%s5415_s3 + $0x28] sm:$0xff] }
 0x249   : > { %2996 = vmatpush.msra.mxu3 %v2931_v28  ;;  %2937 = vmatpush.msra.mxu0 %v2882_v6  ;;  %v2872_v28 = vld [vmem:[%s5415_s3 + $0x20] sm:$0xff] }
 0x24a   : > { %v2488_v56 = vpop.f32.mrf.mxu2  ;;  %v2502_v18 = vpop.f32.mrf.mxu3  ;;  %v2540_v40 = vrot.slane %v2539_v55, 4  ;;  %v2547_v45 = vrot.slane %v2546_v25, 4  ;;  %v2904_v6 = vld [vmem:[%s5415_s3 + $0x120] sm:$0xff] }
 0x24b   : > { %v2511_v9 = vadd.f32 %v2488_v56, %v2423_v2  ;;  %v2512_v32 = vadd.f32 %v2502_v18, %v2437_v54  ;;  %v2898_v2 = vld [vmem:[%s5415_s3 + $0xf0] sm:$0xff]  ;;  %2997 = vmatpush.msra.mxu3 %v2930_v48  ;;  %v2913_v56 = vld [vmem:[%s5415_s3 + $0x168] sm:$0xff] }
 0x24c   : > { %v2548_v53 = vadd.f32 %v2547_v45, %v2546_v25  ;;  %v2541_v42 = vadd.f32 %v2540_v40, %v2539_v55  ;;  %v2914_v54 = vld [vmem:[%s5415_s3 + $0x170] sm:$0xff]  ;;  %2957 = vmatpush.msra.mxu1 %v2898_v2  ;;  %v2881_v55 = vld [vmem:[%s5415_s3 + $0x68] sm:$0xff]  ;;  %v2896_v40 = vld [vmem:[%s5415_s3 + $0xe0] sm:$0xff] }
 0x24d   : > { %v2529_v10 = vadd.f32 %v2517_v31, %v2511_v9  ;;  %v2530_v38 = vadd.f32 %v2518_v37, %v2512_v32  ;;  %v5118_v39 = vpop.f32.mrf.mxu1  ;;  %v5120_v35 = vpop.f32.mrf.mxu0  ;;  %2977 = vmatpush.msra.mxu2 %v2914_v54  ;;  %v2897_v25 = vld [vmem:[%s5415_s3 + $0xe8] sm:$0xff]  ;;  %2938 = vmatpush.msra.mxu0 %v2881_v55  ;;  %v2880_v32 = vld [vmem:[%s5415_s3 + $0x60] sm:$0xff] }
 0x24e   : > { %v2549_v63 = vrot.slane %v2548_v53, 2  ;;  %v2542_v0 = vrot.slane %v2541_v42, 2  ;;  %2958 = vmatpush.msra.mxu1 %v2897_v25  ;;  %v2929_v18 = vld [vmem:[%s5415_s3 + $0x1e8] sm:$0xff]  ;;  %v2912_v45 = vld [vmem:[%s5415_s3 + $0x160] sm:$0xff] }
 0x24f   : > { %v2537_v5 = vmax.f32 %v2529_v10, 0.0  ;;  %v2538_v20 = vmax.f32 %v2530_v38, 0.0  ;;  %2978 = vmatpush.msra.mxu2 %v2913_v56  ;;  %2998 = vmatpush.msra.mxu3 %v2929_v18  ;;  %v2920_v25 = vld [vmem:[%s5415_s3 + $0x1a0] sm:$0xff] }
 0x250   : > { %v2550_v19 = vadd.f32 %v2549_v63, %v2548_v53  ;;  %v2543_v8 = vadd.f32 %v2542_v0, %v2541_v42  ;;  %2939 = vmatpush.msra.mxu0 %v2880_v32  ;;  %2959 = vmatpush.msra.mxu1 %v2896_v40  ;;  %v2879_v53 = vld [vmem:[%s5415_s3 + $0x58] sm:$0xff]  ;;  %v2894_v63 = vld [vmem:[%s5415_s3 + $0xd0] sm:$0xff]  ;;  %v2893_v0 = vld [vmem:[%s5415_s3 + $0xc8] sm:$0xff] }
 0x251   : > { %v2553_v29 = vadd.f32 %v2537_v5, %v2533_v33  ;;  %v2560_v11 = vadd.f32 %v2538_v20, %v2534_v52  ;;  %v2928_v33 = vld [vmem:[%s5415_s3 + $0x1e0] sm:$0xff]  ;;  %2979 = vmatpush.msra.mxu2 %v2912_v45  ;;  %v2895_v52 = vld [vmem:[%s5415_s3 + $0xd8] sm:$0xff]  ;;  %v2878_v20 = vld [vmem:[%s5415_s3 + $0x50] sm:$0xff] }
 0x252   : > { %v2551_v61 = vrot.slane %v2550_v19, 1  ;;  %v2544_v12 = vrot.slane %v2543_v8, 1  ;;  %2999 = vmatpush.msra.mxu3 %v2928_v33  ;;  %v2911_v42 = vld [vmem:[%s5415_s3 + $0x158] sm:$0xff]  ;;  %2940 = vmatpush.msra.mxu0 %v2879_v53  ;;  %v2870_v33 = vld [vmem:[%s5415_s3 + $0x10] sm:$0xff] }
 0x253   : > { %v2554_v46 = vrot.slane %v2553_v29, 4  ;;  %v2561_v58 = vrot.slane %v2560_v11, 4  ;;  %2960 = vmatpush.msra.mxu1 %v2895_v52  ;;  %v2927_v5 = vld [vmem:[%s5415_s3 + $0x1d8] sm:$0xff]  ;;  %2980 = vmatpush.msra.mxu2 %v2911_v42  ;;  %v2886_v53 = vld [vmem:[%s5415_s3 + $0x90] sm:$0xff] }
 0x254   : > { %v2552_v36 = vadd.f32 %v2551_v61, %v2550_v19  ;;  %v2545_v3 = vadd.f32 %v2544_v12, %v2543_v8  ;;  %3000 = vmatpush.msra.mxu3 %v2927_v5  ;;  %2941 = vmatpush.msra.mxu0 %v2878_v20  ;;  %v2877_v19 = vld [vmem:[%s5415_s3 + $0x48] sm:$0xff]  ;;  %v2892_v8 = vld [vmem:[%s5415_s3 + $0xc0] sm:$0xff]  ;;  %v2891_v12 = vld [vmem:[%s5415_s3 + $0xb8] sm:$0xff] }
 0x255   : > { %v2555_v49 = vadd.f32 %v2554_v46, %v2553_v29  ;;  %v2562_v26 = vadd.f32 %v2561_v58, %v2560_v11  ;;  %v5126_v23 = vpop.f32.mrf.mxu1  ;;  %v5128_v59 = vpop.f32.mrf.mxu0  ;;  %v2910_v29 = vld [vmem:[%s5415_s3 + $0x150] sm:$0xff]  ;;  %2961 = vmatpush.msra.mxu1 %v2894_v63  ;;  %v2909_v46 = vld [vmem:[%s5415_s3 + $0x148] sm:$0xff]  ;;  %v2903_v45 = vld [vmem:[%s5415_s3 + $0x118] sm:$0xff] }
 0x256   : > { %v5122_v41 = vpop.f32.mrf.mxu2  ;;  %v5124_v50 = vpop.f32.mrf.mxu3  ;;  %v2571_v34 = vrot.slane %v2552_v36, 7  ;;  %v2926_v11 = vld [vmem:[%s5415_s3 + $0x1d0] sm:$0xff]  ;;  %2981 = vmatpush.msra.mxu2 %v2910_v29  ;;  %2942 = vmatpush.msra.mxu0 %v2877_v19  ;;  %v2925_v58 = vld [vmem:[%s5415_s3 + $0x1c8] sm:$0xff] }
 0x257   : > { %v2556_v43 = vrot.slane %v2555_v49, 2  ;;  %v2563_v60 = vrot.slane %v2562_v26, 2  ;;  %3001 = vmatpush.msra.mxu3 %v2926_v11  ;;  %2962 = vmatpush.msra.mxu1 %v2893_v0  ;;  %v2902_v42 = vld [vmem:[%s5415_s3 + $0x110] sm:$0xff]  ;;  %v2869_v20 = vld [vmem:[%s5415_s3 + $0x8] sm:$0xff] }
 0x258   : > { %v2574_v37 = vsel %vm870_vm4, %v2545_v3, %v2571_v34  ;;  %2982 = vmatpush.msra.mxu2 %v2909_v46  ;;  %v2923_v34 = vld [vmem:[%s5415_s3 + $0x1b8] sm:$0xff]  ;;  %v2890_v3 = vld [vmem:[%s5415_s3 + $0xb0] sm:$0xff]  ;;  %v2917_v0 = vld [vmem:[%s5415_s3 + $0x188] sm:$0xff] }
 0x259   : > { %v2557_v62 = vadd.f32 %v2556_v43, %v2555_v49  ;;  %v2564_v13 = vadd.f32 %v2563_v60, %v2562_v26  ;;  %3002 = vmatpush.msra.mxu3 %v2925_v58  ;;  %v2876_v26 = vld [vmem:[%s5415_s3 + $0x40] sm:$0xff]  ;;  %2963 = vmatpush.msra.mxu1 %v2892_v8  ;;  %v2918_v5 = vld [vmem:[%s5415_s3 + $0x190] sm:$0xff] }
 0x25a   : > { %v2908_v43 = vld [vmem:[%s5415_s3 + $0x140] sm:$0xff]  ;;  %2943 = vmatpush.msra.mxu0 %v2876_v26 }
 0x25b   : > { %v2558_v4 = vrot.slane %v2557_v62, 1  ;;  %v2565_v17 = vrot.slane %v2564_v13, 1  ;;  %v2924_v60 = vld [vmem:[%s5415_s3 + $0x1c0] sm:$0xff]  ;;  %2983 = vmatpush.msra.mxu2 %v2908_v43  ;;  %2964 = vmatpush.msra.mxu1 %v2891_v12 }
 0x25c   : > { %3003 = vmatpush.msra.mxu3 %v2924_v60  ;;  %v2868_v26 = vld [vmem:[%s5415_s3] sm:$0xff] }
 0x25d   : > { %v2559_v24 = vadd.f32 %v2558_v4, %v2557_v62  ;;  %v2566_v51 = vadd.f32 %v2565_v17, %v2564_v13  ;;  %v2875_v13 = vld [vmem:[%s5415_s3 + $0x38] sm:$0xff]  ;;  %v5263_v17 = vld [vmem:[%s5414_s2] sm:$0xf]  ;;  %2965 = vmatpush.msra.mxu1 %v2890_v3 }
 0x25e   : > { %v5130_v57 = vpop.f32.mrf.mxu2  ;;  %v5132_v15 = vpop.f32.mrf.mxu3  ;;  %v2907_v4 = vld [vmem:[%s5415_s3 + $0x138] sm:$0xff]  ;;  %2944 = vmatpush.msra.mxu0 %v2875_v13  ;;  %3004 = vmatpush.msra.mxu3 %v2923_v34  ;;  %v2798_v16 = vperm.slane %v5263_v17, 0  ;;  %v2800_v29 = vperm.slane %v5263_v17, 2  ;;  %v2801_v58 = vperm.slane %v5263_v17, 3  ;;  %v2884_v8 = vld [vmem:[%s5415_s3 + $0x80] sm:$0xff] }
 0x25f   : > { %v2572_v30 = vrot.slane %v2559_v24, 6  ;;  %v2573_v22 = vrot.slane %v2566_v51, 5  ;;  %2984 = vmatpush.msra.mxu2 %v2907_v4  ;;  %v2874_v51 = vld [vmem:[%s5415_s3 + $0x30] sm:$0xff]  ;;  %2966 = vmatpush.msra.mxu1 %v2889_v27  ;;  %v2900_v13 = vld [vmem:[%s5415_s3 + $0x100] sm:$0xff] }
 0x260   : > { %2945 = vmatpush.msra.mxu0 %v2874_v51  ;;  %v2916_v12 = vld [vmem:[%s5415_s3 + $0x180] sm:$0xff] }
 0x261   : > { %v5134_v21 = vpop.f32.mrf.mxu0  ;;  %v5136_v31 = vpop.f32.mrf.mxu1  ;;  %v2575_v47 = vsel %vm872_vm5, %v2572_v30, %v2573_v22  ;;  %v2906_v30 = vld [vmem:[%s5415_s3 + $0x130] sm:$0xff] }
 0x262   : > { %v2576_v7 = vsel %vm874_vm6, %v2574_v37, %v2575_v47  ;;  %v2676_v24 = vadd.f32 %v5134_v21, %v5120_v35  ;;  %v2690_v22 = vadd.f32 %v5136_v31, %v5118_v39  ;;  %v2922_v35 = vld [vmem:[%s5415_s3 + $0x1b0] sm:$0xff]  ;;  %2985 = vmatpush.msra.mxu2 %v2906_v30  ;;  %v2905_v39 = vld [vmem:[%s5415_s3 + $0x128] sm:$0xff]  ;;  %v2799_v37 = vperm.slane %v5263_v17, 1  ;;  %2946 = vmatpush.msra.mxu0 %v2873_v44 }
 0x263   : > { %2579 = vst.msk [vmem:[#allocation2 + $0x6] ss:$8 sm:$0xf] %vm4585_vm7, %v2576_v7  ;;  %3005 = vmatpush.msra.mxu3 %v2922_v35  ;;  %v2921_v47 = vld [vmem:[%s5415_s3 + $0x1a8] sm:$0xff]  ;;  %v2888_v7 = vld [vmem:[%s5415_s3 + $0xa0] sm:$0xff] }
 0x264   : > { %2986 = vmatpush.msra.mxu2 %v2905_v39  ;;  %2947 = vmatpush.msra.mxu0 %v2872_v28 }
 0x265   : > { %3006 = vmatpush.msra.mxu3 %v2921_v47  ;;  %2967 = vmatpush.msra.mxu1 %v2888_v7 }
 0x266   : > { %2987 = vmatpush.msra.mxu2 %v2904_v6 }
 0x267   : > { %3007 = vmatpush.msra.mxu3 %v2920_v25 }
 0x268   : > { %2988 = vmatpush.msra.mxu2 %v2903_v45 }
 0x269   : > { %v5192_v10 = vpop.f32.mrf.mxu0  ;;  %v5194_v38 = vpop.f32.mrf.mxu1 }
 0x26a   : > { %v5179_v1 = vpop.f32.mrf.mxu2  ;;  %v5181_v9 = vpop.f32.mrf.mxu3  ;;  %v2678_v2 = vadd.f32 %v5192_v10, %v5128_v59  ;;  %v2692_v54 = vadd.f32 %v5194_v38, %v5126_v23  ;;  %v2871_v23 = vld [vmem:[%s5415_s3 + $0x18] sm:$0xff]  ;;  %2989 = vmatpush.msra.mxu2 %v2902_v42 }
 0x26b   : > { %v2704_v56 = vadd.f32 %v5179_v1, %v5122_v41  ;;  %v2887_v59 = vld [vmem:[%s5415_s3 + $0x98] sm:$0xff]  ;;  %2948 = vmatpush.msra.mxu0 %v2871_v23  ;;  %v2718_v52 = vadd.f32 %v5181_v9, %v5124_v50  ;;  %v2885_v50 = vld [vmem:[%s5415_s3 + $0x88] sm:$0xff] }
 0x26c   : > { %2968 = vmatpush.msra.mxu1 %v2887_v59  ;;  %v2919_v1 = vld [vmem:[%s5415_s3 + $0x198] sm:$0xff]  ;;  %v2901_v9 = vld [vmem:[%s5415_s3 + $0x108] sm:$0xff] }
 0x26d   : > { %3008 = vmatpush.msra.mxu3 %v2919_v1  ;;  %2949 = vmatpush.msra.mxu0 %v2870_v33 }
 0x26e   : > { %2969 = vmatpush.msra.mxu1 %v2886_v53  ;;  %2990 = vmatpush.msra.mxu2 %v2901_v9 }
 0x26f   : > { %3009 = vmatpush.msra.mxu3 %v2918_v5  ;;  %2950 = vmatpush.msra.mxu0 %v2869_v20 }
 0x270   : > { %2970 = vmatpush.msra.mxu1 %v2885_v50  ;;  %2991 = vmatpush.msra.mxu2 %v2900_v13 }
 0x271   : > { %3010 = vmatpush.msra.mxu3 %v2917_v0  ;;  %2951 = vmatpush.msra.mxu0 %v2868_v26  ;;  %v3574_v0 = vld [vmem:[%s5416_s4] ss:$0 sm:$0xff] }
 0x272   : > { %v5235_v61 = vpop.f32.mrf.mxu2  ;;  %v5237_v49 = vpop.f32.mrf.mxu3  ;;  %2971 = vmatpush.msra.mxu1 %v2884_v8 }
 0x273   : > { %v2706_v4 = vadd.f32 %v5235_v61, %v5130_v57  ;;  %v2720_v17 = vadd.f32 %v5237_v49, %v5132_v15  ;;  %3011 = vmatpush.msra.mxu3 %v2916_v12 }
 0x275   : > { %v2741_v36 = vpop.f32.mrf.mxu0  ;;  %v2755_v62 = vpop.f32.mrf.mxu1 }
 0x276   : > { %v2788_v21 = vadd.f32 %v2741_v36, %v2676_v24  ;;  %v2789_v31 = vadd.f32 %v2755_v62, %v2690_v22 }
 0x278   : > { %v2806_v18 = vadd.f32 %v2798_v16, %v2788_v21  ;;  %v2807_v10 = vadd.f32 %v2799_v37, %v2789_v31 }
 0x27a   : > { %v2814_v43 = vmax.f32 %v2806_v18, 0.0  ;;  %v2815_v60 = vmax.f32 %v2807_v10, 0.0 }
 0x27c   : > { %v2769_v48 = vpop.f32.mrf.mxu2  ;;  %v2783_v55 = vpop.f32.mrf.mxu3 }
 0x27d   : > { %v2743_v32 = vpop.f32.mrf.mxu0  ;;  %v2757_v40 = vpop.f32.mrf.mxu1  ;;  %v2790_v63 = vadd.f32 %v2769_v48, %v2704_v56  ;;  %v2791_v46 = vadd.f32 %v2783_v55, %v2718_v52 }
 0x27e   : > { %v2792_v38 = vadd.f32 %v2743_v32, %v2678_v2  ;;  %v2793_v41 = vadd.f32 %v2757_v40, %v2692_v54 }
 0x27f   : > { %v2808_v34 = vadd.f32 %v2800_v29, %v2790_v63  ;;  %v2809_v22 = vadd.f32 %v2801_v58, %v2791_v46 }
 0x280   : > { %v2810_v11 = vadd.f32 %v2798_v16, %v2792_v38  ;;  %v2811_v19 = vadd.f32 %v2799_v37, %v2793_v41 }
 0x281   : > { %v2816_v27 = vmax.f32 %v2808_v34, 0.0  ;;  %v2817_v49 = vmax.f32 %v2809_v22, 0.0 }
 0x282   : > { %v2818_v36 = vmax.f32 %v2810_v11, 0.0  ;;  %v2819_v62 = vmax.f32 %v2811_v19, 0.0 }
 0x284   : > { %v2822_v24 = vadd.f32 %v2818_v36, %v2814_v43  ;;  %v2829_v51 = vadd.f32 %v2819_v62, %v2815_v60  ;;  %v2771_v3 = vpop.f32.mrf.mxu2  ;;  %v2785_v30 = vpop.f32.mrf.mxu3 }
 0x285   : > { %v2794_v35 = vadd.f32 %v2771_v3, %v2706_v4  ;;  %v2795_v21 = vadd.f32 %v2785_v30, %v2720_v17 }
 0x286   : > { %v2823_v16 = vrot.slane %v2822_v24, 4  ;;  %v2830_v44 = vrot.slane %v2829_v51, 4 }
 0x287   : > { %v2812_v57 = vadd.f32 %v2800_v29, %v2794_v35  ;;  %v2813_v61 = vadd.f32 %v2801_v58, %v2795_v21 }
 0x288   : > { %v2831_v15 = vadd.f32 %v2830_v44, %v2829_v51  ;;  %v2824_v39 = vadd.f32 %v2823_v16, %v2822_v24 }
 0x289   : > { %v2820_v31 = vmax.f32 %v2812_v57, 0.0  ;;  %v2821_v37 = vmax.f32 %v2813_v61, 0.0 }
 0x28a   : > { %v2832_v47 = vrot.slane %v2831_v15, 2  ;;  %v2825_v2 = vrot.slane %v2824_v39, 2 }
 0x28b   : > { %v2836_v28 = vadd.f32 %v2820_v31, %v2816_v27  ;;  %v2843_v7 = vadd.f32 %v2821_v37, %v2817_v49 }
 0x28c   : > { %v2833_v6 = vadd.f32 %v2832_v47, %v2831_v15  ;;  %v2826_v18 = vadd.f32 %v2825_v2, %v2824_v39 }
 0x28d   : > { %v2837_v54 = vrot.slane %v2836_v28, 4  ;;  %v2844_v48 = vrot.slane %v2843_v7, 4 }
 0x28e   : > { %v2834_v55 = vrot.slane %v2833_v6, 1  ;;  %v2827_v10 = vrot.slane %v2826_v18, 1 }
 0x28f   : > { %v2838_v25 = vadd.f32 %v2837_v54, %v2836_v28  ;;  %v2845_v56 = vadd.f32 %v2844_v48, %v2843_v7 }
 0x290   : > { %v2835_v23 = vadd.f32 %v2834_v55, %v2833_v6  ;;  %v2828_v52 = vadd.f32 %v2827_v10, %v2826_v18 }
 0x291   : > { %v2839_v32 = vrot.slane %v2838_v25, 2  ;;  %v2846_v40 = vrot.slane %v2845_v56, 2 }
 0x292   : > { %v2854_v1 = vrot.slane %v2835_v23, 7 }
 0x293   : > { %v2840_v59 = vadd.f32 %v2839_v32, %v2838_v25  ;;  %v2847_v45 = vadd.f32 %v2846_v40, %v2845_v56 }
 0x294   : > { %v2857_v20 = vsel %vm870_vm4, %v2828_v52, %v2854_v1 }
 0x295   : > { %v2841_v38 = vrot.slane %v2840_v59, 1  ;;  %v2848_v41 = vrot.slane %v2847_v45, 1 }
 0x297   : > { %v2842_v33 = vadd.f32 %v2841_v38, %v2840_v59  ;;  %v2849_v53 = vadd.f32 %v2848_v41, %v2847_v45 }
 0x299   : > { %v2855_v42 = vrot.slane %v2842_v33, 6  ;;  %v2856_v5 = vrot.slane %v2849_v53, 5 }
 0x29b   : > { %v2858_v63 = vsel %vm872_vm5, %v2855_v42, %v2856_v5 }
 0x29c   : > { %v2859_v29 = vsel %vm874_vm6, %v2857_v20, %v2858_v63 }
 0x29d   : > { %2862 = vst.msk [vmem:[#allocation2 + $0x7] ss:$8 sm:$0xf] %vm4585_vm7, %v2859_v29 }
 0x2a4   : > { %v2864_v11 = vld [vmem:[#allocation2] sm:$0xff]  ;;  %v2865_v19 = vld [vmem:[#allocation2 + $0x8] sm:$0xff]  ;;  %v2866_v50 = vld [vmem:[#allocation2 + $0x10] sm:$0xff] }
 0x2a5   : > { %2952 = vmatmul.f32.vlgmr.msra.gmra.mxu0 %v2864_v11  ;;  %2972 = vmatmul.f32.vlgmr.msra.gmra.mxu1 %v2865_v19  ;;  %v2867_v9 = vld [vmem:[#allocation2 + $0x18] sm:$0xff] }
 0x2a6   : > { %2992 = vmatmul.f32.vlgmr.msra.gmra.mxu2 %v2866_v50  ;;  %3012 = vmatmul.f32.vlgmr.msra.gmra.mxu3 %v2867_v9 }
 0x322   : > { %v2953_v46 = vpop.f32.mrf.mxu0  ;;  %v2973_v14 = vpop.f32.mrf.mxu1 }
 0x323   : > { %v2954_v58 = vadd.f32 %v3574_v0, %v2953_v46 }
 0x325   : > { %v2974_v26 = vadd.f32 %v2973_v14, %v2954_v58 }
 0x329   : > { %v2993_v8 = vpop.f32.mrf.mxu2  ;;  %v3013_v60 = vpop.f32.mrf.mxu3 }
 0x32a   : > { %v2994_v43 = vadd.f32 %v2993_v8, %v2974_v26 }
 0x32c   : > { %v3014_v36 = vadd.f32 %v3013_v60, %v2994_v43 }
 0x32e   : > { %3016 = vst [vmem:[%s220_s6] sm:$0xff] %v3014_v36 }
 0x32f   : > { %3614 = shalt.err (!%p3611_p3)
}
 0x330   : > { %3535 = dma.vmem_to_hbm [thread:$0]  (%p3718_p5), %s3031_s7, 128, %s3033_s8, %s3018_s17  }
 0x331 PF: > { %p3541_p4 = scmp.ge.s32.totalorder %s3649_s21, 2  ;;  %s3044_s16 = sand.u32 1, %s3637_s18  }
 0x332   : > { %s3045_s22 = scalar_lea.sflag [#allocation4], %s3044_s16 }
 0x333   : > { %p3538_p7 = pnand %p3541_p4, %p3722_p6 }
 0x335   : > { %p3539_p8 = pneg %p3538_p7 }
 0x337   : > { %3632 = dma.done.wait (%p3539_p8), %s3045_s22, 128  }
 0x338   : > { %3634 = vsyncadd (%p3539_p8), %s3045_s22, 4294967168  ;;  %p15_p9 = scmp.ge.s32.totalorder %s3704_s24, 4   ;;  %s5687_s18 = smov %s3641_s19 }
 0x339   : > { %s5688_s19 = smov %s3645_s20  ;;  %s5689_s20 = smov %s3716_s27 }
 0x33a   : > { %s5690_s21 = smov %s3704_s24  ;;  %17 = sbr.rel (!%p15_p9) target bundleno = 3 (0x3), region = 91 }
 0x33f   :  { %3051 = vsyncpa [#allocation4], 1 }
 0x340   :  { %3053 = vsyncpa [#allocation4 + $0x1], 1 }

</bundles_post_ra>
